<compile_context>
chip_gen: v6e
topology: v6e:2x2x1
jax: 0.10.0
libtpu: 0.0.40
codegen_flags: <defaults>
</compile_context>

<pallas_src>
import functools
import math

import jax
import jax.numpy as jnp
from jax import lax
from jax.experimental import pallas as pl
from jax.experimental.pallas import tpu as pltpu

# ---------------- module hyper-parameters (small synthetic config) ----------------
BATCH = 2
INPUT_SIZE = 32
MEM_SIZE = 64                 # m
CELL_SIZE = 16                # w
READ_HEADS = 4                # r
K_SPARSE = 4                  # K (sparse reads)
KL = 4                        # temporal reads
TEMPORAL = 2 * KL             # 8
C = READ_HEADS * K_SPARSE + TEMPORAL + 1         # 25 visible cells
TEMPORAL_OFF = READ_HEADS * K_SPARSE + 1         # 17 (torch: r*K + 1 quirk)
WV_OFF = READ_HEADS * CELL_SIZE                  # 64
WG_OFF = WV_OFF + CELL_SIZE                      # 80
IG_OFF = WG_OFF + 1                              # 81
IF_TOTAL = IG_OFF + C                            # 106 fused interface width
CNT_W = 4                     # counters row: [lu_b0, lu_b1, flag, pad]
FILL = 1e-6                   # util.δ used for fills
EPS = 1e-6                    # util.δ used in cosine similarity
DELTA_SELF = 0.005            # self.δ threshold in update_usage
NEG_MASK = -1e30              # score for memory rows outside the search limit
NEG_DONE = -2e30              # score for rows already selected by top-k


# ---------------------------------------------------------------------------------
# The single fused kernel
# ---------------------------------------------------------------------------------
def _stm_kernel(
    # inputs
    xi_ref, wif_ref, bif_ref, pos_ref, ps_ref, mem_ref, vm_ref,
    link_ref, rev_ref, cnt_ref,
    # outputs
    rv_out, pos_out, ps_out, mem_out, vm_out, link_out, rev_out, cnt_out,
    *, timestep):
  f32 = jnp.float32
  M, Cc, R, W, T, K = MEM_SIZE, C, READ_HEADS, CELL_SIZE, TEMPORAL, K_SPARSE

  def iota(shape, dim):
    return lax.broadcasted_iota(jnp.int32, shape, dim)

  def fiota(shape, dim):
    return iota(shape, dim).astype(f32)

  def dot(a, b):
    return jnp.dot(a, b, preferred_element_type=f32)

  def dott(a, b):  # a[m,k] · b[n,k]^T -> [m,n]
    return lax.dot_general(a, b, (((1,), (1,)), ((), ())),
                           preferred_element_type=f32)

  def sigmoid(x):
    return 1.0 / (1.0 + jnp.exp(-x))

  # ---------------- hoisted constants (built once, shared by both batches) --------
  iota_cm = fiota((Cc, M), 1)
  iota_mc = fiota((M, Cc), 0)
  iota_rm = fiota((R, M), 1)
  iota_1m = fiota((1, M), 1)
  lane_tm = fiota((T, M), 1)
  eye_tm = (iota((T, M), 0) == iota((T, M), 1)).astype(f32)   # literal T.eye(m,k)^T
  eye_c = (iota((Cc, Cc), 0) == iota((Cc, Cc), 1)).astype(f32)
  upper_c = (iota((Cc, Cc), 0) < iota((Cc, Cc), 1)).astype(f32)
  lower_c = (iota((Cc, Cc), 0) > iota((Cc, Cc), 1)).astype(f32)
  eye_t = (iota((T, T), 0) == iota((T, T), 1)).astype(f32)
  upper_t = (iota((T, T), 0) < iota((T, T), 1)).astype(f32)
  lane_cnt = iota((1, CNT_W), 1)
  sub_r1 = iota((R, 1), 0)
  # per-pick lane-scatter masks for the sparse block of the new read positions
  sub_rc = iota((R, Cc), 0)
  lane_rc = iota((R, Cc), 1)
  s_masks = [(lane_rc == sub_rc * K + k).astype(f32) for k in range(K)]
  ones_1w = jnp.ones((1, W), f32)

  # ---------- interface linears for the whole batch: one MXU matmul --------------
  # columns: [read query (R*W) | write vec (W) | write gate (1) | interp gate (C)]
  iface = dot(xi_ref[...], wif_ref[...]) + bif_ref[...]            # [B, IF_TOTAL]

  flag_old = cnt_ref[0:1, BATCH:BATCH + 1]                          # [1,1] int32
  lu_old0 = cnt_ref[0:1, 0:1]                                       # [1,1] int32

  # precedence rows only occupy the first BATCH*T lanes of packed row 3
  ps_out[3:4, BATCH * T:] = jnp.zeros((1, BATCH * M - BATCH * T), f32)

  mem_new_l, fwd_l, bwd_l, lu_l, rw_old_l = [], [], [], [], []

  # =====================  write phase (per batch element)  ======================
  for b in range(BATCH):
    bM = b * M
    rw_old = ps_ref[0:1, bM:bM + M]                                 # [1, M]
    ww_old = ps_ref[1:2, bM:bM + M]
    us_old = ps_ref[2:3, bM:bM + M]
    dense3 = ps_ref[0:3, bM:bM + M]                                 # [3, M] rw|ww|us
    prec_row = ps_ref[3:4, b * T:(b + 1) * T]                       # [1, T]
    rw_old_l.append(rw_old)

    pos_row = pos_ref[b:b + 1, :].astype(f32)                       # [1, C]
    pos_col = jnp.sum(eye_c * pos_row, axis=1, keepdims=True)       # [C, 1]

    # gathers at the OLD positions (duplicates allowed): one tiny MXU matmul
    e_mc = (iota_mc == pos_row).astype(f32)                         # [M, C]
    g3 = dot(dense3, e_mc)                                          # [3, C]
    rw_g, ww_g, us_g = g3[0:1, :], g3[1:2, :], g3[2:3, :]
    if timestep == 1:
      rw_g = rw_g + 1.0

    # update_usage.  NOTE: torch computes I = (relevant_usages == min) — an
    # indicator of ALL tied minima, kept verbatim here.
    u = ((rw_g + ww_g) > DELTA_SELF).astype(f32)
    i_min = (us_g == jnp.min(us_g, axis=1, keepdims=True)).astype(f32)
    rel_new = (float(timestep) - us_g) * u + us_g * (1.0 - u)

    # interpolated write weights (row form)
    ig = sigmoid(iface[b:b + 1, IG_OFF:IG_OFF + Cc])                # [1, C]
    wg = sigmoid(iface[b:b + 1, WG_OFF:WG_OFF + 1])                 # [1, 1]
    wv_row = iface[b:b + 1, WV_OFF:WV_OFF + W]                      # [1, W]
    ww_c = wg * (ig * rw_g + (1.0 - ig) * i_min)                    # [1, C]

    # "last occurrence wins" dedup masks for scatters with duplicate positions
    p_eq = (pos_col == pos_row).astype(f32)                         # [C, C]
    keep_col = 1.0 - jnp.max(p_eq * upper_c, axis=1, keepdims=True)  # [C, 1]
    keep_row = 1.0 - jnp.max(p_eq * lower_c, axis=0, keepdims=True)  # [1, C]

    fo = (iota_cm == pos_col).astype(f32)                           # [C, M]
    hit_row = jnp.max(fo, axis=0, keepdims=True)                    # [1, M]
    hit_col = jnp.max(e_mc, axis=1, keepdims=True)                  # [M, 1]

    # scatter write-weights / usage back to the dense rows: one [2,C]x[C,M] matmul
    vals2 = jnp.where(iota((2, Cc), 0) == 0, ww_c, rel_new)         # [2, C]
    scat2 = dot(vals2, fo * keep_col)                               # [2, M]
    ww_new = ww_old * (1.0 - hit_row) + scat2[0:1, :]
    us_new = us_old * (1.0 - hit_row) + scat2[1:2, :]
    ps_out[1:2, bM:bM + M] = ww_new
    ps_out[2:3, bM:bM + M] = us_new

    # visible-memory erase / write, then scatter rows into dense memory (MXU)
    i_min_col = jnp.sum(eye_c * i_min, axis=1, keepdims=True)       # [C, 1]
    ww_c_col = jnp.sum(eye_c * ww_c, axis=1, keepdims=True)         # [C, 1]
    nvm = vm_ref[b] * (1.0 - i_min_col) + ww_c_col * wv_row         # [C, W]
    mem_new = mem_ref[b] * (1.0 - hit_col) + dot(e_mc * keep_row, nvm)
    mem_out[b] = mem_new
    mem_new_l.append(mem_new)

    # temporal positions (literal torch slice [r*K + 1 :], the documented quirk)
    tpos_row = pos_row[:, TEMPORAL_OFF:]                            # [1, T]
    tpos_col = pos_col[TEMPORAL_OFF:, :]                            # [T, 1]
    te = (lane_tm == tpos_col).astype(f32)                          # [T, M]
    pt_eq = (tpos_col == tpos_row).astype(f32)                      # [T, T]
    keep_t = 1.0 - jnp.max(pt_eq * upper_t, axis=1, keepdims=True)  # [T, 1]
    prec_col = jnp.sum(eye_t * prec_row, axis=1, keepdims=True)     # [T, 1]
    prec_dense_row = jnp.sum(te * keep_t * prec_col, axis=0, keepdims=True)  # [1, M]
    tww_col = jnp.sum(te * ww_new, axis=1, keepdims=True)           # [T, 1]
    trw_col = jnp.sum(te * rw_old, axis=1, keepdims=True)           # [T, 1]

    # link / rev-link updates in the transposed [T, M] layout (values identical
    # to the torch [M, T] layout), multiplied by the literal torch T.eye(m, k).
    link_new = ((1.0 - ww_new) * link_ref[b] + ww_new * prec_col) * eye_tm
    rev_new = ((1.0 - tww_col) * rev_ref[b] + tww_col * prec_dense_row) * eye_tm
    link_out[b] = link_new
    rev_out[b] = rev_new

    # directional weightings: plain sublane reduces, no transposes / matmuls
    fwd_l.append(jnp.sum(link_new * trw_col, axis=0, keepdims=True))   # [1, M]
    bwd_l.append(jnp.sum(rev_new * trw_col, axis=0, keepdims=True))    # [1, M]

    # precedence update (torch uses the OLD read weights at the temporal slots)
    trw_row = jnp.sum(eye_t * trw_col, axis=0, keepdims=True)       # [1, T]
    prec_new = (1.0 - jnp.sum(trw_col, axis=0, keepdims=True)) * prec_row + trw_row
    ps_out[3:4, b * T:(b + 1) * T] = prec_new

    # new least-used cell (argmin of the NEW usage, lowest index on ties)
    min_u = jnp.min(us_new, axis=1, keepdims=True)
    lu_f = jnp.min(jnp.where(us_new == min_u, iota_1m, float(M)),
                   axis=1, keepdims=True)                           # [1, 1]
    lu_l.append(lu_f)

  # memory-limit bookkeeping (uses batch element 0, exactly like the module)
  flag_new = jnp.logical_or(lu_old0 >= M - 1, flag_old > 0)         # [1, 1] bool
  max_len = jnp.where(flag_new, jnp.float32(M - 1), lu_l[0])        # [1, 1]
  cnt_row = (lane_cnt == BATCH).astype(f32) * flag_new.astype(f32)
  for b in range(BATCH):
    cnt_row = cnt_row + (lane_cnt == b).astype(f32) * lu_l[b]
  cnt_out[...] = cnt_row.astype(jnp.int32)

  # =====================  read phase (per batch element)  =======================
  for b in range(BATCH):
    mem_new = mem_new_l[b]

    # read-query heads [R, W] assembled from the interface row (no scratch stores)
    keys = (sub_r1 == 0).astype(f32) * iface[b:b + 1, 0:W]
    for h in range(1, R):
      keys = keys + (sub_r1 == h).astype(f32) * iface[b:b + 1, h * W:(h + 1) * W]

    # TODO(synk): FLANN/FAISS approximate-NN index (rebuild + search) has no
    # Pallas equivalent; replaced by an exact masked KNN over rows [0, limit).
    dots = dott(keys, mem_new)                                      # [R, M]
    m2_row = dott(ones_1w, mem_new * mem_new)                       # [1, M]
    limit = jnp.where(flag_old > 0, jnp.float32(M),
                      pos_ref[b:b + 1, Cc - 1:Cc].astype(f32))      # [1, 1]
    # the row-constant ||key||^2 term is dropped: it does not change the top-k
    s = jnp.where(iota_rm < limit, 2.0 * dots - m2_row, NEG_MASK)

    # new read positions accumulated directly as an index row [1, C]
    pos_acc = jnp.zeros((1, Cc), f32)
    for k in range(K):                                              # sparse top-K
      mval = jnp.max(s, axis=1, keepdims=True)
      idx = jnp.min(jnp.where(s == mval, iota_rm, float(M)), axis=1, keepdims=True)
      pos_acc = pos_acc + jnp.sum(s_masks[k] * idx, axis=0, keepdims=True)
      s = jnp.where(iota_rm == idx, NEG_DONE, s)
    base = R * K
    for vrow, off in ((fwd_l[b], base), (bwd_l[b], base + KL)):     # temporal top-KL
      v = vrow
      for k in range(KL):
        mval = jnp.max(v, axis=1, keepdims=True)
        idx = jnp.min(jnp.where(v == mval, iota_1m, float(M)), axis=1, keepdims=True)
        pos_acc = pos_acc + eye_c[off + k:off + k + 1, :] * idx
        v = jnp.where(iota_1m == idx, NEG_DONE, v)
    pos_acc = pos_acc + eye_c[Cc - 1:Cc, :] * lu_l[b]               # least-used slot

    # clamp(0, max_length) then rebuild the one-hot gather matrix once
    pos_acc = jnp.minimum(jnp.maximum(pos_acc, 0.0), max_len)
    pos_out[b:b + 1, :] = pos_acc.astype(jnp.int32)
    pos_col_n = jnp.sum(eye_c * pos_acc, axis=1, keepdims=True)     # [C, 1]
    fnew = (iota_cm == pos_col_n).astype(f32)                       # [C, M]

    # gather the visible memory rows: one small MXU matmul
    vmem = dot(fnew, mem_new)                                       # [C, W]
    vm_out[b] = vmem

    # cosine similarity -> per-head softmax -> read vectors (EUP reciprocals)
    inv_v = pl.reciprocal(jnp.sqrt(jnp.sum(vmem * vmem, axis=1, keepdims=True)) + EPS,
                          approx=True)
    inv_k = pl.reciprocal(jnp.sqrt(jnp.sum(keys * keys, axis=1, keepdims=True)) + EPS,
                          approx=True)
    sim = dott(keys * inv_k, vmem * inv_v)                          # [R, C]
    sim = sim - jnp.max(sim, axis=1, keepdims=True)
    ex = jnp.exp(sim)
    att = ex * pl.reciprocal(jnp.sum(ex, axis=1, keepdims=True), approx=True)
    rv_out[b] = dot(att, vmem)                                      # [R, W]

    # per-head product (pairwise multiply tree)
    rows = [att[h:h + 1, :] for h in range(R)]
    while len(rows) > 1:
      nxt = [rows[i] * rows[i + 1] for i in range(0, len(rows) - 1, 2)]
      if len(rows) % 2 == 1:
        nxt.append(rows[-1])
      rows = nxt
    prod_row = rows[0]                                              # [1, C]

    # scatter the per-head product into the dense read weights (new positions)
    pn_eq = (pos_col_n == pos_acc).astype(f32)                      # [C, C]
    keep_new = 1.0 - jnp.max(pn_eq * upper_c, axis=1, keepdims=True)
    hit_new = jnp.max(fnew, axis=0, keepdims=True)                  # [1, M]
    rw_new = rw_old_l[b] * (1.0 - hit_new) + dot(prod_row, fnew * keep_new)
    ps_out[0:1, b * M:(b + 1) * M] = rw_new


# ---------------------------------------------------------------------------------
# Wrapper: one pallas_call per forward step, whole batch in one block
# ---------------------------------------------------------------------------------
def _vspec(shape):
  nd = len(shape)
  return pl.BlockSpec(shape, lambda i, nd=nd: (0,) * nd)


def stm_forward(xi, hidden, params, timestep):
  B = xi.shape[0]
  assert B == BATCH
  inputs = (
      xi, params["W_if"], params["b_if"],
      hidden["read_positions"], hidden["packed_state"],
      hidden["memory"], hidden["visible_memory"],
      hidden["link_matrix"], hidden["rev_link_matrix"],
      hidden["counters"],
  )
  out_shape = (
      jax.ShapeDtypeStruct((B, READ_HEADS, CELL_SIZE), jnp.float32),   # read_vectors
      jax.ShapeDtypeStruct((B, C), jnp.int32),                         # read_positions
      jax.ShapeDtypeStruct((4, B * MEM_SIZE), jnp.float32),            # rw|ww|usage|prec
      jax.ShapeDtypeStruct((B, MEM_SIZE, CELL_SIZE), jnp.float32),     # memory
      jax.ShapeDtypeStruct((B, C, CELL_SIZE), jnp.float32),            # visible_memory
      jax.ShapeDtypeStruct((B, TEMPORAL, MEM_SIZE), jnp.float32),      # link (transposed)
      jax.ShapeDtypeStruct((B, TEMPORAL, MEM_SIZE), jnp.float32),      # rev link (transposed)
      jax.ShapeDtypeStruct((1, CNT_W), jnp.int32),                     # least_used | flag
  )
  outs = pl.pallas_call(
      functools.partial(_stm_kernel, timestep=timestep),
      out_shape=out_shape,
      grid=(1,),
      in_specs=[_vspec(x.shape) for x in inputs],
      out_specs=tuple(_vspec(s.shape) for s in out_shape),
      # recycle the HBM of the large recurrent state in place
      input_output_aliases={5: 3, 6: 4, 7: 5, 8: 6},
      compiler_params=pltpu.CompilerParams(dimension_semantics=("arbitrary",)),
  )(*inputs)
  (read_vectors, read_positions, packed_state, memory, visible_memory,
   link, rev_link, counters) = outs
  new_hidden = {
      "memory": memory,
      "visible_memory": visible_memory,
      "link_matrix": link,
      "rev_link_matrix": rev_link,
      "packed_state": packed_state,      # rows: read_w | write_w | usage | precedence
      "read_positions": read_positions,
      "counters": counters,              # [lu_b0, lu_b1, mem_limit_reached, pad]
      "read_vectors": read_vectors,
  }
  return read_vectors, new_hidden


# ---------------------------------------------------------------------------------
# Parameter / hidden-state init (deterministic, mirrors __init__ / reset())
# ---------------------------------------------------------------------------------
def init_params(key):
  ks = jax.random.split(key, 8)
  ortho = jax.nn.initializers.orthogonal()
  w_rq = ortho(ks[0], (READ_HEADS * CELL_SIZE, INPUT_SIZE), jnp.float32)
  w_wv = ortho(ks[1], (CELL_SIZE, INPUT_SIZE), jnp.float32)
  w_wg = ortho(ks[2], (1, INPUT_SIZE), jnp.float32)
  w_ig = ortho(ks[3], (C, INPUT_SIZE), jnp.float32)
  bound = 1.0 / math.sqrt(INPUT_SIZE)
  b_rq = jax.random.uniform(ks[4], (READ_HEADS * CELL_SIZE,), jnp.float32, -bound, bound)
  b_wv = jax.random.uniform(ks[5], (CELL_SIZE,), jnp.float32, -bound, bound)
  b_wg = jax.random.uniform(ks[6], (1,), jnp.float32, -bound, bound)
  b_ig = jax.random.uniform(ks[7], (C,), jnp.float32, -bound, bound)
  # single fused interface matrix: [read query | write vector | write gate | ig]
  w_all = jnp.concatenate([w_rq, w_wv, w_wg, w_ig], axis=0).T        # [IN, 106]
  b_all = jnp.concatenate([b_rq, b_wv, b_wg, b_ig])[None, :]         # [1, 106]
  return {"W_if": w_all, "b_if": b_all}


def init_hidden(batch):
  ps = jnp.zeros((4, batch * MEM_SIZE), jnp.float32)
  ps = ps.at[0:2, :].set(FILL)                       # read / write weights
  ps = ps.at[3, :batch * TEMPORAL].set(FILL)         # precedence (usage row stays 0)
  counters = jnp.zeros((1, CNT_W), jnp.int32).at[0, :batch].set(C + 1)
  return {
      "memory": jnp.full((batch, MEM_SIZE, CELL_SIZE), FILL, jnp.float32),
      "visible_memory": jnp.full((batch, C, CELL_SIZE), FILL, jnp.float32),
      "link_matrix": jnp.zeros((batch, TEMPORAL, MEM_SIZE), jnp.float32),
      "rev_link_matrix": jnp.zeros((batch, TEMPORAL, MEM_SIZE), jnp.float32),
      "packed_state": ps,
      "read_positions": jnp.broadcast_to(jnp.arange(C, dtype=jnp.int32), (batch, C)),
      "counters": counters,
      "read_vectors": jnp.full((batch, READ_HEADS, CELL_SIZE), FILL, jnp.float32),
  }


# ---------------------------------------------------------------------------------
if __name__ == "__main__":
  key = jax.random.PRNGKey(0)
  pkey, xkey = jax.random.split(key)
  params = init_params(pkey)
  xi = jax.random.normal(xkey, (BATCH, INPUT_SIZE), jnp.float32)
  hidden = init_hidden(BATCH)

  fwd_fn = jax.jit(stm_forward, static_argnames=("timestep",))
  # module does self.timestep += 1 before write -> first call uses timestep == 1
  read_vectors, new_hidden = fwd_fn(xi, hidden, params, timestep=1)
  jax.block_until_ready((read_vectors, new_hidden))

  assert read_vectors.shape == (BATCH, READ_HEADS, CELL_SIZE)
  assert new_hidden["read_positions"].shape == (BATCH, C)
  assert new_hidden["read_positions"].dtype == jnp.int32
  assert new_hidden["visible_memory"].shape == (BATCH, C, CELL_SIZE)
  assert new_hidden["memory"].shape == (BATCH, MEM_SIZE, CELL_SIZE)
  assert new_hidden["link_matrix"].shape == (BATCH, TEMPORAL, MEM_SIZE)
  assert bool(jnp.all(jnp.isfinite(read_vectors)))
  assert bool(jnp.all(jnp.isfinite(new_hidden["memory"])))
  assert bool(jnp.all((new_hidden["read_positions"] >= 0)
                      & (new_hidden["read_positions"] < MEM_SIZE)))

  # second step to exercise the recurrent (packed / aliased) state path
  read_vectors2, new_hidden2 = fwd_fn(xi, new_hidden, params, timestep=2)
  jax.block_until_ready((read_vectors2, new_hidden2))
  assert bool(jnp.all(jnp.isfinite(read_vectors2)))
  assert bool(jnp.all(jnp.isfinite(new_hidden2["memory"])))
  print("KERNEL_OK")
</pallas_src>

<mosaic_0001>
module attributes {stable_mosaic.version = 11 : i64} {
  func.func @_stm_kernel(%arg0: i32, %arg1: memref<2x32xf32, #tpu.memory_space<vmem>>, %arg2: memref<32x106xf32, #tpu.memory_space<vmem>>, %arg3: memref<1x106xf32, #tpu.memory_space<vmem>>, %arg4: memref<2x25xi32, #tpu.memory_space<vmem>>, %arg5: memref<4x128xf32, #tpu.memory_space<vmem>>, %arg6: memref<2x64x16xf32, #tpu.memory_space<vmem>>, %arg7: memref<2x25x16xf32, #tpu.memory_space<vmem>>, %arg8: memref<2x8x64xf32, #tpu.memory_space<vmem>>, %arg9: memref<2x8x64xf32, #tpu.memory_space<vmem>>, %arg10: memref<1x4xi32, #tpu.memory_space<vmem>>, %arg11: memref<2x4x16xf32, #tpu.memory_space<vmem>>, %arg12: memref<2x25xi32, #tpu.memory_space<vmem>>, %arg13: memref<4x128xf32, #tpu.memory_space<vmem>>, %arg14: memref<2x64x16xf32, #tpu.memory_space<vmem>>, %arg15: memref<2x25x16xf32, #tpu.memory_space<vmem>>, %arg16: memref<2x8x64xf32, #tpu.memory_space<vmem>>, %arg17: memref<2x8x64xf32, #tpu.memory_space<vmem>>, %arg18: memref<1x4xi32, #tpu.memory_space<vmem>>) attributes {dimension_semantics = [#tpu.dimension_semantics<arbitrary>], iteration_bounds = array<i64: 1>, scalar_prefetch = 0 : i64, scratch_operands = 0 : i64, tpu.core_type = #tpu.core_type<tc>, window_params = [{pipeline_mode = #tpu.pipeline_mode<synchronous>, transform_indices = @transform_0, window_bounds = array<i64: 2, 32>}, {pipeline_mode = #tpu.pipeline_mode<synchronous>, transform_indices = @transform_1, window_bounds = array<i64: 32, 106>}, {pipeline_mode = #tpu.pipeline_mode<synchronous>, transform_indices = @transform_2, window_bounds = array<i64: 1, 106>}, {pipeline_mode = #tpu.pipeline_mode<synchronous>, transform_indices = @transform_3, window_bounds = array<i64: 2, 25>}, {pipeline_mode = #tpu.pipeline_mode<synchronous>, transform_indices = @transform_4, window_bounds = array<i64: 4, 128>}, {pipeline_mode = #tpu.pipeline_mode<synchronous>, transform_indices = @transform_5, window_bounds = array<i64: 2, 64, 16>}, {pipeline_mode = #tpu.pipeline_mode<synchronous>, transform_indices = @transform_6, window_bounds = array<i64: 2, 25, 16>}, {pipeline_mode = #tpu.pipeline_mode<synchronous>, transform_indices = @transform_7, window_bounds = array<i64: 2, 8, 64>}, {pipeline_mode = #tpu.pipeline_mode<synchronous>, transform_indices = @transform_8, window_bounds = array<i64: 2, 8, 64>}, {pipeline_mode = #tpu.pipeline_mode<synchronous>, transform_indices = @transform_9, window_bounds = array<i64: 1, 4>}, {pipeline_mode = #tpu.pipeline_mode<synchronous>, transform_indices = @transform_10, window_bounds = array<i64: 2, 4, 16>}, {pipeline_mode = #tpu.pipeline_mode<synchronous>, transform_indices = @transform_11, window_bounds = array<i64: 2, 25>}, {pipeline_mode = #tpu.pipeline_mode<synchronous>, transform_indices = @transform_12, window_bounds = array<i64: 4, 128>}, {pipeline_mode = #tpu.pipeline_mode<synchronous>, transform_indices = @transform_13, window_bounds = array<i64: 2, 64, 16>}, {pipeline_mode = #tpu.pipeline_mode<synchronous>, transform_indices = @transform_14, window_bounds = array<i64: 2, 25, 16>}, {pipeline_mode = #tpu.pipeline_mode<synchronous>, transform_indices = @transform_15, window_bounds = array<i64: 2, 8, 64>}, {pipeline_mode = #tpu.pipeline_mode<synchronous>, transform_indices = @transform_16, window_bounds = array<i64: 2, 8, 64>}, {pipeline_mode = #tpu.pipeline_mode<synchronous>, transform_indices = @transform_17, window_bounds = array<i64: 1, 4>}]} {
    %0 = tpu.iota {dimensions = array<i32: 1>} : vector<25x64xi32>
    %1 = arith.sitofp %0 : vector<25x64xi32> to vector<25x64xf32>
    %2 = tpu.iota {dimensions = array<i32: 0>} : vector<64x25xi32>
    %3 = arith.sitofp %2 : vector<64x25xi32> to vector<64x25xf32>
    %4 = tpu.iota {dimensions = array<i32: 1>} : vector<4x64xi32>
    %5 = arith.sitofp %4 : vector<4x64xi32> to vector<4x64xf32>
    %6 = tpu.iota {dimensions = array<i32: 1>} : vector<1x64xi32>
    %7 = arith.sitofp %6 : vector<1x64xi32> to vector<1x64xf32>
    %8 = tpu.iota {dimensions = array<i32: 1>} : vector<8x64xi32>
    %9 = arith.sitofp %8 : vector<8x64xi32> to vector<8x64xf32>
    %10 = tpu.iota {dimensions = array<i32: 0>} : vector<8x64xi32>
    %11 = tpu.iota {dimensions = array<i32: 1>} : vector<8x64xi32>
    %12 = arith.cmpi eq, %10, %11 : vector<8x64xi32>
    %13 = arith.extui %12 : vector<8x64xi1> to vector<8x64xi32>
    %14 = arith.sitofp %13 : vector<8x64xi32> to vector<8x64xf32>
    %15 = tpu.iota {dimensions = array<i32: 0>} : vector<25x25xi32>
    %16 = tpu.iota {dimensions = array<i32: 1>} : vector<25x25xi32>
    %17 = arith.cmpi eq, %15, %16 : vector<25x25xi32>
    %18 = arith.extui %17 : vector<25x25xi1> to vector<25x25xi32>
    %19 = arith.sitofp %18 : vector<25x25xi32> to vector<25x25xf32>
    %20 = tpu.iota {dimensions = array<i32: 0>} : vector<25x25xi32>
    %21 = tpu.iota {dimensions = array<i32: 1>} : vector<25x25xi32>
    %22 = arith.cmpi slt, %20, %21 : vector<25x25xi32>
    %23 = arith.extui %22 : vector<25x25xi1> to vector<25x25xi32>
    %24 = arith.sitofp %23 : vector<25x25xi32> to vector<25x25xf32>
    %25 = tpu.iota {dimensions = array<i32: 0>} : vector<25x25xi32>
    %26 = tpu.iota {dimensions = array<i32: 1>} : vector<25x25xi32>
    %27 = arith.cmpi sgt, %25, %26 : vector<25x25xi32>
    %28 = arith.extui %27 : vector<25x25xi1> to vector<25x25xi32>
    %29 = arith.sitofp %28 : vector<25x25xi32> to vector<25x25xf32>
    %30 = tpu.iota {dimensions = array<i32: 0>} : vector<8x8xi32>
    %31 = tpu.iota {dimensions = array<i32: 1>} : vector<8x8xi32>
    %32 = arith.cmpi eq, %30, %31 : vector<8x8xi32>
    %33 = arith.extui %32 : vector<8x8xi1> to vector<8x8xi32>
    %34 = arith.sitofp %33 : vector<8x8xi32> to vector<8x8xf32>
    %35 = tpu.iota {dimensions = array<i32: 0>} : vector<8x8xi32>
    %36 = tpu.iota {dimensions = array<i32: 1>} : vector<8x8xi32>
    %37 = arith.cmpi slt, %35, %36 : vector<8x8xi32>
    %38 = arith.extui %37 : vector<8x8xi1> to vector<8x8xi32>
    %39 = arith.sitofp %38 : vector<8x8xi32> to vector<8x8xf32>
    %40 = tpu.iota {dimensions = array<i32: 1>} : vector<1x4xi32>
    %41 = tpu.iota {dimensions = array<i32: 0>} : vector<4x1xi32>
    %42 = tpu.iota {dimensions = array<i32: 0>} : vector<4x25xi32>
    %43 = tpu.iota {dimensions = array<i32: 1>} : vector<4x25xi32>
    %c4_i32 = arith.constant 4 : i32
    %44 = vector.broadcast %c4_i32 : i32 to vector<4x25xi32>
    %45 = arith.muli %42, %44 : vector<4x25xi32>
    %c0_i32 = arith.constant 0 : i32
    %46 = vector.broadcast %c0_i32 : i32 to vector<4x25xi32>
    %47 = arith.addi %45, %46 : vector<4x25xi32>
    %48 = arith.cmpi eq, %43, %47 : vector<4x25xi32>
    %49 = arith.extui %48 : vector<4x25xi1> to vector<4x25xi32>
    %50 = arith.sitofp %49 : vector<4x25xi32> to vector<4x25xf32>
    %c4_i32_0 = arith.constant 4 : i32
    %51 = vector.broadcast %c4_i32_0 : i32 to vector<4x25xi32>
    %52 = arith.muli %42, %51 : vector<4x25xi32>
    %c1_i32 = arith.constant 1 : i32
    %53 = vector.broadcast %c1_i32 : i32 to vector<4x25xi32>
    %54 = arith.addi %52, %53 : vector<4x25xi32>
    %55 = arith.cmpi eq, %43, %54 : vector<4x25xi32>
    %56 = arith.extui %55 : vector<4x25xi1> to vector<4x25xi32>
    %57 = arith.sitofp %56 : vector<4x25xi32> to vector<4x25xf32>
    %c4_i32_1 = arith.constant 4 : i32
    %58 = vector.broadcast %c4_i32_1 : i32 to vector<4x25xi32>
    %59 = arith.muli %42, %58 : vector<4x25xi32>
    %c2_i32 = arith.constant 2 : i32
    %60 = vector.broadcast %c2_i32 : i32 to vector<4x25xi32>
    %61 = arith.addi %59, %60 : vector<4x25xi32>
    %62 = arith.cmpi eq, %43, %61 : vector<4x25xi32>
    %63 = arith.extui %62 : vector<4x25xi1> to vector<4x25xi32>
    %64 = arith.sitofp %63 : vector<4x25xi32> to vector<4x25xf32>
    %c4_i32_2 = arith.constant 4 : i32
    %65 = vector.broadcast %c4_i32_2 : i32 to vector<4x25xi32>
    %66 = arith.muli %42, %65 : vector<4x25xi32>
    %c3_i32 = arith.constant 3 : i32
    %67 = vector.broadcast %c3_i32 : i32 to vector<4x25xi32>
    %68 = arith.addi %66, %67 : vector<4x25xi32>
    %69 = arith.cmpi eq, %43, %68 : vector<4x25xi32>
    %70 = arith.extui %69 : vector<4x25xi1> to vector<4x25xi32>
    %71 = arith.sitofp %70 : vector<4x25xi32> to vector<4x25xf32>
    %cst = arith.constant 1.000000e+00 : f32
    %72 = vector.broadcast %cst : f32 to vector<1x16xf32>
    %c0 = arith.constant 0 : index
    %c0_3 = arith.constant 0 : index
    %73 = vector.load %arg1[%c0, %c0_3] : memref<2x32xf32, #tpu.memory_space<vmem>>, vector<2x32xf32>
    %c0_4 = arith.constant 0 : index
    %c0_5 = arith.constant 0 : index
    %74 = vector.load %arg2[%c0_4, %c0_5] : memref<32x106xf32, #tpu.memory_space<vmem>>, vector<32x106xf32>
    %cst_6 = arith.constant dense<0.000000e+00> : vector<2x106xf32>
    %75 = tpu.matmul %73, %74, %cst_6 {dimension_numbers = #tpu.dot_dimension_numbers<[1], [0], [0], [1], [0, 0, 1, 1], [], []>} : vector<2x32xf32>, vector<32x106xf32>, vector<2x106xf32> -> vector<2x106xf32>
    %c0_7 = arith.constant 0 : index
    %c0_8 = arith.constant 0 : index
    %76 = vector.load %arg3[%c0_7, %c0_8] : memref<1x106xf32, #tpu.memory_space<vmem>>, vector<1x106xf32>
    %77 = vector.broadcast %76 : vector<1x106xf32> to vector<2x106xf32>
    %78 = arith.addf %75, %77 : vector<2x106xf32>
    %c0_9 = arith.constant 0 : index
    %c2 = arith.constant 2 : index
    %79 = vector.load %arg10[%c0_9, %c2] : memref<1x4xi32, #tpu.memory_space<vmem>>, vector<1x1xi32>
    %c0_10 = arith.constant 0 : index
    %c0_11 = arith.constant 0 : index
    %80 = vector.load %arg10[%c0_10, %c0_11] : memref<1x4xi32, #tpu.memory_space<vmem>>, vector<1x1xi32>
    %cst_12 = arith.constant 0.000000e+00 : f32
    %81 = vector.broadcast %cst_12 : f32 to vector<1x112xf32>
    %c3 = arith.constant 3 : index
    %c16 = arith.constant 16 : index
    %82 = vector.load %arg13[%c3, %c16] : memref<4x128xf32, #tpu.memory_space<vmem>>, vector<1x112xf32>
    tpu.vector_store %arg13[%c3, %c16], %81 {strides = array<i32>} : memref<4x128xf32, #tpu.memory_space<vmem>>, vector<1x112xf32>,
    %c0_13 = arith.constant 0 : index
    %c0_14 = arith.constant 0 : index
    %83 = vector.load %arg5[%c0_13, %c0_14] : memref<4x128xf32, #tpu.memory_space<vmem>>, vector<1x64xf32>
    %c1 = arith.constant 1 : index
    %c0_15 = arith.constant 0 : index
    %84 = vector.load %arg5[%c1, %c0_15] : memref<4x128xf32, #tpu.memory_space<vmem>>, vector<1x64xf32>
    %c2_16 = arith.constant 2 : index
    %c0_17 = arith.constant 0 : index
    %85 = vector.load %arg5[%c2_16, %c0_17] : memref<4x128xf32, #tpu.memory_space<vmem>>, vector<1x64xf32>
    %c0_18 = arith.constant 0 : index
    %c0_19 = arith.constant 0 : index
    %86 = vector.load %arg5[%c0_18, %c0_19] : memref<4x128xf32, #tpu.memory_space<vmem>>, vector<3x64xf32>
    %c3_20 = arith.constant 3 : index
    %c0_21 = arith.constant 0 : index
    %87 = vector.load %arg5[%c3_20, %c0_21] : memref<4x128xf32, #tpu.memory_space<vmem>>, vector<1x8xf32>
    %c0_22 = arith.constant 0 : index
    %c0_23 = arith.constant 0 : index
    %88 = vector.load %arg4[%c0_22, %c0_23] : memref<2x25xi32, #tpu.memory_space<vmem>>, vector<1x25xi32>
    %89 = arith.sitofp %88 : vector<1x25xi32> to vector<1x25xf32>
    %90 = vector.broadcast %89 : vector<1x25xf32> to vector<25x25xf32>
    %91 = arith.mulf %19, %90 : vector<25x25xf32>
    %cst_24 = arith.constant dense<0.000000e+00> : vector<25xf32>
    %92 = vector.multi_reduction <add>, %91, %cst_24 [1] : vector<25x25xf32> to vector<25xf32>
    %93 = vector.shape_cast %92 : vector<25xf32> to vector<25x1xf32>
    %94 = vector.broadcast %89 : vector<1x25xf32> to vector<64x25xf32>
    %95 = arith.cmpf oeq, %3, %94 : vector<64x25xf32>
    %96 = arith.extui %95 : vector<64x25xi1> to vector<64x25xi32>
    %97 = arith.sitofp %96 : vector<64x25xi32> to vector<64x25xf32>
    %cst_25 = arith.constant dense<0.000000e+00> : vector<3x25xf32>
    %98 = tpu.matmul %86, %97, %cst_25 {dimension_numbers = #tpu.dot_dimension_numbers<[1], [0], [0], [1], [0, 0, 1, 1], [], []>} : vector<3x64xf32>, vector<64x25xf32>, vector<3x25xf32> -> vector<3x25xf32>
    %99 = vector.extract_strided_slice %98 {offsets = [0, 0], sizes = [1, 25], strides = [1, 1]} : vector<3x25xf32> to vector<1x25xf32>
    %100 = vector.extract_strided_slice %98 {offsets = [1, 0], sizes = [1, 25], strides = [1, 1]} : vector<3x25xf32> to vector<1x25xf32>
    %101 = vector.extract_strided_slice %98 {offsets = [2, 0], sizes = [1, 25], strides = [1, 1]} : vector<3x25xf32> to vector<1x25xf32>
    %cst_26 = arith.constant 1.000000e+00 : f32
    %102 = vector.broadcast %cst_26 : f32 to vector<1x25xf32>
    %103 = arith.addf %99, %102 : vector<1x25xf32>
    %104 = arith.addf %103, %100 : vector<1x25xf32>
    %cst_27 = arith.constant 5.000000e-03 : f32
    %105 = vector.broadcast %cst_27 : f32 to vector<1x25xf32>
    %106 = arith.cmpf ogt, %104, %105 : vector<1x25xf32>
    %107 = arith.extui %106 : vector<1x25xi1> to vector<1x25xi32>
    %108 = arith.sitofp %107 : vector<1x25xi32> to vector<1x25xf32>
    %cst_28 = arith.constant dense<0x7F800000> : vector<1xf32>
    %109 = vector.multi_reduction <minimumf>, %101, %cst_28 [1] : vector<1x25xf32> to vector<1xf32>
    %110 = vector.shape_cast %109 : vector<1xf32> to vector<1x1xf32>
    %111 = vector.broadcast %110 : vector<1x1xf32> to vector<1x25xf32>
    %112 = arith.cmpf oeq, %101, %111 : vector<1x25xf32>
    %113 = arith.extui %112 : vector<1x25xi1> to vector<1x25xi32>
    %114 = arith.sitofp %113 : vector<1x25xi32> to vector<1x25xf32>
    %cst_29 = arith.constant 1.000000e+00 : f32
    %115 = vector.broadcast %cst_29 : f32 to vector<1x25xf32>
    %116 = arith.subf %115, %101 : vector<1x25xf32>
    %117 = arith.mulf %116, %108 : vector<1x25xf32>
    %cst_30 = arith.constant 1.000000e+00 : f32
    %118 = vector.broadcast %cst_30 : f32 to vector<1x25xf32>
    %119 = arith.subf %118, %108 : vector<1x25xf32>
    %120 = arith.mulf %101, %119 : vector<1x25xf32>
    %121 = arith.addf %117, %120 : vector<1x25xf32>
    %122 = vector.extract_strided_slice %78 {offsets = [0, 81], sizes = [1, 25], strides = [1, 1]} : vector<2x106xf32> to vector<1x25xf32>
    %cst_31 = arith.constant 0.000000e+00 : f32
    %123 = vector.broadcast %cst_31 : f32 to vector<1x25xf32>
    %124 = arith.subf %123, %122 : vector<1x25xf32>
    %125 = math.exp %124 : vector<1x25xf32>
    %cst_32 = arith.constant 1.000000e+00 : f32
    %126 = vector.broadcast %cst_32 : f32 to vector<1x25xf32>
    %127 = arith.addf %126, %125 : vector<1x25xf32>
    %cst_33 = arith.constant 1.000000e+00 : f32
    %128 = vector.broadcast %cst_33 : f32 to vector<1x25xf32>
    %129 = arith.divf %128, %127 : vector<1x25xf32>
    %130 = vector.extract_strided_slice %78 {offsets = [0, 80], sizes = [1, 1], strides = [1, 1]} : vector<2x106xf32> to vector<1x1xf32>
    %cst_34 = arith.constant 0.000000e+00 : f32
    %131 = vector.broadcast %cst_34 : f32 to vector<1x1xf32>
    %132 = arith.subf %131, %130 : vector<1x1xf32>
    %133 = math.exp %132 : vector<1x1xf32>
    %cst_35 = arith.constant 1.000000e+00 : f32
    %134 = vector.broadcast %cst_35 : f32 to vector<1x1xf32>
    %135 = arith.addf %134, %133 : vector<1x1xf32>
    %cst_36 = arith.constant 1.000000e+00 : f32
    %136 = vector.broadcast %cst_36 : f32 to vector<1x1xf32>
    %137 = arith.divf %136, %135 : vector<1x1xf32>
    %138 = vector.extract_strided_slice %78 {offsets = [0, 64], sizes = [1, 16], strides = [1, 1]} : vector<2x106xf32> to vector<1x16xf32>
    %139 = arith.mulf %129, %103 : vector<1x25xf32>
    %cst_37 = arith.constant 1.000000e+00 : f32
    %140 = vector.broadcast %cst_37 : f32 to vector<1x25xf32>
    %141 = arith.subf %140, %129 : vector<1x25xf32>
    %142 = arith.mulf %141, %114 : vector<1x25xf32>
    %143 = arith.addf %139, %142 : vector<1x25xf32>
    %144 = vector.broadcast %137 : vector<1x1xf32> to vector<1x25xf32>
    %145 = arith.mulf %144, %143 : vector<1x25xf32>
    %146 = vector.broadcast %93 : vector<25x1xf32> to vector<25x25xf32>
    %147 = vector.broadcast %89 : vector<1x25xf32> to vector<25x25xf32>
    %148 = arith.cmpf oeq, %146, %147 : vector<25x25xf32>
    %149 = arith.extui %148 : vector<25x25xi1> to vector<25x25xi32>
    %150 = arith.sitofp %149 : vector<25x25xi32> to vector<25x25xf32>
    %151 = arith.mulf %150, %24 : vector<25x25xf32>
    %cst_38 = arith.constant dense<0xFF800000> : vector<25xf32>
    %152 = vector.multi_reduction <maximumf>, %151, %cst_38 [1] : vector<25x25xf32> to vector<25xf32>
    %153 = vector.shape_cast %152 : vector<25xf32> to vector<25x1xf32>
    %cst_39 = arith.constant 1.000000e+00 : f32
    %154 = vector.broadcast %cst_39 : f32 to vector<25x1xf32>
    %155 = arith.subf %154, %153 : vector<25x1xf32>
    %156 = arith.mulf %150, %29 : vector<25x25xf32>
    %cst_40 = arith.constant dense<0xFF800000> : vector<25xf32>
    %157 = vector.multi_reduction <maximumf>, %156, %cst_40 [0] : vector<25x25xf32> to vector<25xf32>
    %158 = vector.shape_cast %157 : vector<25xf32> to vector<1x25xf32>
    %cst_41 = arith.constant 1.000000e+00 : f32
    %159 = vector.broadcast %cst_41 : f32 to vector<1x25xf32>
    %160 = arith.subf %159, %158 : vector<1x25xf32>
    %161 = vector.broadcast %93 : vector<25x1xf32> to vector<25x64xf32>
    %162 = arith.cmpf oeq, %1, %161 : vector<25x64xf32>
    %163 = arith.extui %162 : vector<25x64xi1> to vector<25x64xi32>
    %164 = arith.sitofp %163 : vector<25x64xi32> to vector<25x64xf32>
    %cst_42 = arith.constant dense<0xFF800000> : vector<64xf32>
    %165 = vector.multi_reduction <maximumf>, %164, %cst_42 [0] : vector<25x64xf32> to vector<64xf32>
    %166 = vector.shape_cast %165 : vector<64xf32> to vector<1x64xf32>
    %cst_43 = arith.constant dense<0xFF800000> : vector<64xf32>
    %167 = vector.multi_reduction <maximumf>, %97, %cst_43 [1] : vector<64x25xf32> to vector<64xf32>
    %168 = vector.shape_cast %167 : vector<64xf32> to vector<64x1xf32>
    %169 = tpu.iota {dimensions = array<i32: 0>} : vector<2x25xi32>
    %c0_i32_44 = arith.constant 0 : i32
    %170 = vector.broadcast %c0_i32_44 : i32 to vector<2x25xi32>
    %171 = arith.cmpi eq, %169, %170 : vector<2x25xi32>
    %172 = vector.shape_cast %145 : vector<1x25xf32> to vector<1x25xf32>
    %173 = vector.broadcast %172 : vector<1x25xf32> to vector<2x25xf32>
    %174 = vector.shape_cast %121 : vector<1x25xf32> to vector<1x25xf32>
    %175 = vector.broadcast %174 : vector<1x25xf32> to vector<2x25xf32>
    %176 = arith.select %171, %173, %175 : vector<2x25xi1>, vector<2x25xf32>
    %177 = vector.broadcast %155 : vector<25x1xf32> to vector<25x64xf32>
    %178 = arith.mulf %164, %177 : vector<25x64xf32>
    %cst_45 = arith.constant dense<0.000000e+00> : vector<2x64xf32>
    %179 = tpu.matmul %176, %178, %cst_45 {dimension_numbers = #tpu.dot_dimension_numbers<[1], [0], [0], [1], [0, 0, 1, 1], [], []>} : vector<2x25xf32>, vector<25x64xf32>, vector<2x64xf32> -> vector<2x64xf32>
    %cst_46 = arith.constant 1.000000e+00 : f32
    %180 = vector.broadcast %cst_46 : f32 to vector<1x64xf32>
    %181 = arith.subf %180, %166 : vector<1x64xf32>
    %182 = arith.mulf %84, %181 : vector<1x64xf32>
    %183 = vector.extract_strided_slice %179 {offsets = [0, 0], sizes = [1, 64], strides = [1, 1]} : vector<2x64xf32> to vector<1x64xf32>
    %184 = arith.addf %182, %183 : vector<1x64xf32>
    %cst_47 = arith.constant 1.000000e+00 : f32
    %185 = vector.broadcast %cst_47 : f32 to vector<1x64xf32>
    %186 = arith.subf %185, %166 : vector<1x64xf32>
    %187 = arith.mulf %85, %186 : vector<1x64xf32>
    %188 = vector.extract_strided_slice %179 {offsets = [1, 0], sizes = [1, 64], strides = [1, 1]} : vector<2x64xf32> to vector<1x64xf32>
    %189 = arith.addf %187, %188 : vector<1x64xf32>
    %c1_48 = arith.constant 1 : index
    %c0_49 = arith.constant 0 : index
    %190 = vector.load %arg13[%c1_48, %c0_49] : memref<4x128xf32, #tpu.memory_space<vmem>>, vector<1x64xf32>
    tpu.vector_store %arg13[%c1_48, %c0_49], %184 {strides = array<i32>} : memref<4x128xf32, #tpu.memory_space<vmem>>, vector<1x64xf32>,
    %c2_50 = arith.constant 2 : index
    %c0_51 = arith.constant 0 : index
    %191 = vector.load %arg13[%c2_50, %c0_51] : memref<4x128xf32, #tpu.memory_space<vmem>>, vector<1x64xf32>
    tpu.vector_store %arg13[%c2_50, %c0_51], %189 {strides = array<i32>} : memref<4x128xf32, #tpu.memory_space<vmem>>, vector<1x64xf32>,
    %192 = vector.broadcast %114 : vector<1x25xf32> to vector<25x25xf32>
    %193 = arith.mulf %19, %192 : vector<25x25xf32>
    %cst_52 = arith.constant dense<0.000000e+00> : vector<25xf32>
    %194 = vector.multi_reduction <add>, %193, %cst_52 [1] : vector<25x25xf32> to vector<25xf32>
    %195 = vector.shape_cast %194 : vector<25xf32> to vector<25x1xf32>
    %196 = vector.broadcast %145 : vector<1x25xf32> to vector<25x25xf32>
    %197 = arith.mulf %19, %196 : vector<25x25xf32>
    %cst_53 = arith.constant dense<0.000000e+00> : vector<25xf32>
    %198 = vector.multi_reduction <add>, %197, %cst_53 [1] : vector<25x25xf32> to vector<25xf32>
    %199 = vector.shape_cast %198 : vector<25xf32> to vector<25x1xf32>
    %c0_54 = arith.constant 0 : index
    %c0_55 = arith.constant 0 : index
    %c0_56 = arith.constant 0 : index
    %200 = vector.load %arg7[%c0_54, %c0_55, %c0_56] : memref<2x25x16xf32, #tpu.memory_space<vmem>>, vector<1x25x16xf32>
    %201 = vector.shape_cast %200 : vector<1x25x16xf32> to vector<25x16xf32>
    %cst_57 = arith.constant 1.000000e+00 : f32
    %202 = vector.broadcast %cst_57 : f32 to vector<25x1xf32>
    %203 = arith.subf %202, %195 : vector<25x1xf32>
    %204 = vector.broadcast %203 : vector<25x1xf32> to vector<25x16xf32>
    %205 = arith.mulf %201, %204 : vector<25x16xf32>
    %206 = vector.broadcast %199 : vector<25x1xf32> to vector<25x16xf32>
    %207 = vector.broadcast %138 : vector<1x16xf32> to vector<25x16xf32>
    %208 = arith.mulf %206, %207 : vector<25x16xf32>
    %209 = arith.addf %205, %208 : vector<25x16xf32>
    %c0_58 = arith.constant 0 : index
    %c0_59 = arith.constant 0 : index
    %c0_60 = arith.constant 0 : index
    %210 = vector.load %arg6[%c0_58, %c0_59, %c0_60] : memref<2x64x16xf32, #tpu.memory_space<vmem>>, vector<1x64x16xf32>
    %211 = vector.shape_cast %210 : vector<1x64x16xf32> to vector<64x16xf32>
    %cst_61 = arith.constant 1.000000e+00 : f32
    %212 = vector.broadcast %cst_61 : f32 to vector<64x1xf32>
    %213 = arith.subf %212, %168 : vector<64x1xf32>
    %214 = vector.broadcast %213 : vector<64x1xf32> to vector<64x16xf32>
    %215 = arith.mulf %211, %214 : vector<64x16xf32>
    %216 = vector.broadcast %160 : vector<1x25xf32> to vector<64x25xf32>
    %217 = arith.mulf %97, %216 : vector<64x25xf32>
    %cst_62 = arith.constant dense<0.000000e+00> : vector<64x16xf32>
    %218 = tpu.matmul %217, %209, %cst_62 {dimension_numbers = #tpu.dot_dimension_numbers<[1], [0], [0], [1], [0, 0, 1, 1], [], []>} : vector<64x25xf32>, vector<25x16xf32>, vector<64x16xf32> -> vector<64x16xf32>
    %219 = arith.addf %215, %218 : vector<64x16xf32>
    %c0_63 = arith.constant 0 : index
    %c0_64 = arith.constant 0 : index
    %c0_65 = arith.constant 0 : index
    %220 = vector.load %arg14[%c0_63, %c0_64, %c0_65] : memref<2x64x16xf32, #tpu.memory_space<vmem>>, vector<1x64x16xf32>
    %221 = vector.shape_cast %220 : vector<1x64x16xf32> to vector<64x16xf32>
    %222 = vector.shape_cast %219 : vector<64x16xf32> to vector<1x64x16xf32>
    tpu.vector_store %arg14[%c0_63, %c0_64, %c0_65], %222 {strides = array<i32>} : memref<2x64x16xf32, #tpu.memory_space<vmem>>, vector<1x64x16xf32>,
    %223 = vector.extract_strided_slice %89 {offsets = [0, 17], sizes = [1, 8], strides = [1, 1]} : vector<1x25xf32> to vector<1x8xf32>
    %224 = vector.extract_strided_slice %93 {offsets = [17, 0], sizes = [8, 1], strides = [1, 1]} : vector<25x1xf32> to vector<8x1xf32>
    %225 = vector.broadcast %224 : vector<8x1xf32> to vector<8x64xf32>
    %226 = arith.cmpf oeq, %9, %225 : vector<8x64xf32>
    %227 = arith.extui %226 : vector<8x64xi1> to vector<8x64xi32>
    %228 = arith.sitofp %227 : vector<8x64xi32> to vector<8x64xf32>
    %229 = vector.broadcast %224 : vector<8x1xf32> to vector<8x8xf32>
    %230 = vector.broadcast %223 : vector<1x8xf32> to vector<8x8xf32>
    %231 = arith.cmpf oeq, %229, %230 : vector<8x8xf32>
    %232 = arith.extui %231 : vector<8x8xi1> to vector<8x8xi32>
    %233 = arith.sitofp %232 : vector<8x8xi32> to vector<8x8xf32>
    %234 = arith.mulf %233, %39 : vector<8x8xf32>
    %cst_66 = arith.constant dense<0xFF800000> : vector<8xf32>
    %235 = vector.multi_reduction <maximumf>, %234, %cst_66 [1] : vector<8x8xf32> to vector<8xf32>
    %236 = vector.shape_cast %235 : vector<8xf32> to vector<8x1xf32>
    %cst_67 = arith.constant 1.000000e+00 : f32
    %237 = vector.broadcast %cst_67 : f32 to vector<8x1xf32>
    %238 = arith.subf %237, %236 : vector<8x1xf32>
    %239 = vector.broadcast %87 : vector<1x8xf32> to vector<8x8xf32>
    %240 = arith.mulf %34, %239 : vector<8x8xf32>
    %cst_68 = arith.constant dense<0.000000e+00> : vector<8xf32>
    %241 = vector.multi_reduction <add>, %240, %cst_68 [1] : vector<8x8xf32> to vector<8xf32>
    %242 = vector.shape_cast %241 : vector<8xf32> to vector<8x1xf32>
    %243 = vector.broadcast %238 : vector<8x1xf32> to vector<8x64xf32>
    %244 = arith.mulf %228, %243 : vector<8x64xf32>
    %245 = vector.broadcast %242 : vector<8x1xf32> to vector<8x64xf32>
    %246 = arith.mulf %244, %245 : vector<8x64xf32>
    %cst_69 = arith.constant dense<0.000000e+00> : vector<64xf32>
    %247 = vector.multi_reduction <add>, %246, %cst_69 [0] : vector<8x64xf32> to vector<64xf32>
    %248 = vector.shape_cast %247 : vector<64xf32> to vector<1x64xf32>
    %249 = vector.broadcast %184 : vector<1x64xf32> to vector<8x64xf32>
    %250 = arith.mulf %228, %249 : vector<8x64xf32>
    %cst_70 = arith.constant dense<0.000000e+00> : vector<8xf32>
    %251 = vector.multi_reduction <add>, %250, %cst_70 [1] : vector<8x64xf32> to vector<8xf32>
    %252 = vector.shape_cast %251 : vector<8xf32> to vector<8x1xf32>
    %253 = vector.broadcast %83 : vector<1x64xf32> to vector<8x64xf32>
    %254 = arith.mulf %228, %253 : vector<8x64xf32>
    %cst_71 = arith.constant dense<0.000000e+00> : vector<8xf32>
    %255 = vector.multi_reduction <add>, %254, %cst_71 [1] : vector<8x64xf32> to vector<8xf32>
    %256 = vector.shape_cast %255 : vector<8xf32> to vector<8x1xf32>
    %cst_72 = arith.constant 1.000000e+00 : f32
    %257 = vector.broadcast %cst_72 : f32 to vector<1x64xf32>
    %258 = arith.subf %257, %184 : vector<1x64xf32>
    %c0_73 = arith.constant 0 : index
    %c0_74 = arith.constant 0 : index
    %c0_75 = arith.constant 0 : index
    %259 = vector.load %arg8[%c0_73, %c0_74, %c0_75] : memref<2x8x64xf32, #tpu.memory_space<vmem>>, vector<1x8x64xf32>
    %260 = vector.shape_cast %259 : vector<1x8x64xf32> to vector<8x64xf32>
    %261 = vector.broadcast %258 : vector<1x64xf32> to vector<8x64xf32>
    %262 = arith.mulf %261, %260 : vector<8x64xf32>
    %263 = vector.broadcast %184 : vector<1x64xf32> to vector<8x64xf32>
    %264 = vector.broadcast %242 : vector<8x1xf32> to vector<8x64xf32>
    %265 = arith.mulf %263, %264 : vector<8x64xf32>
    %266 = arith.addf %262, %265 : vector<8x64xf32>
    %267 = arith.mulf %266, %14 : vector<8x64xf32>
    %cst_76 = arith.constant 1.000000e+00 : f32
    %268 = vector.broadcast %cst_76 : f32 to vector<8x1xf32>
    %269 = arith.subf %268, %252 : vector<8x1xf32>
    %c0_77 = arith.constant 0 : index
    %c0_78 = arith.constant 0 : index
    %c0_79 = arith.constant 0 : index
    %270 = vector.load %arg9[%c0_77, %c0_78, %c0_79] : memref<2x8x64xf32, #tpu.memory_space<vmem>>, vector<1x8x64xf32>
    %271 = vector.shape_cast %270 : vector<1x8x64xf32> to vector<8x64xf32>
    %272 = vector.broadcast %269 : vector<8x1xf32> to vector<8x64xf32>
    %273 = arith.mulf %272, %271 : vector<8x64xf32>
    %274 = vector.broadcast %252 : vector<8x1xf32> to vector<8x64xf32>
    %275 = vector.broadcast %248 : vector<1x64xf32> to vector<8x64xf32>
    %276 = arith.mulf %274, %275 : vector<8x64xf32>
    %277 = arith.addf %273, %276 : vector<8x64xf32>
    %278 = arith.mulf %277, %14 : vector<8x64xf32>
    %c0_80 = arith.constant 0 : index
    %c0_81 = arith.constant 0 : index
    %c0_82 = arith.constant 0 : index
    %279 = vector.load %arg16[%c0_80, %c0_81, %c0_82] : memref<2x8x64xf32, #tpu.memory_space<vmem>>, vector<1x8x64xf32>
    %280 = vector.shape_cast %279 : vector<1x8x64xf32> to vector<8x64xf32>
    %281 = vector.shape_cast %267 : vector<8x64xf32> to vector<1x8x64xf32>
    tpu.vector_store %arg16[%c0_80, %c0_81, %c0_82], %281 {strides = array<i32>} : memref<2x8x64xf32, #tpu.memory_space<vmem>>, vector<1x8x64xf32>,
    %c0_83 = arith.constant 0 : index
    %c0_84 = arith.constant 0 : index
    %c0_85 = arith.constant 0 : index
    %282 = vector.load %arg17[%c0_83, %c0_84, %c0_85] : memref<2x8x64xf32, #tpu.memory_space<vmem>>, vector<1x8x64xf32>
    %283 = vector.shape_cast %282 : vector<1x8x64xf32> to vector<8x64xf32>
    %284 = vector.shape_cast %278 : vector<8x64xf32> to vector<1x8x64xf32>
    tpu.vector_store %arg17[%c0_83, %c0_84, %c0_85], %284 {strides = array<i32>} : memref<2x8x64xf32, #tpu.memory_space<vmem>>, vector<1x8x64xf32>,
    %285 = vector.broadcast %256 : vector<8x1xf32> to vector<8x64xf32>
    %286 = arith.mulf %267, %285 : vector<8x64xf32>
    %cst_86 = arith.constant dense<0.000000e+00> : vector<64xf32>
    %287 = vector.multi_reduction <add>, %286, %cst_86 [0] : vector<8x64xf32> to vector<64xf32>
    %288 = vector.shape_cast %287 : vector<64xf32> to vector<1x64xf32>
    %289 = vector.broadcast %256 : vector<8x1xf32> to vector<8x64xf32>
    %290 = arith.mulf %278, %289 : vector<8x64xf32>
    %cst_87 = arith.constant dense<0.000000e+00> : vector<64xf32>
    %291 = vector.multi_reduction <add>, %290, %cst_87 [0] : vector<8x64xf32> to vector<64xf32>
    %292 = vector.shape_cast %291 : vector<64xf32> to vector<1x64xf32>
    %293 = vector.broadcast %256 : vector<8x1xf32> to vector<8x8xf32>
    %294 = arith.mulf %34, %293 : vector<8x8xf32>
    %cst_88 = arith.constant dense<0.000000e+00> : vector<8xf32>
    %295 = vector.multi_reduction <add>, %294, %cst_88 [0] : vector<8x8xf32> to vector<8xf32>
    %296 = vector.shape_cast %295 : vector<8xf32> to vector<1x8xf32>
    %cst_89 = arith.constant dense<0.000000e+00> : vector<1xf32>
    %297 = vector.multi_reduction <add>, %256, %cst_89 [0] : vector<8x1xf32> to vector<1xf32>
    %298 = vector.shape_cast %297 : vector<1xf32> to vector<1x1xf32>
    %cst_90 = arith.constant 1.000000e+00 : f32
    %299 = vector.broadcast %cst_90 : f32 to vector<1x1xf32>
    %300 = arith.subf %299, %298 : vector<1x1xf32>
    %301 = vector.broadcast %300 : vector<1x1xf32> to vector<1x8xf32>
    %302 = arith.mulf %301, %87 : vector<1x8xf32>
    %303 = arith.addf %302, %296 : vector<1x8xf32>
    %c3_91 = arith.constant 3 : index
    %c0_92 = arith.constant 0 : index
    %304 = vector.load %arg13[%c3_91, %c0_92] : memref<4x128xf32, #tpu.memory_space<vmem>>, vector<1x8xf32>
    tpu.vector_store %arg13[%c3_91, %c0_92], %303 {strides = array<i32>} : memref<4x128xf32, #tpu.memory_space<vmem>>, vector<1x8xf32>,
    %cst_93 = arith.constant dense<0x7F800000> : vector<1xf32>
    %305 = vector.multi_reduction <minimumf>, %189, %cst_93 [1] : vector<1x64xf32> to vector<1xf32>
    %306 = vector.shape_cast %305 : vector<1xf32> to vector<1x1xf32>
    %307 = vector.broadcast %306 : vector<1x1xf32> to vector<1x64xf32>
    %308 = arith.cmpf oeq, %189, %307 : vector<1x64xf32>
    %cst_94 = arith.constant 6.400000e+01 : f32
    %309 = vector.broadcast %cst_94 : f32 to vector<1x64xf32>
    %310 = arith.select %308, %7, %309 : vector<1x64xi1>, vector<1x64xf32>
    %cst_95 = arith.constant dense<0x7F800000> : vector<1xf32>
    %311 = vector.multi_reduction <minimumf>, %310, %cst_95 [1] : vector<1x64xf32> to vector<1xf32>
    %312 = vector.shape_cast %311 : vector<1xf32> to vector<1x1xf32>
    %c0_96 = arith.constant 0 : index
    %c64 = arith.constant 64 : index
    %313 = vector.load %arg5[%c0_96, %c64] : memref<4x128xf32, #tpu.memory_space<vmem>>, vector<1x64xf32>
    %c1_97 = arith.constant 1 : index
    %c64_98 = arith.constant 64 : index
    %314 = vector.load %arg5[%c1_97, %c64_98] : memref<4x128xf32, #tpu.memory_space<vmem>>, vector<1x64xf32>
    %c2_99 = arith.constant 2 : index
    %c64_100 = arith.constant 64 : index
    %315 = vector.load %arg5[%c2_99, %c64_100] : memref<4x128xf32, #tpu.memory_space<vmem>>, vector<1x64xf32>
    %c0_101 = arith.constant 0 : index
    %c64_102 = arith.constant 64 : index
    %316 = vector.load %arg5[%c0_101, %c64_102] : memref<4x128xf32, #tpu.memory_space<vmem>>, vector<3x64xf32>
    %c3_103 = arith.constant 3 : index
    %c8 = arith.constant 8 : index
    %317 = vector.load %arg5[%c3_103, %c8] : memref<4x128xf32, #tpu.memory_space<vmem>>, vector<1x8xf32>
    %c1_104 = arith.constant 1 : index
    %c0_105 = arith.constant 0 : index
    %318 = vector.load %arg4[%c1_104, %c0_105] : memref<2x25xi32, #tpu.memory_space<vmem>>, vector<1x25xi32>
    %319 = arith.sitofp %318 : vector<1x25xi32> to vector<1x25xf32>
    %320 = vector.broadcast %319 : vector<1x25xf32> to vector<25x25xf32>
    %321 = arith.mulf %19, %320 : vector<25x25xf32>
    %cst_106 = arith.constant dense<0.000000e+00> : vector<25xf32>
    %322 = vector.multi_reduction <add>, %321, %cst_106 [1] : vector<25x25xf32> to vector<25xf32>
    %323 = vector.shape_cast %322 : vector<25xf32> to vector<25x1xf32>
    %324 = vector.broadcast %319 : vector<1x25xf32> to vector<64x25xf32>
    %325 = arith.cmpf oeq, %3, %324 : vector<64x25xf32>
    %326 = arith.extui %325 : vector<64x25xi1> to vector<64x25xi32>
    %327 = arith.sitofp %326 : vector<64x25xi32> to vector<64x25xf32>
    %cst_107 = arith.constant dense<0.000000e+00> : vector<3x25xf32>
    %328 = tpu.matmul %316, %327, %cst_107 {dimension_numbers = #tpu.dot_dimension_numbers<[1], [0], [0], [1], [0, 0, 1, 1], [], []>} : vector<3x64xf32>, vector<64x25xf32>, vector<3x25xf32> -> vector<3x25xf32>
    %329 = vector.extract_strided_slice %328 {offsets = [0, 0], sizes = [1, 25], strides = [1, 1]} : vector<3x25xf32> to vector<1x25xf32>
    %330 = vector.extract_strided_slice %328 {offsets = [1, 0], sizes = [1, 25], strides = [1, 1]} : vector<3x25xf32> to vector<1x25xf32>
    %331 = vector.extract_strided_slice %328 {offsets = [2, 0], sizes = [1, 25], strides = [1, 1]} : vector<3x25xf32> to vector<1x25xf32>
    %cst_108 = arith.constant 1.000000e+00 : f32
    %332 = vector.broadcast %cst_108 : f32 to vector<1x25xf32>
    %333 = arith.addf %329, %332 : vector<1x25xf32>
    %334 = arith.addf %333, %330 : vector<1x25xf32>
    %cst_109 = arith.constant 5.000000e-03 : f32
    %335 = vector.broadcast %cst_109 : f32 to vector<1x25xf32>
    %336 = arith.cmpf ogt, %334, %335 : vector<1x25xf32>
    %337 = arith.extui %336 : vector<1x25xi1> to vector<1x25xi32>
    %338 = arith.sitofp %337 : vector<1x25xi32> to vector<1x25xf32>
    %cst_110 = arith.constant dense<0x7F800000> : vector<1xf32>
    %339 = vector.multi_reduction <minimumf>, %331, %cst_110 [1] : vector<1x25xf32> to vector<1xf32>
    %340 = vector.shape_cast %339 : vector<1xf32> to vector<1x1xf32>
    %341 = vector.broadcast %340 : vector<1x1xf32> to vector<1x25xf32>
    %342 = arith.cmpf oeq, %331, %341 : vector<1x25xf32>
    %343 = arith.extui %342 : vector<1x25xi1> to vector<1x25xi32>
    %344 = arith.sitofp %343 : vector<1x25xi32> to vector<1x25xf32>
    %cst_111 = arith.constant 1.000000e+00 : f32
    %345 = vector.broadcast %cst_111 : f32 to vector<1x25xf32>
    %346 = arith.subf %345, %331 : vector<1x25xf32>
    %347 = arith.mulf %346, %338 : vector<1x25xf32>
    %cst_112 = arith.constant 1.000000e+00 : f32
    %348 = vector.broadcast %cst_112 : f32 to vector<1x25xf32>
    %349 = arith.subf %348, %338 : vector<1x25xf32>
    %350 = arith.mulf %331, %349 : vector<1x25xf32>
    %351 = arith.addf %347, %350 : vector<1x25xf32>
    %352 = vector.extract_strided_slice %78 {offsets = [1, 81], sizes = [1, 25], strides = [1, 1]} : vector<2x106xf32> to vector<1x25xf32>
    %cst_113 = arith.constant 0.000000e+00 : f32
    %353 = vector.broadcast %cst_113 : f32 to vector<1x25xf32>
    %354 = arith.subf %353, %352 : vector<1x25xf32>
    %355 = math.exp %354 : vector<1x25xf32>
    %cst_114 = arith.constant 1.000000e+00 : f32
    %356 = vector.broadcast %cst_114 : f32 to vector<1x25xf32>
    %357 = arith.addf %356, %355 : vector<1x25xf32>
    %cst_115 = arith.constant 1.000000e+00 : f32
    %358 = vector.broadcast %cst_115 : f32 to vector<1x25xf32>
    %359 = arith.divf %358, %357 : vector<1x25xf32>
    %360 = vector.extract_strided_slice %78 {offsets = [1, 80], sizes = [1, 1], strides = [1, 1]} : vector<2x106xf32> to vector<1x1xf32>
    %cst_116 = arith.constant 0.000000e+00 : f32
    %361 = vector.broadcast %cst_116 : f32 to vector<1x1xf32>
    %362 = arith.subf %361, %360 : vector<1x1xf32>
    %363 = math.exp %362 : vector<1x1xf32>
    %cst_117 = arith.constant 1.000000e+00 : f32
    %364 = vector.broadcast %cst_117 : f32 to vector<1x1xf32>
    %365 = arith.addf %364, %363 : vector<1x1xf32>
    %cst_118 = arith.constant 1.000000e+00 : f32
    %366 = vector.broadcast %cst_118 : f32 to vector<1x1xf32>
    %367 = arith.divf %366, %365 : vector<1x1xf32>
    %368 = vector.extract_strided_slice %78 {offsets = [1, 64], sizes = [1, 16], strides = [1, 1]} : vector<2x106xf32> to vector<1x16xf32>
    %369 = arith.mulf %359, %333 : vector<1x25xf32>
    %cst_119 = arith.constant 1.000000e+00 : f32
    %370 = vector.broadcast %cst_119 : f32 to vector<1x25xf32>
    %371 = arith.subf %370, %359 : vector<1x25xf32>
    %372 = arith.mulf %371, %344 : vector<1x25xf32>
    %373 = arith.addf %369, %372 : vector<1x25xf32>
    %374 = vector.broadcast %367 : vector<1x1xf32> to vector<1x25xf32>
    %375 = arith.mulf %374, %373 : vector<1x25xf32>
    %376 = vector.broadcast %323 : vector<25x1xf32> to vector<25x25xf32>
    %377 = vector.broadcast %319 : vector<1x25xf32> to vector<25x25xf32>
    %378 = arith.cmpf oeq, %376, %377 : vector<25x25xf32>
    %379 = arith.extui %378 : vector<25x25xi1> to vector<25x25xi32>
    %380 = arith.sitofp %379 : vector<25x25xi32> to vector<25x25xf32>
    %381 = arith.mulf %380, %24 : vector<25x25xf32>
    %cst_120 = arith.constant dense<0xFF800000> : vector<25xf32>
    %382 = vector.multi_reduction <maximumf>, %381, %cst_120 [1] : vector<25x25xf32> to vector<25xf32>
    %383 = vector.shape_cast %382 : vector<25xf32> to vector<25x1xf32>
    %cst_121 = arith.constant 1.000000e+00 : f32
    %384 = vector.broadcast %cst_121 : f32 to vector<25x1xf32>
    %385 = arith.subf %384, %383 : vector<25x1xf32>
    %386 = arith.mulf %380, %29 : vector<25x25xf32>
    %cst_122 = arith.constant dense<0xFF800000> : vector<25xf32>
    %387 = vector.multi_reduction <maximumf>, %386, %cst_122 [0] : vector<25x25xf32> to vector<25xf32>
    %388 = vector.shape_cast %387 : vector<25xf32> to vector<1x25xf32>
    %cst_123 = arith.constant 1.000000e+00 : f32
    %389 = vector.broadcast %cst_123 : f32 to vector<1x25xf32>
    %390 = arith.subf %389, %388 : vector<1x25xf32>
    %391 = vector.broadcast %323 : vector<25x1xf32> to vector<25x64xf32>
    %392 = arith.cmpf oeq, %1, %391 : vector<25x64xf32>
    %393 = arith.extui %392 : vector<25x64xi1> to vector<25x64xi32>
    %394 = arith.sitofp %393 : vector<25x64xi32> to vector<25x64xf32>
    %cst_124 = arith.constant dense<0xFF800000> : vector<64xf32>
    %395 = vector.multi_reduction <maximumf>, %394, %cst_124 [0] : vector<25x64xf32> to vector<64xf32>
    %396 = vector.shape_cast %395 : vector<64xf32> to vector<1x64xf32>
    %cst_125 = arith.constant dense<0xFF800000> : vector<64xf32>
    %397 = vector.multi_reduction <maximumf>, %327, %cst_125 [1] : vector<64x25xf32> to vector<64xf32>
    %398 = vector.shape_cast %397 : vector<64xf32> to vector<64x1xf32>
    %399 = tpu.iota {dimensions = array<i32: 0>} : vector<2x25xi32>
    %c0_i32_126 = arith.constant 0 : i32
    %400 = vector.broadcast %c0_i32_126 : i32 to vector<2x25xi32>
    %401 = arith.cmpi eq, %399, %400 : vector<2x25xi32>
    %402 = vector.shape_cast %375 : vector<1x25xf32> to vector<1x25xf32>
    %403 = vector.broadcast %402 : vector<1x25xf32> to vector<2x25xf32>
    %404 = vector.shape_cast %351 : vector<1x25xf32> to vector<1x25xf32>
    %405 = vector.broadcast %404 : vector<1x25xf32> to vector<2x25xf32>
    %406 = arith.select %401, %403, %405 : vector<2x25xi1>, vector<2x25xf32>
    %407 = vector.broadcast %385 : vector<25x1xf32> to vector<25x64xf32>
    %408 = arith.mulf %394, %407 : vector<25x64xf32>
    %cst_127 = arith.constant dense<0.000000e+00> : vector<2x64xf32>
    %409 = tpu.matmul %406, %408, %cst_127 {dimension_numbers = #tpu.dot_dimension_numbers<[1], [0], [0], [1], [0, 0, 1, 1], [], []>} : vector<2x25xf32>, vector<25x64xf32>, vector<2x64xf32> -> vector<2x64xf32>
    %cst_128 = arith.constant 1.000000e+00 : f32
    %410 = vector.broadcast %cst_128 : f32 to vector<1x64xf32>
    %411 = arith.subf %410, %396 : vector<1x64xf32>
    %412 = arith.mulf %314, %411 : vector<1x64xf32>
    %413 = vector.extract_strided_slice %409 {offsets = [0, 0], sizes = [1, 64], strides = [1, 1]} : vector<2x64xf32> to vector<1x64xf32>
    %414 = arith.addf %412, %413 : vector<1x64xf32>
    %cst_129 = arith.constant 1.000000e+00 : f32
    %415 = vector.broadcast %cst_129 : f32 to vector<1x64xf32>
    %416 = arith.subf %415, %396 : vector<1x64xf32>
    %417 = arith.mulf %315, %416 : vector<1x64xf32>
    %418 = vector.extract_strided_slice %409 {offsets = [1, 0], sizes = [1, 64], strides = [1, 1]} : vector<2x64xf32> to vector<1x64xf32>
    %419 = arith.addf %417, %418 : vector<1x64xf32>
    %c1_130 = arith.constant 1 : index
    %c64_131 = arith.constant 64 : index
    %420 = vector.load %arg13[%c1_130, %c64_131] : memref<4x128xf32, #tpu.memory_space<vmem>>, vector<1x64xf32>
    tpu.vector_store %arg13[%c1_130, %c64_131], %414 {strides = array<i32>} : memref<4x128xf32, #tpu.memory_space<vmem>>, vector<1x64xf32>,
    %c2_132 = arith.constant 2 : index
    %c64_133 = arith.constant 64 : index
    %421 = vector.load %arg13[%c2_132, %c64_133] : memref<4x128xf32, #tpu.memory_space<vmem>>, vector<1x64xf32>
    tpu.vector_store %arg13[%c2_132, %c64_133], %419 {strides = array<i32>} : memref<4x128xf32, #tpu.memory_space<vmem>>, vector<1x64xf32>,
    %422 = vector.broadcast %344 : vector<1x25xf32> to vector<25x25xf32>
    %423 = arith.mulf %19, %422 : vector<25x25xf32>
    %cst_134 = arith.constant dense<0.000000e+00> : vector<25xf32>
    %424 = vector.multi_reduction <add>, %423, %cst_134 [1] : vector<25x25xf32> to vector<25xf32>
    %425 = vector.shape_cast %424 : vector<25xf32> to vector<25x1xf32>
    %426 = vector.broadcast %375 : vector<1x25xf32> to vector<25x25xf32>
    %427 = arith.mulf %19, %426 : vector<25x25xf32>
    %cst_135 = arith.constant dense<0.000000e+00> : vector<25xf32>
    %428 = vector.multi_reduction <add>, %427, %cst_135 [1] : vector<25x25xf32> to vector<25xf32>
    %429 = vector.shape_cast %428 : vector<25xf32> to vector<25x1xf32>
    %c1_136 = arith.constant 1 : index
    %c0_137 = arith.constant 0 : index
    %c0_138 = arith.constant 0 : index
    %430 = vector.load %arg7[%c1_136, %c0_137, %c0_138] : memref<2x25x16xf32, #tpu.memory_space<vmem>>, vector<1x25x16xf32>
    %431 = vector.shape_cast %430 : vector<1x25x16xf32> to vector<25x16xf32>
    %cst_139 = arith.constant 1.000000e+00 : f32
    %432 = vector.broadcast %cst_139 : f32 to vector<25x1xf32>
    %433 = arith.subf %432, %425 : vector<25x1xf32>
    %434 = vector.broadcast %433 : vector<25x1xf32> to vector<25x16xf32>
    %435 = arith.mulf %431, %434 : vector<25x16xf32>
    %436 = vector.broadcast %429 : vector<25x1xf32> to vector<25x16xf32>
    %437 = vector.broadcast %368 : vector<1x16xf32> to vector<25x16xf32>
    %438 = arith.mulf %436, %437 : vector<25x16xf32>
    %439 = arith.addf %435, %438 : vector<25x16xf32>
    %c1_140 = arith.constant 1 : index
    %c0_141 = arith.constant 0 : index
    %c0_142 = arith.constant 0 : index
    %440 = vector.load %arg6[%c1_140, %c0_141, %c0_142] : memref<2x64x16xf32, #tpu.memory_space<vmem>>, vector<1x64x16xf32>
    %441 = vector.shape_cast %440 : vector<1x64x16xf32> to vector<64x16xf32>
    %cst_143 = arith.constant 1.000000e+00 : f32
    %442 = vector.broadcast %cst_143 : f32 to vector<64x1xf32>
    %443 = arith.subf %442, %398 : vector<64x1xf32>
    %444 = vector.broadcast %443 : vector<64x1xf32> to vector<64x16xf32>
    %445 = arith.mulf %441, %444 : vector<64x16xf32>
    %446 = vector.broadcast %390 : vector<1x25xf32> to vector<64x25xf32>
    %447 = arith.mulf %327, %446 : vector<64x25xf32>
    %cst_144 = arith.constant dense<0.000000e+00> : vector<64x16xf32>
    %448 = tpu.matmul %447, %439, %cst_144 {dimension_numbers = #tpu.dot_dimension_numbers<[1], [0], [0], [1], [0, 0, 1, 1], [], []>} : vector<64x25xf32>, vector<25x16xf32>, vector<64x16xf32> -> vector<64x16xf32>
    %449 = arith.addf %445, %448 : vector<64x16xf32>
    %c1_145 = arith.constant 1 : index
    %c0_146 = arith.constant 0 : index
    %c0_147 = arith.constant 0 : index
    %450 = vector.load %arg14[%c1_145, %c0_146, %c0_147] : memref<2x64x16xf32, #tpu.memory_space<vmem>>, vector<1x64x16xf32>
    %451 = vector.shape_cast %450 : vector<1x64x16xf32> to vector<64x16xf32>
    %452 = vector.shape_cast %449 : vector<64x16xf32> to vector<1x64x16xf32>
    tpu.vector_store %arg14[%c1_145, %c0_146, %c0_147], %452 {strides = array<i32>} : memref<2x64x16xf32, #tpu.memory_space<vmem>>, vector<1x64x16xf32>,
    %453 = vector.extract_strided_slice %319 {offsets = [0, 17], sizes = [1, 8], strides = [1, 1]} : vector<1x25xf32> to vector<1x8xf32>
    %454 = vector.extract_strided_slice %323 {offsets = [17, 0], sizes = [8, 1], strides = [1, 1]} : vector<25x1xf32> to vector<8x1xf32>
    %455 = vector.broadcast %454 : vector<8x1xf32> to vector<8x64xf32>
    %456 = arith.cmpf oeq, %9, %455 : vector<8x64xf32>
    %457 = arith.extui %456 : vector<8x64xi1> to vector<8x64xi32>
    %458 = arith.sitofp %457 : vector<8x64xi32> to vector<8x64xf32>
    %459 = vector.broadcast %454 : vector<8x1xf32> to vector<8x8xf32>
    %460 = vector.broadcast %453 : vector<1x8xf32> to vector<8x8xf32>
    %461 = arith.cmpf oeq, %459, %460 : vector<8x8xf32>
    %462 = arith.extui %461 : vector<8x8xi1> to vector<8x8xi32>
    %463 = arith.sitofp %462 : vector<8x8xi32> to vector<8x8xf32>
    %464 = arith.mulf %463, %39 : vector<8x8xf32>
    %cst_148 = arith.constant dense<0xFF800000> : vector<8xf32>
    %465 = vector.multi_reduction <maximumf>, %464, %cst_148 [1] : vector<8x8xf32> to vector<8xf32>
    %466 = vector.shape_cast %465 : vector<8xf32> to vector<8x1xf32>
    %cst_149 = arith.constant 1.000000e+00 : f32
    %467 = vector.broadcast %cst_149 : f32 to vector<8x1xf32>
    %468 = arith.subf %467, %466 : vector<8x1xf32>
    %469 = vector.broadcast %317 : vector<1x8xf32> to vector<8x8xf32>
    %470 = arith.mulf %34, %469 : vector<8x8xf32>
    %cst_150 = arith.constant dense<0.000000e+00> : vector<8xf32>
    %471 = vector.multi_reduction <add>, %470, %cst_150 [1] : vector<8x8xf32> to vector<8xf32>
    %472 = vector.shape_cast %471 : vector<8xf32> to vector<8x1xf32>
    %473 = vector.broadcast %468 : vector<8x1xf32> to vector<8x64xf32>
    %474 = arith.mulf %458, %473 : vector<8x64xf32>
    %475 = vector.broadcast %472 : vector<8x1xf32> to vector<8x64xf32>
    %476 = arith.mulf %474, %475 : vector<8x64xf32>
    %cst_151 = arith.constant dense<0.000000e+00> : vector<64xf32>
    %477 = vector.multi_reduction <add>, %476, %cst_151 [0] : vector<8x64xf32> to vector<64xf32>
    %478 = vector.shape_cast %477 : vector<64xf32> to vector<1x64xf32>
    %479 = vector.broadcast %414 : vector<1x64xf32> to vector<8x64xf32>
    %480 = arith.mulf %458, %479 : vector<8x64xf32>
    %cst_152 = arith.constant dense<0.000000e+00> : vector<8xf32>
    %481 = vector.multi_reduction <add>, %480, %cst_152 [1] : vector<8x64xf32> to vector<8xf32>
    %482 = vector.shape_cast %481 : vector<8xf32> to vector<8x1xf32>
    %483 = vector.broadcast %313 : vector<1x64xf32> to vector<8x64xf32>
    %484 = arith.mulf %458, %483 : vector<8x64xf32>
    %cst_153 = arith.constant dense<0.000000e+00> : vector<8xf32>
    %485 = vector.multi_reduction <add>, %484, %cst_153 [1] : vector<8x64xf32> to vector<8xf32>
    %486 = vector.shape_cast %485 : vector<8xf32> to vector<8x1xf32>
    %cst_154 = arith.constant 1.000000e+00 : f32
    %487 = vector.broadcast %cst_154 : f32 to vector<1x64xf32>
    %488 = arith.subf %487, %414 : vector<1x64xf32>
    %c1_155 = arith.constant 1 : index
    %c0_156 = arith.constant 0 : index
    %c0_157 = arith.constant 0 : index
    %489 = vector.load %arg8[%c1_155, %c0_156, %c0_157] : memref<2x8x64xf32, #tpu.memory_space<vmem>>, vector<1x8x64xf32>
    %490 = vector.shape_cast %489 : vector<1x8x64xf32> to vector<8x64xf32>
    %491 = vector.broadcast %488 : vector<1x64xf32> to vector<8x64xf32>
    %492 = arith.mulf %491, %490 : vector<8x64xf32>
    %493 = vector.broadcast %414 : vector<1x64xf32> to vector<8x64xf32>
    %494 = vector.broadcast %472 : vector<8x1xf32> to vector<8x64xf32>
    %495 = arith.mulf %493, %494 : vector<8x64xf32>
    %496 = arith.addf %492, %495 : vector<8x64xf32>
    %497 = arith.mulf %496, %14 : vector<8x64xf32>
    %cst_158 = arith.constant 1.000000e+00 : f32
    %498 = vector.broadcast %cst_158 : f32 to vector<8x1xf32>
    %499 = arith.subf %498, %482 : vector<8x1xf32>
    %c1_159 = arith.constant 1 : index
    %c0_160 = arith.constant 0 : index
    %c0_161 = arith.constant 0 : index
    %500 = vector.load %arg9[%c1_159, %c0_160, %c0_161] : memref<2x8x64xf32, #tpu.memory_space<vmem>>, vector<1x8x64xf32>
    %501 = vector.shape_cast %500 : vector<1x8x64xf32> to vector<8x64xf32>
    %502 = vector.broadcast %499 : vector<8x1xf32> to vector<8x64xf32>
    %503 = arith.mulf %502, %501 : vector<8x64xf32>
    %504 = vector.broadcast %482 : vector<8x1xf32> to vector<8x64xf32>
    %505 = vector.broadcast %478 : vector<1x64xf32> to vector<8x64xf32>
    %506 = arith.mulf %504, %505 : vector<8x64xf32>
    %507 = arith.addf %503, %506 : vector<8x64xf32>
    %508 = arith.mulf %507, %14 : vector<8x64xf32>
    %c1_162 = arith.constant 1 : index
    %c0_163 = arith.constant 0 : index
    %c0_164 = arith.constant 0 : index
    %509 = vector.load %arg16[%c1_162, %c0_163, %c0_164] : memref<2x8x64xf32, #tpu.memory_space<vmem>>, vector<1x8x64xf32>
    %510 = vector.shape_cast %509 : vector<1x8x64xf32> to vector<8x64xf32>
    %511 = vector.shape_cast %497 : vector<8x64xf32> to vector<1x8x64xf32>
    tpu.vector_store %arg16[%c1_162, %c0_163, %c0_164], %511 {strides = array<i32>} : memref<2x8x64xf32, #tpu.memory_space<vmem>>, vector<1x8x64xf32>,
    %c1_165 = arith.constant 1 : index
    %c0_166 = arith.constant 0 : index
    %c0_167 = arith.constant 0 : index
    %512 = vector.load %arg17[%c1_165, %c0_166, %c0_167] : memref<2x8x64xf32, #tpu.memory_space<vmem>>, vector<1x8x64xf32>
    %513 = vector.shape_cast %512 : vector<1x8x64xf32> to vector<8x64xf32>
    %514 = vector.shape_cast %508 : vector<8x64xf32> to vector<1x8x64xf32>
    tpu.vector_store %arg17[%c1_165, %c0_166, %c0_167], %514 {strides = array<i32>} : memref<2x8x64xf32, #tpu.memory_space<vmem>>, vector<1x8x64xf32>,
    %515 = vector.broadcast %486 : vector<8x1xf32> to vector<8x64xf32>
    %516 = arith.mulf %497, %515 : vector<8x64xf32>
    %cst_168 = arith.constant dense<0.000000e+00> : vector<64xf32>
    %517 = vector.multi_reduction <add>, %516, %cst_168 [0] : vector<8x64xf32> to vector<64xf32>
    %518 = vector.shape_cast %517 : vector<64xf32> to vector<1x64xf32>
    %519 = vector.broadcast %486 : vector<8x1xf32> to vector<8x64xf32>
    %520 = arith.mulf %508, %519 : vector<8x64xf32>
    %cst_169 = arith.constant dense<0.000000e+00> : vector<64xf32>
    %521 = vector.multi_reduction <add>, %520, %cst_169 [0] : vector<8x64xf32> to vector<64xf32>
    %522 = vector.shape_cast %521 : vector<64xf32> to vector<1x64xf32>
    %523 = vector.broadcast %486 : vector<8x1xf32> to vector<8x8xf32>
    %524 = arith.mulf %34, %523 : vector<8x8xf32>
    %cst_170 = arith.constant dense<0.000000e+00> : vector<8xf32>
    %525 = vector.multi_reduction <add>, %524, %cst_170 [0] : vector<8x8xf32> to vector<8xf32>
    %526 = vector.shape_cast %525 : vector<8xf32> to vector<1x8xf32>
    %cst_171 = arith.constant dense<0.000000e+00> : vector<1xf32>
    %527 = vector.multi_reduction <add>, %486, %cst_171 [0] : vector<8x1xf32> to vector<1xf32>
    %528 = vector.shape_cast %527 : vector<1xf32> to vector<1x1xf32>
    %cst_172 = arith.constant 1.000000e+00 : f32
    %529 = vector.broadcast %cst_172 : f32 to vector<1x1xf32>
    %530 = arith.subf %529, %528 : vector<1x1xf32>
    %531 = vector.broadcast %530 : vector<1x1xf32> to vector<1x8xf32>
    %532 = arith.mulf %531, %317 : vector<1x8xf32>
    %533 = arith.addf %532, %526 : vector<1x8xf32>
    %c3_173 = arith.constant 3 : index
    %c8_174 = arith.constant 8 : index
    %534 = vector.load %arg13[%c3_173, %c8_174] : memref<4x128xf32, #tpu.memory_space<vmem>>, vector<1x8xf32>
    tpu.vector_store %arg13[%c3_173, %c8_174], %533 {strides = array<i32>} : memref<4x128xf32, #tpu.memory_space<vmem>>, vector<1x8xf32>,
    %cst_175 = arith.constant dense<0x7F800000> : vector<1xf32>
    %535 = vector.multi_reduction <minimumf>, %419, %cst_175 [1] : vector<1x64xf32> to vector<1xf32>
    %536 = vector.shape_cast %535 : vector<1xf32> to vector<1x1xf32>
    %537 = vector.broadcast %536 : vector<1x1xf32> to vector<1x64xf32>
    %538 = arith.cmpf oeq, %419, %537 : vector<1x64xf32>
    %cst_176 = arith.constant 6.400000e+01 : f32
    %539 = vector.broadcast %cst_176 : f32 to vector<1x64xf32>
    %540 = arith.select %538, %7, %539 : vector<1x64xi1>, vector<1x64xf32>
    %cst_177 = arith.constant dense<0x7F800000> : vector<1xf32>
    %541 = vector.multi_reduction <minimumf>, %540, %cst_177 [1] : vector<1x64xf32> to vector<1xf32>
    %542 = vector.shape_cast %541 : vector<1xf32> to vector<1x1xf32>
    %c63_i32 = arith.constant 63 : i32
    %543 = vector.broadcast %c63_i32 : i32 to vector<1x1xi32>
    %544 = arith.cmpi sge, %80, %543 : vector<1x1xi32>
    %c0_i32_178 = arith.constant 0 : i32
    %545 = vector.broadcast %c0_i32_178 : i32 to vector<1x1xi32>
    %546 = arith.cmpi sgt, %79, %545 : vector<1x1xi32>
    %547 = arith.ori %544, %546 : vector<1x1xi1>
    %cst_179 = arith.constant 6.300000e+01 : f32
    %548 = vector.broadcast %cst_179 : f32 to vector<1x1xf32>
    %549 = arith.select %547, %548, %312 : vector<1x1xi1>, vector<1x1xf32>
    %c2_i32_180 = arith.constant 2 : i32
    %550 = vector.broadcast %c2_i32_180 : i32 to vector<1x4xi32>
    %551 = arith.cmpi eq, %40, %550 : vector<1x4xi32>
    %552 = arith.extui %551 : vector<1x4xi1> to vector<1x4xi32>
    %553 = arith.sitofp %552 : vector<1x4xi32> to vector<1x4xf32>
    %554 = arith.extui %547 : vector<1x1xi1> to vector<1x1xi32>
    %555 = arith.sitofp %554 : vector<1x1xi32> to vector<1x1xf32>
    %556 = vector.broadcast %555 : vector<1x1xf32> to vector<1x4xf32>
    %557 = arith.mulf %553, %556 : vector<1x4xf32>
    %c0_i32_181 = arith.constant 0 : i32
    %558 = vector.broadcast %c0_i32_181 : i32 to vector<1x4xi32>
    %559 = arith.cmpi eq, %40, %558 : vector<1x4xi32>
    %560 = arith.extui %559 : vector<1x4xi1> to vector<1x4xi32>
    %561 = arith.sitofp %560 : vector<1x4xi32> to vector<1x4xf32>
    %562 = vector.broadcast %312 : vector<1x1xf32> to vector<1x4xf32>
    %563 = arith.mulf %561, %562 : vector<1x4xf32>
    %564 = arith.addf %557, %563 : vector<1x4xf32>
    %c1_i32_182 = arith.constant 1 : i32
    %565 = vector.broadcast %c1_i32_182 : i32 to vector<1x4xi32>
    %566 = arith.cmpi eq, %40, %565 : vector<1x4xi32>
    %567 = arith.extui %566 : vector<1x4xi1> to vector<1x4xi32>
    %568 = arith.sitofp %567 : vector<1x4xi32> to vector<1x4xf32>
    %569 = vector.broadcast %542 : vector<1x1xf32> to vector<1x4xf32>
    %570 = arith.mulf %568, %569 : vector<1x4xf32>
    %571 = arith.addf %564, %570 : vector<1x4xf32>
    %572 = arith.fptosi %571 : vector<1x4xf32> to vector<1x4xi32>
    %c0_183 = arith.constant 0 : index
    %c0_184 = arith.constant 0 : index
    %573 = vector.load %arg18[%c0_183, %c0_184] : memref<1x4xi32, #tpu.memory_space<vmem>>, vector<1x4xi32>
    tpu.vector_store %arg18[%c0_183, %c0_184], %572 {strides = array<i32>} : memref<1x4xi32, #tpu.memory_space<vmem>>, vector<1x4xi32>,
    %c0_i32_185 = arith.constant 0 : i32
    %574 = vector.broadcast %c0_i32_185 : i32 to vector<4x1xi32>
    %575 = arith.cmpi eq, %41, %574 : vector<4x1xi32>
    %576 = arith.extui %575 : vector<4x1xi1> to vector<4x1xi32>
    %577 = arith.sitofp %576 : vector<4x1xi32> to vector<4x1xf32>
    %578 = vector.extract_strided_slice %78 {offsets = [0, 0], sizes = [1, 16], strides = [1, 1]} : vector<2x106xf32> to vector<1x16xf32>
    %579 = vector.broadcast %577 : vector<4x1xf32> to vector<4x16xf32>
    %580 = vector.broadcast %578 : vector<1x16xf32> to vector<4x16xf32>
    %581 = arith.mulf %579, %580 : vector<4x16xf32>
    %c1_i32_186 = arith.constant 1 : i32
    %582 = vector.broadcast %c1_i32_186 : i32 to vector<4x1xi32>
    %583 = arith.cmpi eq, %41, %582 : vector<4x1xi32>
    %584 = arith.extui %583 : vector<4x1xi1> to vector<4x1xi32>
    %585 = arith.sitofp %584 : vector<4x1xi32> to vector<4x1xf32>
    %586 = vector.extract_strided_slice %78 {offsets = [0, 16], sizes = [1, 16], strides = [1, 1]} : vector<2x106xf32> to vector<1x16xf32>
    %587 = vector.broadcast %585 : vector<4x1xf32> to vector<4x16xf32>
    %588 = vector.broadcast %586 : vector<1x16xf32> to vector<4x16xf32>
    %589 = arith.mulf %587, %588 : vector<4x16xf32>
    %590 = arith.addf %581, %589 : vector<4x16xf32>
    %c2_i32_187 = arith.constant 2 : i32
    %591 = vector.broadcast %c2_i32_187 : i32 to vector<4x1xi32>
    %592 = arith.cmpi eq, %41, %591 : vector<4x1xi32>
    %593 = arith.extui %592 : vector<4x1xi1> to vector<4x1xi32>
    %594 = arith.sitofp %593 : vector<4x1xi32> to vector<4x1xf32>
    %595 = vector.extract_strided_slice %78 {offsets = [0, 32], sizes = [1, 16], strides = [1, 1]} : vector<2x106xf32> to vector<1x16xf32>
    %596 = vector.broadcast %594 : vector<4x1xf32> to vector<4x16xf32>
    %597 = vector.broadcast %595 : vector<1x16xf32> to vector<4x16xf32>
    %598 = arith.mulf %596, %597 : vector<4x16xf32>
    %599 = arith.addf %590, %598 : vector<4x16xf32>
    %c3_i32_188 = arith.constant 3 : i32
    %600 = vector.broadcast %c3_i32_188 : i32 to vector<4x1xi32>
    %601 = arith.cmpi eq, %41, %600 : vector<4x1xi32>
    %602 = arith.extui %601 : vector<4x1xi1> to vector<4x1xi32>
    %603 = arith.sitofp %602 : vector<4x1xi32> to vector<4x1xf32>
    %604 = vector.extract_strided_slice %78 {offsets = [0, 48], sizes = [1, 16], strides = [1, 1]} : vector<2x106xf32> to vector<1x16xf32>
    %605 = vector.broadcast %603 : vector<4x1xf32> to vector<4x16xf32>
    %606 = vector.broadcast %604 : vector<1x16xf32> to vector<4x16xf32>
    %607 = arith.mulf %605, %606 : vector<4x16xf32>
    %608 = arith.addf %599, %607 : vector<4x16xf32>
    %cst_189 = arith.constant dense<0.000000e+00> : vector<4x64xf32>
    %609 = tpu.matmul %608, %219, %cst_189 {dimension_numbers = #tpu.dot_dimension_numbers<[1], [1], [0], [0], [0, 0, 1, 0], [], []>} : vector<4x16xf32>, vector<64x16xf32>, vector<4x64xf32> -> vector<4x64xf32>
    %610 = arith.mulf %219, %219 : vector<64x16xf32>
    %cst_190 = arith.constant dense<0.000000e+00> : vector<1x64xf32>
    %611 = tpu.matmul %72, %610, %cst_190 {dimension_numbers = #tpu.dot_dimension_numbers<[1], [1], [0], [0], [0, 0, 1, 0], [], []>} : vector<1x16xf32>, vector<64x16xf32>, vector<1x64xf32> -> vector<1x64xf32>
    %c0_i32_191 = arith.constant 0 : i32
    %612 = vector.broadcast %c0_i32_191 : i32 to vector<1x1xi32>
    %613 = arith.cmpi sgt, %79, %612 : vector<1x1xi32>
    %c0_192 = arith.constant 0 : index
    %c24 = arith.constant 24 : index
    %614 = vector.load %arg4[%c0_192, %c24] : memref<2x25xi32, #tpu.memory_space<vmem>>, vector<1x1xi32>
    %615 = arith.sitofp %614 : vector<1x1xi32> to vector<1x1xf32>
    %cst_193 = arith.constant 6.400000e+01 : f32
    %616 = vector.broadcast %cst_193 : f32 to vector<1x1xf32>
    %617 = arith.select %613, %616, %615 : vector<1x1xi1>, vector<1x1xf32>
    %618 = vector.broadcast %617 : vector<1x1xf32> to vector<4x64xf32>
    %619 = arith.cmpf olt, %5, %618 : vector<4x64xf32>
    %cst_194 = arith.constant 2.000000e+00 : f32
    %620 = vector.broadcast %cst_194 : f32 to vector<4x64xf32>
    %621 = arith.mulf %620, %609 : vector<4x64xf32>
    %622 = vector.broadcast %611 : vector<1x64xf32> to vector<4x64xf32>
    %623 = arith.subf %621, %622 : vector<4x64xf32>
    %cst_195 = arith.constant -1.000000e+30 : f32
    %624 = vector.broadcast %cst_195 : f32 to vector<4x64xf32>
    %625 = arith.select %619, %623, %624 : vector<4x64xi1>, vector<4x64xf32>
    %cst_196 = arith.constant 0.000000e+00 : f32
    %626 = vector.broadcast %cst_196 : f32 to vector<1x25xf32>
    %cst_197 = arith.constant dense<0xFF800000> : vector<4xf32>
    %627 = vector.multi_reduction <maximumf>, %625, %cst_197 [1] : vector<4x64xf32> to vector<4xf32>
    %628 = vector.shape_cast %627 : vector<4xf32> to vector<4x1xf32>
    %629 = vector.broadcast %628 : vector<4x1xf32> to vector<4x64xf32>
    %630 = arith.cmpf oeq, %625, %629 : vector<4x64xf32>
    %cst_198 = arith.constant 6.400000e+01 : f32
    %631 = vector.broadcast %cst_198 : f32 to vector<4x64xf32>
    %632 = arith.select %630, %5, %631 : vector<4x64xi1>, vector<4x64xf32>
    %cst_199 = arith.constant dense<0x7F800000> : vector<4xf32>
    %633 = vector.multi_reduction <minimumf>, %632, %cst_199 [1] : vector<4x64xf32> to vector<4xf32>
    %634 = vector.shape_cast %633 : vector<4xf32> to vector<4x1xf32>
    %635 = vector.broadcast %634 : vector<4x1xf32> to vector<4x25xf32>
    %636 = arith.mulf %50, %635 : vector<4x25xf32>
    %cst_200 = arith.constant dense<0.000000e+00> : vector<25xf32>
    %637 = vector.multi_reduction <add>, %636, %cst_200 [0] : vector<4x25xf32> to vector<25xf32>
    %638 = vector.shape_cast %637 : vector<25xf32> to vector<1x25xf32>
    %639 = arith.addf %626, %638 : vector<1x25xf32>
    %640 = vector.broadcast %634 : vector<4x1xf32> to vector<4x64xf32>
    %641 = arith.cmpf oeq, %5, %640 : vector<4x64xf32>
    %cst_201 = arith.constant -2.000000e+30 : f32
    %642 = vector.broadcast %cst_201 : f32 to vector<4x64xf32>
    %643 = arith.select %641, %642, %625 : vector<4x64xi1>, vector<4x64xf32>
    %cst_202 = arith.constant dense<0xFF800000> : vector<4xf32>
    %644 = vector.multi_reduction <maximumf>, %643, %cst_202 [1] : vector<4x64xf32> to vector<4xf32>
    %645 = vector.shape_cast %644 : vector<4xf32> to vector<4x1xf32>
    %646 = vector.broadcast %645 : vector<4x1xf32> to vector<4x64xf32>
    %647 = arith.cmpf oeq, %643, %646 : vector<4x64xf32>
    %cst_203 = arith.constant 6.400000e+01 : f32
    %648 = vector.broadcast %cst_203 : f32 to vector<4x64xf32>
    %649 = arith.select %647, %5, %648 : vector<4x64xi1>, vector<4x64xf32>
    %cst_204 = arith.constant dense<0x7F800000> : vector<4xf32>
    %650 = vector.multi_reduction <minimumf>, %649, %cst_204 [1] : vector<4x64xf32> to vector<4xf32>
    %651 = vector.shape_cast %650 : vector<4xf32> to vector<4x1xf32>
    %652 = vector.broadcast %651 : vector<4x1xf32> to vector<4x25xf32>
    %653 = arith.mulf %57, %652 : vector<4x25xf32>
    %cst_205 = arith.constant dense<0.000000e+00> : vector<25xf32>
    %654 = vector.multi_reduction <add>, %653, %cst_205 [0] : vector<4x25xf32> to vector<25xf32>
    %655 = vector.shape_cast %654 : vector<25xf32> to vector<1x25xf32>
    %656 = arith.addf %639, %655 : vector<1x25xf32>
    %657 = vector.broadcast %651 : vector<4x1xf32> to vector<4x64xf32>
    %658 = arith.cmpf oeq, %5, %657 : vector<4x64xf32>
    %cst_206 = arith.constant -2.000000e+30 : f32
    %659 = vector.broadcast %cst_206 : f32 to vector<4x64xf32>
    %660 = arith.select %658, %659, %643 : vector<4x64xi1>, vector<4x64xf32>
    %cst_207 = arith.constant dense<0xFF800000> : vector<4xf32>
    %661 = vector.multi_reduction <maximumf>, %660, %cst_207 [1] : vector<4x64xf32> to vector<4xf32>
    %662 = vector.shape_cast %661 : vector<4xf32> to vector<4x1xf32>
    %663 = vector.broadcast %662 : vector<4x1xf32> to vector<4x64xf32>
    %664 = arith.cmpf oeq, %660, %663 : vector<4x64xf32>
    %cst_208 = arith.constant 6.400000e+01 : f32
    %665 = vector.broadcast %cst_208 : f32 to vector<4x64xf32>
    %666 = arith.select %664, %5, %665 : vector<4x64xi1>, vector<4x64xf32>
    %cst_209 = arith.constant dense<0x7F800000> : vector<4xf32>
    %667 = vector.multi_reduction <minimumf>, %666, %cst_209 [1] : vector<4x64xf32> to vector<4xf32>
    %668 = vector.shape_cast %667 : vector<4xf32> to vector<4x1xf32>
    %669 = vector.broadcast %668 : vector<4x1xf32> to vector<4x25xf32>
    %670 = arith.mulf %64, %669 : vector<4x25xf32>
    %cst_210 = arith.constant dense<0.000000e+00> : vector<25xf32>
    %671 = vector.multi_reduction <add>, %670, %cst_210 [0] : vector<4x25xf32> to vector<25xf32>
    %672 = vector.shape_cast %671 : vector<25xf32> to vector<1x25xf32>
    %673 = arith.addf %656, %672 : vector<1x25xf32>
    %674 = vector.broadcast %668 : vector<4x1xf32> to vector<4x64xf32>
    %675 = arith.cmpf oeq, %5, %674 : vector<4x64xf32>
    %cst_211 = arith.constant -2.000000e+30 : f32
    %676 = vector.broadcast %cst_211 : f32 to vector<4x64xf32>
    %677 = arith.select %675, %676, %660 : vector<4x64xi1>, vector<4x64xf32>
    %cst_212 = arith.constant dense<0xFF800000> : vector<4xf32>
    %678 = vector.multi_reduction <maximumf>, %677, %cst_212 [1] : vector<4x64xf32> to vector<4xf32>
    %679 = vector.shape_cast %678 : vector<4xf32> to vector<4x1xf32>
    %680 = vector.broadcast %679 : vector<4x1xf32> to vector<4x64xf32>
    %681 = arith.cmpf oeq, %677, %680 : vector<4x64xf32>
    %cst_213 = arith.constant 6.400000e+01 : f32
    %682 = vector.broadcast %cst_213 : f32 to vector<4x64xf32>
    %683 = arith.select %681, %5, %682 : vector<4x64xi1>, vector<4x64xf32>
    %cst_214 = arith.constant dense<0x7F800000> : vector<4xf32>
    %684 = vector.multi_reduction <minimumf>, %683, %cst_214 [1] : vector<4x64xf32> to vector<4xf32>
    %685 = vector.shape_cast %684 : vector<4xf32> to vector<4x1xf32>
    %686 = vector.broadcast %685 : vector<4x1xf32> to vector<4x25xf32>
    %687 = arith.mulf %71, %686 : vector<4x25xf32>
    %cst_215 = arith.constant dense<0.000000e+00> : vector<25xf32>
    %688 = vector.multi_reduction <add>, %687, %cst_215 [0] : vector<4x25xf32> to vector<25xf32>
    %689 = vector.shape_cast %688 : vector<25xf32> to vector<1x25xf32>
    %690 = arith.addf %673, %689 : vector<1x25xf32>
    %cst_216 = arith.constant dense<0xFF800000> : vector<1xf32>
    %691 = vector.multi_reduction <maximumf>, %288, %cst_216 [1] : vector<1x64xf32> to vector<1xf32>
    %692 = vector.shape_cast %691 : vector<1xf32> to vector<1x1xf32>
    %693 = vector.broadcast %692 : vector<1x1xf32> to vector<1x64xf32>
    %694 = arith.cmpf oeq, %288, %693 : vector<1x64xf32>
    %cst_217 = arith.constant 6.400000e+01 : f32
    %695 = vector.broadcast %cst_217 : f32 to vector<1x64xf32>
    %696 = arith.select %694, %7, %695 : vector<1x64xi1>, vector<1x64xf32>
    %cst_218 = arith.constant dense<0x7F800000> : vector<1xf32>
    %697 = vector.multi_reduction <minimumf>, %696, %cst_218 [1] : vector<1x64xf32> to vector<1xf32>
    %698 = vector.shape_cast %697 : vector<1xf32> to vector<1x1xf32>
    %699 = vector.extract_strided_slice %19 {offsets = [16, 0], sizes = [1, 25], strides = [1, 1]} : vector<25x25xf32> to vector<1x25xf32>
    %700 = vector.broadcast %698 : vector<1x1xf32> to vector<1x25xf32>
    %701 = arith.mulf %699, %700 : vector<1x25xf32>
    %702 = arith.addf %690, %701 : vector<1x25xf32>
    %703 = vector.broadcast %698 : vector<1x1xf32> to vector<1x64xf32>
    %704 = arith.cmpf oeq, %7, %703 : vector<1x64xf32>
    %cst_219 = arith.constant -2.000000e+30 : f32
    %705 = vector.broadcast %cst_219 : f32 to vector<1x64xf32>
    %706 = arith.select %704, %705, %288 : vector<1x64xi1>, vector<1x64xf32>
    %cst_220 = arith.constant dense<0xFF800000> : vector<1xf32>
    %707 = vector.multi_reduction <maximumf>, %706, %cst_220 [1] : vector<1x64xf32> to vector<1xf32>
    %708 = vector.shape_cast %707 : vector<1xf32> to vector<1x1xf32>
    %709 = vector.broadcast %708 : vector<1x1xf32> to vector<1x64xf32>
    %710 = arith.cmpf oeq, %706, %709 : vector<1x64xf32>
    %cst_221 = arith.constant 6.400000e+01 : f32
    %711 = vector.broadcast %cst_221 : f32 to vector<1x64xf32>
    %712 = arith.select %710, %7, %711 : vector<1x64xi1>, vector<1x64xf32>
    %cst_222 = arith.constant dense<0x7F800000> : vector<1xf32>
    %713 = vector.multi_reduction <minimumf>, %712, %cst_222 [1] : vector<1x64xf32> to vector<1xf32>
    %714 = vector.shape_cast %713 : vector<1xf32> to vector<1x1xf32>
    %715 = vector.extract_strided_slice %19 {offsets = [17, 0], sizes = [1, 25], strides = [1, 1]} : vector<25x25xf32> to vector<1x25xf32>
    %716 = vector.broadcast %714 : vector<1x1xf32> to vector<1x25xf32>
    %717 = arith.mulf %715, %716 : vector<1x25xf32>
    %718 = arith.addf %702, %717 : vector<1x25xf32>
    %719 = vector.broadcast %714 : vector<1x1xf32> to vector<1x64xf32>
    %720 = arith.cmpf oeq, %7, %719 : vector<1x64xf32>
    %cst_223 = arith.constant -2.000000e+30 : f32
    %721 = vector.broadcast %cst_223 : f32 to vector<1x64xf32>
    %722 = arith.select %720, %721, %706 : vector<1x64xi1>, vector<1x64xf32>
    %cst_224 = arith.constant dense<0xFF800000> : vector<1xf32>
    %723 = vector.multi_reduction <maximumf>, %722, %cst_224 [1] : vector<1x64xf32> to vector<1xf32>
    %724 = vector.shape_cast %723 : vector<1xf32> to vector<1x1xf32>
    %725 = vector.broadcast %724 : vector<1x1xf32> to vector<1x64xf32>
    %726 = arith.cmpf oeq, %722, %725 : vector<1x64xf32>
    %cst_225 = arith.constant 6.400000e+01 : f32
    %727 = vector.broadcast %cst_225 : f32 to vector<1x64xf32>
    %728 = arith.select %726, %7, %727 : vector<1x64xi1>, vector<1x64xf32>
    %cst_226 = arith.constant dense<0x7F800000> : vector<1xf32>
    %729 = vector.multi_reduction <minimumf>, %728, %cst_226 [1] : vector<1x64xf32> to vector<1xf32>
    %730 = vector.shape_cast %729 : vector<1xf32> to vector<1x1xf32>
    %731 = vector.extract_strided_slice %19 {offsets = [18, 0], sizes = [1, 25], strides = [1, 1]} : vector<25x25xf32> to vector<1x25xf32>
    %732 = vector.broadcast %730 : vector<1x1xf32> to vector<1x25xf32>
    %733 = arith.mulf %731, %732 : vector<1x25xf32>
    %734 = arith.addf %718, %733 : vector<1x25xf32>
    %735 = vector.broadcast %730 : vector<1x1xf32> to vector<1x64xf32>
    %736 = arith.cmpf oeq, %7, %735 : vector<1x64xf32>
    %cst_227 = arith.constant -2.000000e+30 : f32
    %737 = vector.broadcast %cst_227 : f32 to vector<1x64xf32>
    %738 = arith.select %736, %737, %722 : vector<1x64xi1>, vector<1x64xf32>
    %cst_228 = arith.constant dense<0xFF800000> : vector<1xf32>
    %739 = vector.multi_reduction <maximumf>, %738, %cst_228 [1] : vector<1x64xf32> to vector<1xf32>
    %740 = vector.shape_cast %739 : vector<1xf32> to vector<1x1xf32>
    %741 = vector.broadcast %740 : vector<1x1xf32> to vector<1x64xf32>
    %742 = arith.cmpf oeq, %738, %741 : vector<1x64xf32>
    %cst_229 = arith.constant 6.400000e+01 : f32
    %743 = vector.broadcast %cst_229 : f32 to vector<1x64xf32>
    %744 = arith.select %742, %7, %743 : vector<1x64xi1>, vector<1x64xf32>
    %cst_230 = arith.constant dense<0x7F800000> : vector<1xf32>
    %745 = vector.multi_reduction <minimumf>, %744, %cst_230 [1] : vector<1x64xf32> to vector<1xf32>
    %746 = vector.shape_cast %745 : vector<1xf32> to vector<1x1xf32>
    %747 = vector.extract_strided_slice %19 {offsets = [19, 0], sizes = [1, 25], strides = [1, 1]} : vector<25x25xf32> to vector<1x25xf32>
    %748 = vector.broadcast %746 : vector<1x1xf32> to vector<1x25xf32>
    %749 = arith.mulf %747, %748 : vector<1x25xf32>
    %750 = arith.addf %734, %749 : vector<1x25xf32>
    %cst_231 = arith.constant dense<0xFF800000> : vector<1xf32>
    %751 = vector.multi_reduction <maximumf>, %292, %cst_231 [1] : vector<1x64xf32> to vector<1xf32>
    %752 = vector.shape_cast %751 : vector<1xf32> to vector<1x1xf32>
    %753 = vector.broadcast %752 : vector<1x1xf32> to vector<1x64xf32>
    %754 = arith.cmpf oeq, %292, %753 : vector<1x64xf32>
    %cst_232 = arith.constant 6.400000e+01 : f32
    %755 = vector.broadcast %cst_232 : f32 to vector<1x64xf32>
    %756 = arith.select %754, %7, %755 : vector<1x64xi1>, vector<1x64xf32>
    %cst_233 = arith.constant dense<0x7F800000> : vector<1xf32>
    %757 = vector.multi_reduction <minimumf>, %756, %cst_233 [1] : vector<1x64xf32> to vector<1xf32>
    %758 = vector.shape_cast %757 : vector<1xf32> to vector<1x1xf32>
    %759 = vector.extract_strided_slice %19 {offsets = [20, 0], sizes = [1, 25], strides = [1, 1]} : vector<25x25xf32> to vector<1x25xf32>
    %760 = vector.broadcast %758 : vector<1x1xf32> to vector<1x25xf32>
    %761 = arith.mulf %759, %760 : vector<1x25xf32>
    %762 = arith.addf %750, %761 : vector<1x25xf32>
    %763 = vector.broadcast %758 : vector<1x1xf32> to vector<1x64xf32>
    %764 = arith.cmpf oeq, %7, %763 : vector<1x64xf32>
    %cst_234 = arith.constant -2.000000e+30 : f32
    %765 = vector.broadcast %cst_234 : f32 to vector<1x64xf32>
    %766 = arith.select %764, %765, %292 : vector<1x64xi1>, vector<1x64xf32>
    %cst_235 = arith.constant dense<0xFF800000> : vector<1xf32>
    %767 = vector.multi_reduction <maximumf>, %766, %cst_235 [1] : vector<1x64xf32> to vector<1xf32>
    %768 = vector.shape_cast %767 : vector<1xf32> to vector<1x1xf32>
    %769 = vector.broadcast %768 : vector<1x1xf32> to vector<1x64xf32>
    %770 = arith.cmpf oeq, %766, %769 : vector<1x64xf32>
    %cst_236 = arith.constant 6.400000e+01 : f32
    %771 = vector.broadcast %cst_236 : f32 to vector<1x64xf32>
    %772 = arith.select %770, %7, %771 : vector<1x64xi1>, vector<1x64xf32>
    %cst_237 = arith.constant dense<0x7F800000> : vector<1xf32>
    %773 = vector.multi_reduction <minimumf>, %772, %cst_237 [1] : vector<1x64xf32> to vector<1xf32>
    %774 = vector.shape_cast %773 : vector<1xf32> to vector<1x1xf32>
    %775 = vector.extract_strided_slice %19 {offsets = [21, 0], sizes = [1, 25], strides = [1, 1]} : vector<25x25xf32> to vector<1x25xf32>
    %776 = vector.broadcast %774 : vector<1x1xf32> to vector<1x25xf32>
    %777 = arith.mulf %775, %776 : vector<1x25xf32>
    %778 = arith.addf %762, %777 : vector<1x25xf32>
    %779 = vector.broadcast %774 : vector<1x1xf32> to vector<1x64xf32>
    %780 = arith.cmpf oeq, %7, %779 : vector<1x64xf32>
    %cst_238 = arith.constant -2.000000e+30 : f32
    %781 = vector.broadcast %cst_238 : f32 to vector<1x64xf32>
    %782 = arith.select %780, %781, %766 : vector<1x64xi1>, vector<1x64xf32>
    %cst_239 = arith.constant dense<0xFF800000> : vector<1xf32>
    %783 = vector.multi_reduction <maximumf>, %782, %cst_239 [1] : vector<1x64xf32> to vector<1xf32>
    %784 = vector.shape_cast %783 : vector<1xf32> to vector<1x1xf32>
    %785 = vector.broadcast %784 : vector<1x1xf32> to vector<1x64xf32>
    %786 = arith.cmpf oeq, %782, %785 : vector<1x64xf32>
    %cst_240 = arith.constant 6.400000e+01 : f32
    %787 = vector.broadcast %cst_240 : f32 to vector<1x64xf32>
    %788 = arith.select %786, %7, %787 : vector<1x64xi1>, vector<1x64xf32>
    %cst_241 = arith.constant dense<0x7F800000> : vector<1xf32>
    %789 = vector.multi_reduction <minimumf>, %788, %cst_241 [1] : vector<1x64xf32> to vector<1xf32>
    %790 = vector.shape_cast %789 : vector<1xf32> to vector<1x1xf32>
    %791 = vector.extract_strided_slice %19 {offsets = [22, 0], sizes = [1, 25], strides = [1, 1]} : vector<25x25xf32> to vector<1x25xf32>
    %792 = vector.broadcast %790 : vector<1x1xf32> to vector<1x25xf32>
    %793 = arith.mulf %791, %792 : vector<1x25xf32>
    %794 = arith.addf %778, %793 : vector<1x25xf32>
    %795 = vector.broadcast %790 : vector<1x1xf32> to vector<1x64xf32>
    %796 = arith.cmpf oeq, %7, %795 : vector<1x64xf32>
    %cst_242 = arith.constant -2.000000e+30 : f32
    %797 = vector.broadcast %cst_242 : f32 to vector<1x64xf32>
    %798 = arith.select %796, %797, %782 : vector<1x64xi1>, vector<1x64xf32>
    %cst_243 = arith.constant dense<0xFF800000> : vector<1xf32>
    %799 = vector.multi_reduction <maximumf>, %798, %cst_243 [1] : vector<1x64xf32> to vector<1xf32>
    %800 = vector.shape_cast %799 : vector<1xf32> to vector<1x1xf32>
    %801 = vector.broadcast %800 : vector<1x1xf32> to vector<1x64xf32>
    %802 = arith.cmpf oeq, %798, %801 : vector<1x64xf32>
    %cst_244 = arith.constant 6.400000e+01 : f32
    %803 = vector.broadcast %cst_244 : f32 to vector<1x64xf32>
    %804 = arith.select %802, %7, %803 : vector<1x64xi1>, vector<1x64xf32>
    %cst_245 = arith.constant dense<0x7F800000> : vector<1xf32>
    %805 = vector.multi_reduction <minimumf>, %804, %cst_245 [1] : vector<1x64xf32> to vector<1xf32>
    %806 = vector.shape_cast %805 : vector<1xf32> to vector<1x1xf32>
    %807 = vector.extract_strided_slice %19 {offsets = [23, 0], sizes = [1, 25], strides = [1, 1]} : vector<25x25xf32> to vector<1x25xf32>
    %808 = vector.broadcast %806 : vector<1x1xf32> to vector<1x25xf32>
    %809 = arith.mulf %807, %808 : vector<1x25xf32>
    %810 = arith.addf %794, %809 : vector<1x25xf32>
    %811 = vector.extract_strided_slice %19 {offsets = [24, 0], sizes = [1, 25], strides = [1, 1]} : vector<25x25xf32> to vector<1x25xf32>
    %812 = vector.broadcast %312 : vector<1x1xf32> to vector<1x25xf32>
    %813 = arith.mulf %811, %812 : vector<1x25xf32>
    %814 = arith.addf %810, %813 : vector<1x25xf32>
    %cst_246 = arith.constant 0.000000e+00 : f32
    %815 = vector.broadcast %cst_246 : f32 to vector<1x25xf32>
    %816 = arith.maximumf %814, %815 : vector<1x25xf32>
    %817 = vector.broadcast %549 : vector<1x1xf32> to vector<1x25xf32>
    %818 = arith.minimumf %816, %817 : vector<1x25xf32>
    %819 = arith.fptosi %818 : vector<1x25xf32> to vector<1x25xi32>
    %c0_247 = arith.constant 0 : index
    %c0_248 = arith.constant 0 : index
    %820 = vector.load %arg12[%c0_247, %c0_248] : memref<2x25xi32, #tpu.memory_space<vmem>>, vector<1x25xi32>
    tpu.vector_store %arg12[%c0_247, %c0_248], %819 {strides = array<i32>} : memref<2x25xi32, #tpu.memory_space<vmem>>, vector<1x25xi32>,
    %821 = vector.broadcast %818 : vector<1x25xf32> to vector<25x25xf32>
    %822 = arith.mulf %19, %821 : vector<25x25xf32>
    %cst_249 = arith.constant dense<0.000000e+00> : vector<25xf32>
    %823 = vector.multi_reduction <add>, %822, %cst_249 [1] : vector<25x25xf32> to vector<25xf32>
    %824 = vector.shape_cast %823 : vector<25xf32> to vector<25x1xf32>
    %825 = vector.broadcast %824 : vector<25x1xf32> to vector<25x64xf32>
    %826 = arith.cmpf oeq, %1, %825 : vector<25x64xf32>
    %827 = arith.extui %826 : vector<25x64xi1> to vector<25x64xi32>
    %828 = arith.sitofp %827 : vector<25x64xi32> to vector<25x64xf32>
    %cst_250 = arith.constant dense<0.000000e+00> : vector<25x16xf32>
    %829 = tpu.matmul %828, %219, %cst_250 {dimension_numbers = #tpu.dot_dimension_numbers<[1], [0], [0], [1], [0, 0, 1, 1], [], []>} : vector<25x64xf32>, vector<64x16xf32>, vector<25x16xf32> -> vector<25x16xf32>
    %c0_251 = arith.constant 0 : index
    %c0_252 = arith.constant 0 : index
    %c0_253 = arith.constant 0 : index
    %830 = vector.load %arg15[%c0_251, %c0_252, %c0_253] : memref<2x25x16xf32, #tpu.memory_space<vmem>>, vector<1x25x16xf32>
    %831 = vector.shape_cast %830 : vector<1x25x16xf32> to vector<25x16xf32>
    %832 = vector.shape_cast %829 : vector<25x16xf32> to vector<1x25x16xf32>
    tpu.vector_store %arg15[%c0_251, %c0_252, %c0_253], %832 {strides = array<i32>} : memref<2x25x16xf32, #tpu.memory_space<vmem>>, vector<1x25x16xf32>,
    %833 = arith.mulf %829, %829 : vector<25x16xf32>
    %cst_254 = arith.constant dense<0.000000e+00> : vector<25xf32>
    %834 = vector.multi_reduction <add>, %833, %cst_254 [1] : vector<25x16xf32> to vector<25xf32>
    %835 = vector.shape_cast %834 : vector<25xf32> to vector<25x1xf32>
    %836 = math.sqrt %835 : vector<25x1xf32>
    %cst_255 = arith.constant 9.99999997E-7 : f32
    %837 = vector.broadcast %cst_255 : f32 to vector<25x1xf32>
    %838 = arith.addf %836, %837 : vector<25x1xf32>
    %839 = tpu.reciprocal %838 {approx = true} : vector<25x1xf32> -> vector<25x1xf32>
    %840 = arith.mulf %608, %608 : vector<4x16xf32>
    %cst_256 = arith.constant dense<0.000000e+00> : vector<4xf32>
    %841 = vector.multi_reduction <add>, %840, %cst_256 [1] : vector<4x16xf32> to vector<4xf32>
    %842 = vector.shape_cast %841 : vector<4xf32> to vector<4x1xf32>
    %843 = math.sqrt %842 : vector<4x1xf32>
    %cst_257 = arith.constant 9.99999997E-7 : f32
    %844 = vector.broadcast %cst_257 : f32 to vector<4x1xf32>
    %845 = arith.addf %843, %844 : vector<4x1xf32>
    %846 = tpu.reciprocal %845 {approx = true} : vector<4x1xf32> -> vector<4x1xf32>
    %847 = vector.broadcast %846 : vector<4x1xf32> to vector<4x16xf32>
    %848 = arith.mulf %608, %847 : vector<4x16xf32>
    %849 = vector.broadcast %839 : vector<25x1xf32> to vector<25x16xf32>
    %850 = arith.mulf %829, %849 : vector<25x16xf32>
    %cst_258 = arith.constant dense<0.000000e+00> : vector<4x25xf32>
    %851 = tpu.matmul %848, %850, %cst_258 {dimension_numbers = #tpu.dot_dimension_numbers<[1], [1], [0], [0], [0, 0, 1, 0], [], []>} : vector<4x16xf32>, vector<25x16xf32>, vector<4x25xf32> -> vector<4x25xf32>
    %cst_259 = arith.constant dense<0xFF800000> : vector<4xf32>
    %852 = vector.multi_reduction <maximumf>, %851, %cst_259 [1] : vector<4x25xf32> to vector<4xf32>
    %853 = vector.shape_cast %852 : vector<4xf32> to vector<4x1xf32>
    %854 = vector.broadcast %853 : vector<4x1xf32> to vector<4x25xf32>
    %855 = arith.subf %851, %854 : vector<4x25xf32>
    %856 = math.exp %855 : vector<4x25xf32>
    %cst_260 = arith.constant dense<0.000000e+00> : vector<4xf32>
    %857 = vector.multi_reduction <add>, %856, %cst_260 [1] : vector<4x25xf32> to vector<4xf32>
    %858 = vector.shape_cast %857 : vector<4xf32> to vector<4x1xf32>
    %859 = tpu.reciprocal %858 {approx = true} : vector<4x1xf32> -> vector<4x1xf32>
    %860 = vector.broadcast %859 : vector<4x1xf32> to vector<4x25xf32>
    %861 = arith.mulf %856, %860 : vector<4x25xf32>
    %cst_261 = arith.constant dense<0.000000e+00> : vector<4x16xf32>
    %862 = tpu.matmul %861, %829, %cst_261 {dimension_numbers = #tpu.dot_dimension_numbers<[1], [0], [0], [1], [0, 0, 1, 1], [], []>} : vector<4x25xf32>, vector<25x16xf32>, vector<4x16xf32> -> vector<4x16xf32>
    %c0_262 = arith.constant 0 : index
    %c0_263 = arith.constant 0 : index
    %c0_264 = arith.constant 0 : index
    %863 = vector.load %arg11[%c0_262, %c0_263, %c0_264] : memref<2x4x16xf32, #tpu.memory_space<vmem>>, vector<1x4x16xf32>
    %864 = vector.shape_cast %863 : vector<1x4x16xf32> to vector<4x16xf32>
    %865 = vector.shape_cast %862 : vector<4x16xf32> to vector<1x4x16xf32>
    tpu.vector_store %arg11[%c0_262, %c0_263, %c0_264], %865 {strides = array<i32>} : memref<2x4x16xf32, #tpu.memory_space<vmem>>, vector<1x4x16xf32>,
    %866 = vector.extract_strided_slice %861 {offsets = [0, 0], sizes = [1, 25], strides = [1, 1]} : vector<4x25xf32> to vector<1x25xf32>
    %867 = vector.extract_strided_slice %861 {offsets = [1, 0], sizes = [1, 25], strides = [1, 1]} : vector<4x25xf32> to vector<1x25xf32>
    %868 = vector.extract_strided_slice %861 {offsets = [2, 0], sizes = [1, 25], strides = [1, 1]} : vector<4x25xf32> to vector<1x25xf32>
    %869 = vector.extract_strided_slice %861 {offsets = [3, 0], sizes = [1, 25], strides = [1, 1]} : vector<4x25xf32> to vector<1x25xf32>
    %870 = arith.mulf %866, %867 : vector<1x25xf32>
    %871 = arith.mulf %868, %869 : vector<1x25xf32>
    %872 = arith.mulf %870, %871 : vector<1x25xf32>
    %873 = vector.broadcast %824 : vector<25x1xf32> to vector<25x25xf32>
    %874 = vector.broadcast %818 : vector<1x25xf32> to vector<25x25xf32>
    %875 = arith.cmpf oeq, %873, %874 : vector<25x25xf32>
    %876 = arith.extui %875 : vector<25x25xi1> to vector<25x25xi32>
    %877 = arith.sitofp %876 : vector<25x25xi32> to vector<25x25xf32>
    %878 = arith.mulf %877, %24 : vector<25x25xf32>
    %cst_265 = arith.constant dense<0xFF800000> : vector<25xf32>
    %879 = vector.multi_reduction <maximumf>, %878, %cst_265 [1] : vector<25x25xf32> to vector<25xf32>
    %880 = vector.shape_cast %879 : vector<25xf32> to vector<25x1xf32>
    %cst_266 = arith.constant 1.000000e+00 : f32
    %881 = vector.broadcast %cst_266 : f32 to vector<25x1xf32>
    %882 = arith.subf %881, %880 : vector<25x1xf32>
    %cst_267 = arith.constant dense<0xFF800000> : vector<64xf32>
    %883 = vector.multi_reduction <maximumf>, %828, %cst_267 [0] : vector<25x64xf32> to vector<64xf32>
    %884 = vector.shape_cast %883 : vector<64xf32> to vector<1x64xf32>
    %cst_268 = arith.constant 1.000000e+00 : f32
    %885 = vector.broadcast %cst_268 : f32 to vector<1x64xf32>
    %886 = arith.subf %885, %884 : vector<1x64xf32>
    %887 = arith.mulf %83, %886 : vector<1x64xf32>
    %888 = vector.broadcast %882 : vector<25x1xf32> to vector<25x64xf32>
    %889 = arith.mulf %828, %888 : vector<25x64xf32>
    %cst_269 = arith.constant dense<0.000000e+00> : vector<1x64xf32>
    %890 = tpu.matmul %872, %889, %cst_269 {dimension_numbers = #tpu.dot_dimension_numbers<[1], [0], [0], [1], [0, 0, 1, 1], [], []>} : vector<1x25xf32>, vector<25x64xf32>, vector<1x64xf32> -> vector<1x64xf32>
    %891 = arith.addf %887, %890 : vector<1x64xf32>
    %c0_270 = arith.constant 0 : index
    %c0_271 = arith.constant 0 : index
    %892 = vector.load %arg13[%c0_270, %c0_271] : memref<4x128xf32, #tpu.memory_space<vmem>>, vector<1x64xf32>
    tpu.vector_store %arg13[%c0_270, %c0_271], %891 {strides = array<i32>} : memref<4x128xf32, #tpu.memory_space<vmem>>, vector<1x64xf32>,
    %c0_i32_272 = arith.constant 0 : i32
    %893 = vector.broadcast %c0_i32_272 : i32 to vector<4x1xi32>
    %894 = arith.cmpi eq, %41, %893 : vector<4x1xi32>
    %895 = arith.extui %894 : vector<4x1xi1> to vector<4x1xi32>
    %896 = arith.sitofp %895 : vector<4x1xi32> to vector<4x1xf32>
    %897 = vector.extract_strided_slice %78 {offsets = [1, 0], sizes = [1, 16], strides = [1, 1]} : vector<2x106xf32> to vector<1x16xf32>
    %898 = vector.broadcast %896 : vector<4x1xf32> to vector<4x16xf32>
    %899 = vector.broadcast %897 : vector<1x16xf32> to vector<4x16xf32>
    %900 = arith.mulf %898, %899 : vector<4x16xf32>
    %c1_i32_273 = arith.constant 1 : i32
    %901 = vector.broadcast %c1_i32_273 : i32 to vector<4x1xi32>
    %902 = arith.cmpi eq, %41, %901 : vector<4x1xi32>
    %903 = arith.extui %902 : vector<4x1xi1> to vector<4x1xi32>
    %904 = arith.sitofp %903 : vector<4x1xi32> to vector<4x1xf32>
    %905 = vector.extract_strided_slice %78 {offsets = [1, 16], sizes = [1, 16], strides = [1, 1]} : vector<2x106xf32> to vector<1x16xf32>
    %906 = vector.broadcast %904 : vector<4x1xf32> to vector<4x16xf32>
    %907 = vector.broadcast %905 : vector<1x16xf32> to vector<4x16xf32>
    %908 = arith.mulf %906, %907 : vector<4x16xf32>
    %909 = arith.addf %900, %908 : vector<4x16xf32>
    %c2_i32_274 = arith.constant 2 : i32
    %910 = vector.broadcast %c2_i32_274 : i32 to vector<4x1xi32>
    %911 = arith.cmpi eq, %41, %910 : vector<4x1xi32>
    %912 = arith.extui %911 : vector<4x1xi1> to vector<4x1xi32>
    %913 = arith.sitofp %912 : vector<4x1xi32> to vector<4x1xf32>
    %914 = vector.extract_strided_slice %78 {offsets = [1, 32], sizes = [1, 16], strides = [1, 1]} : vector<2x106xf32> to vector<1x16xf32>
    %915 = vector.broadcast %913 : vector<4x1xf32> to vector<4x16xf32>
    %916 = vector.broadcast %914 : vector<1x16xf32> to vector<4x16xf32>
    %917 = arith.mulf %915, %916 : vector<4x16xf32>
    %918 = arith.addf %909, %917 : vector<4x16xf32>
    %c3_i32_275 = arith.constant 3 : i32
    %919 = vector.broadcast %c3_i32_275 : i32 to vector<4x1xi32>
    %920 = arith.cmpi eq, %41, %919 : vector<4x1xi32>
    %921 = arith.extui %920 : vector<4x1xi1> to vector<4x1xi32>
    %922 = arith.sitofp %921 : vector<4x1xi32> to vector<4x1xf32>
    %923 = vector.extract_strided_slice %78 {offsets = [1, 48], sizes = [1, 16], strides = [1, 1]} : vector<2x106xf32> to vector<1x16xf32>
    %924 = vector.broadcast %922 : vector<4x1xf32> to vector<4x16xf32>
    %925 = vector.broadcast %923 : vector<1x16xf32> to vector<4x16xf32>
    %926 = arith.mulf %924, %925 : vector<4x16xf32>
    %927 = arith.addf %918, %926 : vector<4x16xf32>
    %cst_276 = arith.constant dense<0.000000e+00> : vector<4x64xf32>
    %928 = tpu.matmul %927, %449, %cst_276 {dimension_numbers = #tpu.dot_dimension_numbers<[1], [1], [0], [0], [0, 0, 1, 0], [], []>} : vector<4x16xf32>, vector<64x16xf32>, vector<4x64xf32> -> vector<4x64xf32>
    %929 = arith.mulf %449, %449 : vector<64x16xf32>
    %cst_277 = arith.constant dense<0.000000e+00> : vector<1x64xf32>
    %930 = tpu.matmul %72, %929, %cst_277 {dimension_numbers = #tpu.dot_dimension_numbers<[1], [1], [0], [0], [0, 0, 1, 0], [], []>} : vector<1x16xf32>, vector<64x16xf32>, vector<1x64xf32> -> vector<1x64xf32>
    %c0_i32_278 = arith.constant 0 : i32
    %931 = vector.broadcast %c0_i32_278 : i32 to vector<1x1xi32>
    %932 = arith.cmpi sgt, %79, %931 : vector<1x1xi32>
    %c1_279 = arith.constant 1 : index
    %c24_280 = arith.constant 24 : index
    %933 = vector.load %arg4[%c1_279, %c24_280] : memref<2x25xi32, #tpu.memory_space<vmem>>, vector<1x1xi32>
    %934 = arith.sitofp %933 : vector<1x1xi32> to vector<1x1xf32>
    %cst_281 = arith.constant 6.400000e+01 : f32
    %935 = vector.broadcast %cst_281 : f32 to vector<1x1xf32>
    %936 = arith.select %932, %935, %934 : vector<1x1xi1>, vector<1x1xf32>
    %937 = vector.broadcast %936 : vector<1x1xf32> to vector<4x64xf32>
    %938 = arith.cmpf olt, %5, %937 : vector<4x64xf32>
    %cst_282 = arith.constant 2.000000e+00 : f32
    %939 = vector.broadcast %cst_282 : f32 to vector<4x64xf32>
    %940 = arith.mulf %939, %928 : vector<4x64xf32>
    %941 = vector.broadcast %930 : vector<1x64xf32> to vector<4x64xf32>
    %942 = arith.subf %940, %941 : vector<4x64xf32>
    %cst_283 = arith.constant -1.000000e+30 : f32
    %943 = vector.broadcast %cst_283 : f32 to vector<4x64xf32>
    %944 = arith.select %938, %942, %943 : vector<4x64xi1>, vector<4x64xf32>
    %cst_284 = arith.constant 0.000000e+00 : f32
    %945 = vector.broadcast %cst_284 : f32 to vector<1x25xf32>
    %cst_285 = arith.constant dense<0xFF800000> : vector<4xf32>
    %946 = vector.multi_reduction <maximumf>, %944, %cst_285 [1] : vector<4x64xf32> to vector<4xf32>
    %947 = vector.shape_cast %946 : vector<4xf32> to vector<4x1xf32>
    %948 = vector.broadcast %947 : vector<4x1xf32> to vector<4x64xf32>
    %949 = arith.cmpf oeq, %944, %948 : vector<4x64xf32>
    %cst_286 = arith.constant 6.400000e+01 : f32
    %950 = vector.broadcast %cst_286 : f32 to vector<4x64xf32>
    %951 = arith.select %949, %5, %950 : vector<4x64xi1>, vector<4x64xf32>
    %cst_287 = arith.constant dense<0x7F800000> : vector<4xf32>
    %952 = vector.multi_reduction <minimumf>, %951, %cst_287 [1] : vector<4x64xf32> to vector<4xf32>
    %953 = vector.shape_cast %952 : vector<4xf32> to vector<4x1xf32>
    %954 = vector.broadcast %953 : vector<4x1xf32> to vector<4x25xf32>
    %955 = arith.mulf %50, %954 : vector<4x25xf32>
    %cst_288 = arith.constant dense<0.000000e+00> : vector<25xf32>
    %956 = vector.multi_reduction <add>, %955, %cst_288 [0] : vector<4x25xf32> to vector<25xf32>
    %957 = vector.shape_cast %956 : vector<25xf32> to vector<1x25xf32>
    %958 = arith.addf %945, %957 : vector<1x25xf32>
    %959 = vector.broadcast %953 : vector<4x1xf32> to vector<4x64xf32>
    %960 = arith.cmpf oeq, %5, %959 : vector<4x64xf32>
    %cst_289 = arith.constant -2.000000e+30 : f32
    %961 = vector.broadcast %cst_289 : f32 to vector<4x64xf32>
    %962 = arith.select %960, %961, %944 : vector<4x64xi1>, vector<4x64xf32>
    %cst_290 = arith.constant dense<0xFF800000> : vector<4xf32>
    %963 = vector.multi_reduction <maximumf>, %962, %cst_290 [1] : vector<4x64xf32> to vector<4xf32>
    %964 = vector.shape_cast %963 : vector<4xf32> to vector<4x1xf32>
    %965 = vector.broadcast %964 : vector<4x1xf32> to vector<4x64xf32>
    %966 = arith.cmpf oeq, %962, %965 : vector<4x64xf32>
    %cst_291 = arith.constant 6.400000e+01 : f32
    %967 = vector.broadcast %cst_291 : f32 to vector<4x64xf32>
    %968 = arith.select %966, %5, %967 : vector<4x64xi1>, vector<4x64xf32>
    %cst_292 = arith.constant dense<0x7F800000> : vector<4xf32>
    %969 = vector.multi_reduction <minimumf>, %968, %cst_292 [1] : vector<4x64xf32> to vector<4xf32>
    %970 = vector.shape_cast %969 : vector<4xf32> to vector<4x1xf32>
    %971 = vector.broadcast %970 : vector<4x1xf32> to vector<4x25xf32>
    %972 = arith.mulf %57, %971 : vector<4x25xf32>
    %cst_293 = arith.constant dense<0.000000e+00> : vector<25xf32>
    %973 = vector.multi_reduction <add>, %972, %cst_293 [0] : vector<4x25xf32> to vector<25xf32>
    %974 = vector.shape_cast %973 : vector<25xf32> to vector<1x25xf32>
    %975 = arith.addf %958, %974 : vector<1x25xf32>
    %976 = vector.broadcast %970 : vector<4x1xf32> to vector<4x64xf32>
    %977 = arith.cmpf oeq, %5, %976 : vector<4x64xf32>
    %cst_294 = arith.constant -2.000000e+30 : f32
    %978 = vector.broadcast %cst_294 : f32 to vector<4x64xf32>
    %979 = arith.select %977, %978, %962 : vector<4x64xi1>, vector<4x64xf32>
    %cst_295 = arith.constant dense<0xFF800000> : vector<4xf32>
    %980 = vector.multi_reduction <maximumf>, %979, %cst_295 [1] : vector<4x64xf32> to vector<4xf32>
    %981 = vector.shape_cast %980 : vector<4xf32> to vector<4x1xf32>
    %982 = vector.broadcast %981 : vector<4x1xf32> to vector<4x64xf32>
    %983 = arith.cmpf oeq, %979, %982 : vector<4x64xf32>
    %cst_296 = arith.constant 6.400000e+01 : f32
    %984 = vector.broadcast %cst_296 : f32 to vector<4x64xf32>
    %985 = arith.select %983, %5, %984 : vector<4x64xi1>, vector<4x64xf32>
    %cst_297 = arith.constant dense<0x7F800000> : vector<4xf32>
    %986 = vector.multi_reduction <minimumf>, %985, %cst_297 [1] : vector<4x64xf32> to vector<4xf32>
    %987 = vector.shape_cast %986 : vector<4xf32> to vector<4x1xf32>
    %988 = vector.broadcast %987 : vector<4x1xf32> to vector<4x25xf32>
    %989 = arith.mulf %64, %988 : vector<4x25xf32>
    %cst_298 = arith.constant dense<0.000000e+00> : vector<25xf32>
    %990 = vector.multi_reduction <add>, %989, %cst_298 [0] : vector<4x25xf32> to vector<25xf32>
    %991 = vector.shape_cast %990 : vector<25xf32> to vector<1x25xf32>
    %992 = arith.addf %975, %991 : vector<1x25xf32>
    %993 = vector.broadcast %987 : vector<4x1xf32> to vector<4x64xf32>
    %994 = arith.cmpf oeq, %5, %993 : vector<4x64xf32>
    %cst_299 = arith.constant -2.000000e+30 : f32
    %995 = vector.broadcast %cst_299 : f32 to vector<4x64xf32>
    %996 = arith.select %994, %995, %979 : vector<4x64xi1>, vector<4x64xf32>
    %cst_300 = arith.constant dense<0xFF800000> : vector<4xf32>
    %997 = vector.multi_reduction <maximumf>, %996, %cst_300 [1] : vector<4x64xf32> to vector<4xf32>
    %998 = vector.shape_cast %997 : vector<4xf32> to vector<4x1xf32>
    %999 = vector.broadcast %998 : vector<4x1xf32> to vector<4x64xf32>
    %1000 = arith.cmpf oeq, %996, %999 : vector<4x64xf32>
    %cst_301 = arith.constant 6.400000e+01 : f32
    %1001 = vector.broadcast %cst_301 : f32 to vector<4x64xf32>
    %1002 = arith.select %1000, %5, %1001 : vector<4x64xi1>, vector<4x64xf32>
    %cst_302 = arith.constant dense<0x7F800000> : vector<4xf32>
    %1003 = vector.multi_reduction <minimumf>, %1002, %cst_302 [1] : vector<4x64xf32> to vector<4xf32>
    %1004 = vector.shape_cast %1003 : vector<4xf32> to vector<4x1xf32>
    %1005 = vector.broadcast %1004 : vector<4x1xf32> to vector<4x25xf32>
    %1006 = arith.mulf %71, %1005 : vector<4x25xf32>
    %cst_303 = arith.constant dense<0.000000e+00> : vector<25xf32>
    %1007 = vector.multi_reduction <add>, %1006, %cst_303 [0] : vector<4x25xf32> to vector<25xf32>
    %1008 = vector.shape_cast %1007 : vector<25xf32> to vector<1x25xf32>
    %1009 = arith.addf %992, %1008 : vector<1x25xf32>
    %cst_304 = arith.constant dense<0xFF800000> : vector<1xf32>
    %1010 = vector.multi_reduction <maximumf>, %518, %cst_304 [1] : vector<1x64xf32> to vector<1xf32>
    %1011 = vector.shape_cast %1010 : vector<1xf32> to vector<1x1xf32>
    %1012 = vector.broadcast %1011 : vector<1x1xf32> to vector<1x64xf32>
    %1013 = arith.cmpf oeq, %518, %1012 : vector<1x64xf32>
    %cst_305 = arith.constant 6.400000e+01 : f32
    %1014 = vector.broadcast %cst_305 : f32 to vector<1x64xf32>
    %1015 = arith.select %1013, %7, %1014 : vector<1x64xi1>, vector<1x64xf32>
    %cst_306 = arith.constant dense<0x7F800000> : vector<1xf32>
    %1016 = vector.multi_reduction <minimumf>, %1015, %cst_306 [1] : vector<1x64xf32> to vector<1xf32>
    %1017 = vector.shape_cast %1016 : vector<1xf32> to vector<1x1xf32>
    %1018 = vector.extract_strided_slice %19 {offsets = [16, 0], sizes = [1, 25], strides = [1, 1]} : vector<25x25xf32> to vector<1x25xf32>
    %1019 = vector.broadcast %1017 : vector<1x1xf32> to vector<1x25xf32>
    %1020 = arith.mulf %1018, %1019 : vector<1x25xf32>
    %1021 = arith.addf %1009, %1020 : vector<1x25xf32>
    %1022 = vector.broadcast %1017 : vector<1x1xf32> to vector<1x64xf32>
    %1023 = arith.cmpf oeq, %7, %1022 : vector<1x64xf32>
    %cst_307 = arith.constant -2.000000e+30 : f32
    %1024 = vector.broadcast %cst_307 : f32 to vector<1x64xf32>
    %1025 = arith.select %1023, %1024, %518 : vector<1x64xi1>, vector<1x64xf32>
    %cst_308 = arith.constant dense<0xFF800000> : vector<1xf32>
    %1026 = vector.multi_reduction <maximumf>, %1025, %cst_308 [1] : vector<1x64xf32> to vector<1xf32>
    %1027 = vector.shape_cast %1026 : vector<1xf32> to vector<1x1xf32>
    %1028 = vector.broadcast %1027 : vector<1x1xf32> to vector<1x64xf32>
    %1029 = arith.cmpf oeq, %1025, %1028 : vector<1x64xf32>
    %cst_309 = arith.constant 6.400000e+01 : f32
    %1030 = vector.broadcast %cst_309 : f32 to vector<1x64xf32>
    %1031 = arith.select %1029, %7, %1030 : vector<1x64xi1>, vector<1x64xf32>
    %cst_310 = arith.constant dense<0x7F800000> : vector<1xf32>
    %1032 = vector.multi_reduction <minimumf>, %1031, %cst_310 [1] : vector<1x64xf32> to vector<1xf32>
    %1033 = vector.shape_cast %1032 : vector<1xf32> to vector<1x1xf32>
    %1034 = vector.extract_strided_slice %19 {offsets = [17, 0], sizes = [1, 25], strides = [1, 1]} : vector<25x25xf32> to vector<1x25xf32>
    %1035 = vector.broadcast %1033 : vector<1x1xf32> to vector<1x25xf32>
    %1036 = arith.mulf %1034, %1035 : vector<1x25xf32>
    %1037 = arith.addf %1021, %1036 : vector<1x25xf32>
    %1038 = vector.broadcast %1033 : vector<1x1xf32> to vector<1x64xf32>
    %1039 = arith.cmpf oeq, %7, %1038 : vector<1x64xf32>
    %cst_311 = arith.constant -2.000000e+30 : f32
    %1040 = vector.broadcast %cst_311 : f32 to vector<1x64xf32>
    %1041 = arith.select %1039, %1040, %1025 : vector<1x64xi1>, vector<1x64xf32>
    %cst_312 = arith.constant dense<0xFF800000> : vector<1xf32>
    %1042 = vector.multi_reduction <maximumf>, %1041, %cst_312 [1] : vector<1x64xf32> to vector<1xf32>
    %1043 = vector.shape_cast %1042 : vector<1xf32> to vector<1x1xf32>
    %1044 = vector.broadcast %1043 : vector<1x1xf32> to vector<1x64xf32>
    %1045 = arith.cmpf oeq, %1041, %1044 : vector<1x64xf32>
    %cst_313 = arith.constant 6.400000e+01 : f32
    %1046 = vector.broadcast %cst_313 : f32 to vector<1x64xf32>
    %1047 = arith.select %1045, %7, %1046 : vector<1x64xi1>, vector<1x64xf32>
    %cst_314 = arith.constant dense<0x7F800000> : vector<1xf32>
    %1048 = vector.multi_reduction <minimumf>, %1047, %cst_314 [1] : vector<1x64xf32> to vector<1xf32>
    %1049 = vector.shape_cast %1048 : vector<1xf32> to vector<1x1xf32>
    %1050 = vector.extract_strided_slice %19 {offsets = [18, 0], sizes = [1, 25], strides = [1, 1]} : vector<25x25xf32> to vector<1x25xf32>
    %1051 = vector.broadcast %1049 : vector<1x1xf32> to vector<1x25xf32>
    %1052 = arith.mulf %1050, %1051 : vector<1x25xf32>
    %1053 = arith.addf %1037, %1052 : vector<1x25xf32>
    %1054 = vector.broadcast %1049 : vector<1x1xf32> to vector<1x64xf32>
    %1055 = arith.cmpf oeq, %7, %1054 : vector<1x64xf32>
    %cst_315 = arith.constant -2.000000e+30 : f32
    %1056 = vector.broadcast %cst_315 : f32 to vector<1x64xf32>
    %1057 = arith.select %1055, %1056, %1041 : vector<1x64xi1>, vector<1x64xf32>
    %cst_316 = arith.constant dense<0xFF800000> : vector<1xf32>
    %1058 = vector.multi_reduction <maximumf>, %1057, %cst_316 [1] : vector<1x64xf32> to vector<1xf32>
    %1059 = vector.shape_cast %1058 : vector<1xf32> to vector<1x1xf32>
    %1060 = vector.broadcast %1059 : vector<1x1xf32> to vector<1x64xf32>
    %1061 = arith.cmpf oeq, %1057, %1060 : vector<1x64xf32>
    %cst_317 = arith.constant 6.400000e+01 : f32
    %1062 = vector.broadcast %cst_317 : f32 to vector<1x64xf32>
    %1063 = arith.select %1061, %7, %1062 : vector<1x64xi1>, vector<1x64xf32>
    %cst_318 = arith.constant dense<0x7F800000> : vector<1xf32>
    %1064 = vector.multi_reduction <minimumf>, %1063, %cst_318 [1] : vector<1x64xf32> to vector<1xf32>
    %1065 = vector.shape_cast %1064 : vector<1xf32> to vector<1x1xf32>
    %1066 = vector.extract_strided_slice %19 {offsets = [19, 0], sizes = [1, 25], strides = [1, 1]} : vector<25x25xf32> to vector<1x25xf32>
    %1067 = vector.broadcast %1065 : vector<1x1xf32> to vector<1x25xf32>
    %1068 = arith.mulf %1066, %1067 : vector<1x25xf32>
    %1069 = arith.addf %1053, %1068 : vector<1x25xf32>
    %cst_319 = arith.constant dense<0xFF800000> : vector<1xf32>
    %1070 = vector.multi_reduction <maximumf>, %522, %cst_319 [1] : vector<1x64xf32> to vector<1xf32>
    %1071 = vector.shape_cast %1070 : vector<1xf32> to vector<1x1xf32>
    %1072 = vector.broadcast %1071 : vector<1x1xf32> to vector<1x64xf32>
    %1073 = arith.cmpf oeq, %522, %1072 : vector<1x64xf32>
    %cst_320 = arith.constant 6.400000e+01 : f32
    %1074 = vector.broadcast %cst_320 : f32 to vector<1x64xf32>
    %1075 = arith.select %1073, %7, %1074 : vector<1x64xi1>, vector<1x64xf32>
    %cst_321 = arith.constant dense<0x7F800000> : vector<1xf32>
    %1076 = vector.multi_reduction <minimumf>, %1075, %cst_321 [1] : vector<1x64xf32> to vector<1xf32>
    %1077 = vector.shape_cast %1076 : vector<1xf32> to vector<1x1xf32>
    %1078 = vector.extract_strided_slice %19 {offsets = [20, 0], sizes = [1, 25], strides = [1, 1]} : vector<25x25xf32> to vector<1x25xf32>
    %1079 = vector.broadcast %1077 : vector<1x1xf32> to vector<1x25xf32>
    %1080 = arith.mulf %1078, %1079 : vector<1x25xf32>
    %1081 = arith.addf %1069, %1080 : vector<1x25xf32>
    %1082 = vector.broadcast %1077 : vector<1x1xf32> to vector<1x64xf32>
    %1083 = arith.cmpf oeq, %7, %1082 : vector<1x64xf32>
    %cst_322 = arith.constant -2.000000e+30 : f32
    %1084 = vector.broadcast %cst_322 : f32 to vector<1x64xf32>
    %1085 = arith.select %1083, %1084, %522 : vector<1x64xi1>, vector<1x64xf32>
    %cst_323 = arith.constant dense<0xFF800000> : vector<1xf32>
    %1086 = vector.multi_reduction <maximumf>, %1085, %cst_323 [1] : vector<1x64xf32> to vector<1xf32>
    %1087 = vector.shape_cast %1086 : vector<1xf32> to vector<1x1xf32>
    %1088 = vector.broadcast %1087 : vector<1x1xf32> to vector<1x64xf32>
    %1089 = arith.cmpf oeq, %1085, %1088 : vector<1x64xf32>
    %cst_324 = arith.constant 6.400000e+01 : f32
    %1090 = vector.broadcast %cst_324 : f32 to vector<1x64xf32>
    %1091 = arith.select %1089, %7, %1090 : vector<1x64xi1>, vector<1x64xf32>
    %cst_325 = arith.constant dense<0x7F800000> : vector<1xf32>
    %1092 = vector.multi_reduction <minimumf>, %1091, %cst_325 [1] : vector<1x64xf32> to vector<1xf32>
    %1093 = vector.shape_cast %1092 : vector<1xf32> to vector<1x1xf32>
    %1094 = vector.extract_strided_slice %19 {offsets = [21, 0], sizes = [1, 25], strides = [1, 1]} : vector<25x25xf32> to vector<1x25xf32>
    %1095 = vector.broadcast %1093 : vector<1x1xf32> to vector<1x25xf32>
    %1096 = arith.mulf %1094, %1095 : vector<1x25xf32>
    %1097 = arith.addf %1081, %1096 : vector<1x25xf32>
    %1098 = vector.broadcast %1093 : vector<1x1xf32> to vector<1x64xf32>
    %1099 = arith.cmpf oeq, %7, %1098 : vector<1x64xf32>
    %cst_326 = arith.constant -2.000000e+30 : f32
    %1100 = vector.broadcast %cst_326 : f32 to vector<1x64xf32>
    %1101 = arith.select %1099, %1100, %1085 : vector<1x64xi1>, vector<1x64xf32>
    %cst_327 = arith.constant dense<0xFF800000> : vector<1xf32>
    %1102 = vector.multi_reduction <maximumf>, %1101, %cst_327 [1] : vector<1x64xf32> to vector<1xf32>
    %1103 = vector.shape_cast %1102 : vector<1xf32> to vector<1x1xf32>
    %1104 = vector.broadcast %1103 : vector<1x1xf32> to vector<1x64xf32>
    %1105 = arith.cmpf oeq, %1101, %1104 : vector<1x64xf32>
    %cst_328 = arith.constant 6.400000e+01 : f32
    %1106 = vector.broadcast %cst_328 : f32 to vector<1x64xf32>
    %1107 = arith.select %1105, %7, %1106 : vector<1x64xi1>, vector<1x64xf32>
    %cst_329 = arith.constant dense<0x7F800000> : vector<1xf32>
    %1108 = vector.multi_reduction <minimumf>, %1107, %cst_329 [1] : vector<1x64xf32> to vector<1xf32>
    %1109 = vector.shape_cast %1108 : vector<1xf32> to vector<1x1xf32>
    %1110 = vector.extract_strided_slice %19 {offsets = [22, 0], sizes = [1, 25], strides = [1, 1]} : vector<25x25xf32> to vector<1x25xf32>
    %1111 = vector.broadcast %1109 : vector<1x1xf32> to vector<1x25xf32>
    %1112 = arith.mulf %1110, %1111 : vector<1x25xf32>
    %1113 = arith.addf %1097, %1112 : vector<1x25xf32>
    %1114 = vector.broadcast %1109 : vector<1x1xf32> to vector<1x64xf32>
    %1115 = arith.cmpf oeq, %7, %1114 : vector<1x64xf32>
    %cst_330 = arith.constant -2.000000e+30 : f32
    %1116 = vector.broadcast %cst_330 : f32 to vector<1x64xf32>
    %1117 = arith.select %1115, %1116, %1101 : vector<1x64xi1>, vector<1x64xf32>
    %cst_331 = arith.constant dense<0xFF800000> : vector<1xf32>
    %1118 = vector.multi_reduction <maximumf>, %1117, %cst_331 [1] : vector<1x64xf32> to vector<1xf32>
    %1119 = vector.shape_cast %1118 : vector<1xf32> to vector<1x1xf32>
    %1120 = vector.broadcast %1119 : vector<1x1xf32> to vector<1x64xf32>
    %1121 = arith.cmpf oeq, %1117, %1120 : vector<1x64xf32>
    %cst_332 = arith.constant 6.400000e+01 : f32
    %1122 = vector.broadcast %cst_332 : f32 to vector<1x64xf32>
    %1123 = arith.select %1121, %7, %1122 : vector<1x64xi1>, vector<1x64xf32>
    %cst_333 = arith.constant dense<0x7F800000> : vector<1xf32>
    %1124 = vector.multi_reduction <minimumf>, %1123, %cst_333 [1] : vector<1x64xf32> to vector<1xf32>
    %1125 = vector.shape_cast %1124 : vector<1xf32> to vector<1x1xf32>
    %1126 = vector.extract_strided_slice %19 {offsets = [23, 0], sizes = [1, 25], strides = [1, 1]} : vector<25x25xf32> to vector<1x25xf32>
    %1127 = vector.broadcast %1125 : vector<1x1xf32> to vector<1x25xf32>
    %1128 = arith.mulf %1126, %1127 : vector<1x25xf32>
    %1129 = arith.addf %1113, %1128 : vector<1x25xf32>
    %1130 = vector.extract_strided_slice %19 {offsets = [24, 0], sizes = [1, 25], strides = [1, 1]} : vector<25x25xf32> to vector<1x25xf32>
    %1131 = vector.broadcast %542 : vector<1x1xf32> to vector<1x25xf32>
    %1132 = arith.mulf %1130, %1131 : vector<1x25xf32>
    %1133 = arith.addf %1129, %1132 : vector<1x25xf32>
    %cst_334 = arith.constant 0.000000e+00 : f32
    %1134 = vector.broadcast %cst_334 : f32 to vector<1x25xf32>
    %1135 = arith.maximumf %1133, %1134 : vector<1x25xf32>
    %1136 = vector.broadcast %549 : vector<1x1xf32> to vector<1x25xf32>
    %1137 = arith.minimumf %1135, %1136 : vector<1x25xf32>
    %1138 = arith.fptosi %1137 : vector<1x25xf32> to vector<1x25xi32>
    %c1_335 = arith.constant 1 : index
    %c0_336 = arith.constant 0 : index
    %1139 = vector.load %arg12[%c1_335, %c0_336] : memref<2x25xi32, #tpu.memory_space<vmem>>, vector<1x25xi32>
    tpu.vector_store %arg12[%c1_335, %c0_336], %1138 {strides = array<i32>} : memref<2x25xi32, #tpu.memory_space<vmem>>, vector<1x25xi32>,
    %1140 = vector.broadcast %1137 : vector<1x25xf32> to vector<25x25xf32>
    %1141 = arith.mulf %19, %1140 : vector<25x25xf32>
    %cst_337 = arith.constant dense<0.000000e+00> : vector<25xf32>
    %1142 = vector.multi_reduction <add>, %1141, %cst_337 [1] : vector<25x25xf32> to vector<25xf32>
    %1143 = vector.shape_cast %1142 : vector<25xf32> to vector<25x1xf32>
    %1144 = vector.broadcast %1143 : vector<25x1xf32> to vector<25x64xf32>
    %1145 = arith.cmpf oeq, %1, %1144 : vector<25x64xf32>
    %1146 = arith.extui %1145 : vector<25x64xi1> to vector<25x64xi32>
    %1147 = arith.sitofp %1146 : vector<25x64xi32> to vector<25x64xf32>
    %cst_338 = arith.constant dense<0.000000e+00> : vector<25x16xf32>
    %1148 = tpu.matmul %1147, %449, %cst_338 {dimension_numbers = #tpu.dot_dimension_numbers<[1], [0], [0], [1], [0, 0, 1, 1], [], []>} : vector<25x64xf32>, vector<64x16xf32>, vector<25x16xf32> -> vector<25x16xf32>
    %c1_339 = arith.constant 1 : index
    %c0_340 = arith.constant 0 : index
    %c0_341 = arith.constant 0 : index
    %1149 = vector.load %arg15[%c1_339, %c0_340, %c0_341] : memref<2x25x16xf32, #tpu.memory_space<vmem>>, vector<1x25x16xf32>
    %1150 = vector.shape_cast %1149 : vector<1x25x16xf32> to vector<25x16xf32>
    %1151 = vector.shape_cast %1148 : vector<25x16xf32> to vector<1x25x16xf32>
    tpu.vector_store %arg15[%c1_339, %c0_340, %c0_341], %1151 {strides = array<i32>} : memref<2x25x16xf32, #tpu.memory_space<vmem>>, vector<1x25x16xf32>,
    %1152 = arith.mulf %1148, %1148 : vector<25x16xf32>
    %cst_342 = arith.constant dense<0.000000e+00> : vector<25xf32>
    %1153 = vector.multi_reduction <add>, %1152, %cst_342 [1] : vector<25x16xf32> to vector<25xf32>
    %1154 = vector.shape_cast %1153 : vector<25xf32> to vector<25x1xf32>
    %1155 = math.sqrt %1154 : vector<25x1xf32>
    %cst_343 = arith.constant 9.99999997E-7 : f32
    %1156 = vector.broadcast %cst_343 : f32 to vector<25x1xf32>
    %1157 = arith.addf %1155, %1156 : vector<25x1xf32>
    %1158 = tpu.reciprocal %1157 {approx = true} : vector<25x1xf32> -> vector<25x1xf32>
    %1159 = arith.mulf %927, %927 : vector<4x16xf32>
    %cst_344 = arith.constant dense<0.000000e+00> : vector<4xf32>
    %1160 = vector.multi_reduction <add>, %1159, %cst_344 [1] : vector<4x16xf32> to vector<4xf32>
    %1161 = vector.shape_cast %1160 : vector<4xf32> to vector<4x1xf32>
    %1162 = math.sqrt %1161 : vector<4x1xf32>
    %cst_345 = arith.constant 9.99999997E-7 : f32
    %1163 = vector.broadcast %cst_345 : f32 to vector<4x1xf32>
    %1164 = arith.addf %1162, %1163 : vector<4x1xf32>
    %1165 = tpu.reciprocal %1164 {approx = true} : vector<4x1xf32> -> vector<4x1xf32>
    %1166 = vector.broadcast %1165 : vector<4x1xf32> to vector<4x16xf32>
    %1167 = arith.mulf %927, %1166 : vector<4x16xf32>
    %1168 = vector.broadcast %1158 : vector<25x1xf32> to vector<25x16xf32>
    %1169 = arith.mulf %1148, %1168 : vector<25x16xf32>
    %cst_346 = arith.constant dense<0.000000e+00> : vector<4x25xf32>
    %1170 = tpu.matmul %1167, %1169, %cst_346 {dimension_numbers = #tpu.dot_dimension_numbers<[1], [1], [0], [0], [0, 0, 1, 0], [], []>} : vector<4x16xf32>, vector<25x16xf32>, vector<4x25xf32> -> vector<4x25xf32>
    %cst_347 = arith.constant dense<0xFF800000> : vector<4xf32>
    %1171 = vector.multi_reduction <maximumf>, %1170, %cst_347 [1] : vector<4x25xf32> to vector<4xf32>
    %1172 = vector.shape_cast %1171 : vector<4xf32> to vector<4x1xf32>
    %1173 = vector.broadcast %1172 : vector<4x1xf32> to vector<4x25xf32>
    %1174 = arith.subf %1170, %1173 : vector<4x25xf32>
    %1175 = math.exp %1174 : vector<4x25xf32>
    %cst_348 = arith.constant dense<0.000000e+00> : vector<4xf32>
    %1176 = vector.multi_reduction <add>, %1175, %cst_348 [1] : vector<4x25xf32> to vector<4xf32>
    %1177 = vector.shape_cast %1176 : vector<4xf32> to vector<4x1xf32>
    %1178 = tpu.reciprocal %1177 {approx = true} : vector<4x1xf32> -> vector<4x1xf32>
    %1179 = vector.broadcast %1178 : vector<4x1xf32> to vector<4x25xf32>
    %1180 = arith.mulf %1175, %1179 : vector<4x25xf32>
    %cst_349 = arith.constant dense<0.000000e+00> : vector<4x16xf32>
    %1181 = tpu.matmul %1180, %1148, %cst_349 {dimension_numbers = #tpu.dot_dimension_numbers<[1], [0], [0], [1], [0, 0, 1, 1], [], []>} : vector<4x25xf32>, vector<25x16xf32>, vector<4x16xf32> -> vector<4x16xf32>
    %c1_350 = arith.constant 1 : index
    %c0_351 = arith.constant 0 : index
    %c0_352 = arith.constant 0 : index
    %1182 = vector.load %arg11[%c1_350, %c0_351, %c0_352] : memref<2x4x16xf32, #tpu.memory_space<vmem>>, vector<1x4x16xf32>
    %1183 = vector.shape_cast %1182 : vector<1x4x16xf32> to vector<4x16xf32>
    %1184 = vector.shape_cast %1181 : vector<4x16xf32> to vector<1x4x16xf32>
    tpu.vector_store %arg11[%c1_350, %c0_351, %c0_352], %1184 {strides = array<i32>} : memref<2x4x16xf32, #tpu.memory_space<vmem>>, vector<1x4x16xf32>,
    %1185 = vector.extract_strided_slice %1180 {offsets = [0, 0], sizes = [1, 25], strides = [1, 1]} : vector<4x25xf32> to vector<1x25xf32>
    %1186 = vector.extract_strided_slice %1180 {offsets = [1, 0], sizes = [1, 25], strides = [1, 1]} : vector<4x25xf32> to vector<1x25xf32>
    %1187 = vector.extract_strided_slice %1180 {offsets = [2, 0], sizes = [1, 25], strides = [1, 1]} : vector<4x25xf32> to vector<1x25xf32>
    %1188 = vector.extract_strided_slice %1180 {offsets = [3, 0], sizes = [1, 25], strides = [1, 1]} : vector<4x25xf32> to vector<1x25xf32>
    %1189 = arith.mulf %1185, %1186 : vector<1x25xf32>
    %1190 = arith.mulf %1187, %1188 : vector<1x25xf32>
    %1191 = arith.mulf %1189, %1190 : vector<1x25xf32>
    %1192 = vector.broadcast %1143 : vector<25x1xf32> to vector<25x25xf32>
    %1193 = vector.broadcast %1137 : vector<1x25xf32> to vector<25x25xf32>
    %1194 = arith.cmpf oeq, %1192, %1193 : vector<25x25xf32>
    %1195 = arith.extui %1194 : vector<25x25xi1> to vector<25x25xi32>
    %1196 = arith.sitofp %1195 : vector<25x25xi32> to vector<25x25xf32>
    %1197 = arith.mulf %1196, %24 : vector<25x25xf32>
    %cst_353 = arith.constant dense<0xFF800000> : vector<25xf32>
    %1198 = vector.multi_reduction <maximumf>, %1197, %cst_353 [1] : vector<25x25xf32> to vector<25xf32>
    %1199 = vector.shape_cast %1198 : vector<25xf32> to vector<25x1xf32>
    %cst_354 = arith.constant 1.000000e+00 : f32
    %1200 = vector.broadcast %cst_354 : f32 to vector<25x1xf32>
    %1201 = arith.subf %1200, %1199 : vector<25x1xf32>
    %cst_355 = arith.constant dense<0xFF800000> : vector<64xf32>
    %1202 = vector.multi_reduction <maximumf>, %1147, %cst_355 [0] : vector<25x64xf32> to vector<64xf32>
    %1203 = vector.shape_cast %1202 : vector<64xf32> to vector<1x64xf32>
    %cst_356 = arith.constant 1.000000e+00 : f32
    %1204 = vector.broadcast %cst_356 : f32 to vector<1x64xf32>
    %1205 = arith.subf %1204, %1203 : vector<1x64xf32>
    %1206 = arith.mulf %313, %1205 : vector<1x64xf32>
    %1207 = vector.broadcast %1201 : vector<25x1xf32> to vector<25x64xf32>
    %1208 = arith.mulf %1147, %1207 : vector<25x64xf32>
    %cst_357 = arith.constant dense<0.000000e+00> : vector<1x64xf32>
    %1209 = tpu.matmul %1191, %1208, %cst_357 {dimension_numbers = #tpu.dot_dimension_numbers<[1], [0], [0], [1], [0, 0, 1, 1], [], []>} : vector<1x25xf32>, vector<25x64xf32>, vector<1x64xf32> -> vector<1x64xf32>
    %1210 = arith.addf %1206, %1209 : vector<1x64xf32>
    %c0_358 = arith.constant 0 : index
    %c64_359 = arith.constant 64 : index
    %1211 = vector.load %arg13[%c0_358, %c64_359] : memref<4x128xf32, #tpu.memory_space<vmem>>, vector<1x64xf32>
    tpu.vector_store %arg13[%c0_358, %c64_359], %1210 {strides = array<i32>} : memref<4x128xf32, #tpu.memory_space<vmem>>, vector<1x64xf32>,
    return
  }
  func.func @transform_0(%arg0: i32) -> (i32, i32) {
    %c0_i32 = arith.constant 0 : i32
    %c0_i32_0 = arith.constant 0 : i32
    %c0_i32_1 = arith.constant 0 : i32
    return %c0_i32, %c0_i32_0 : i32, i32
  }
  func.func @transform_1(%arg0: i32) -> (i32, i32) {
    %c0_i32 = arith.constant 0 : i32
    %c0_i32_0 = arith.constant 0 : i32
    %c0_i32_1 = arith.constant 0 : i32
    return %c0_i32, %c0_i32_0 : i32, i32
  }
  func.func @transform_2(%arg0: i32) -> (i32, i32) {
    %c0_i32 = arith.constant 0 : i32
    %c0_i32_0 = arith.constant 0 : i32
    %c0_i32_1 = arith.constant 0 : i32
    return %c0_i32, %c0_i32_0 : i32, i32
  }
  func.func @transform_3(%arg0: i32) -> (i32, i32) {
    %c0_i32 = arith.constant 0 : i32
    %c0_i32_0 = arith.constant 0 : i32
    %c0_i32_1 = arith.constant 0 : i32
    return %c0_i32, %c0_i32_0 : i32, i32
  }
  func.func @transform_4(%arg0: i32) -> (i32, i32) {
    %c0_i32 = arith.constant 0 : i32
    %c0_i32_0 = arith.constant 0 : i32
    %c0_i32_1 = arith.constant 0 : i32
    return %c0_i32, %c0_i32_0 : i32, i32
  }
  func.func @transform_5(%arg0: i32) -> (i32, i32, i32) {
    %c0_i32 = arith.constant 0 : i32
    %c0_i32_0 = arith.constant 0 : i32
    %c0_i32_1 = arith.constant 0 : i32
    %c0_i32_2 = arith.constant 0 : i32
    return %c0_i32, %c0_i32_0, %c0_i32_1 : i32, i32, i32
  }
  func.func @transform_6(%arg0: i32) -> (i32, i32, i32) {
    %c0_i32 = arith.constant 0 : i32
    %c0_i32_0 = arith.constant 0 : i32
    %c0_i32_1 = arith.constant 0 : i32
    %c0_i32_2 = arith.constant 0 : i32
    return %c0_i32, %c0_i32_0, %c0_i32_1 : i32, i32, i32
  }
  func.func @transform_7(%arg0: i32) -> (i32, i32, i32) {
    %c0_i32 = arith.constant 0 : i32
    %c0_i32_0 = arith.constant 0 : i32
    %c0_i32_1 = arith.constant 0 : i32
    %c0_i32_2 = arith.constant 0 : i32
    return %c0_i32, %c0_i32_0, %c0_i32_1 : i32, i32, i32
  }
  func.func @transform_8(%arg0: i32) -> (i32, i32, i32) {
    %c0_i32 = arith.constant 0 : i32
    %c0_i32_0 = arith.constant 0 : i32
    %c0_i32_1 = arith.constant 0 : i32
    %c0_i32_2 = arith.constant 0 : i32
    return %c0_i32, %c0_i32_0, %c0_i32_1 : i32, i32, i32
  }
  func.func @transform_9(%arg0: i32) -> (i32, i32) {
    %c0_i32 = arith.constant 0 : i32
    %c0_i32_0 = arith.constant 0 : i32
    %c0_i32_1 = arith.constant 0 : i32
    return %c0_i32, %c0_i32_0 : i32, i32
  }
  func.func @transform_10(%arg0: i32) -> (i32, i32, i32) {
    %c0_i32 = arith.constant 0 : i32
    %c0_i32_0 = arith.constant 0 : i32
    %c0_i32_1 = arith.constant 0 : i32
    %c0_i32_2 = arith.constant 0 : i32
    return %c0_i32, %c0_i32_0, %c0_i32_1 : i32, i32, i32
  }
  func.func @transform_11(%arg0: i32) -> (i32, i32) {
    %c0_i32 = arith.constant 0 : i32
    %c0_i32_0 = arith.constant 0 : i32
    %c0_i32_1 = arith.constant 0 : i32
    return %c0_i32, %c0_i32_0 : i32, i32
  }
  func.func @transform_12(%arg0: i32) -> (i32, i32) {
    %c0_i32 = arith.constant 0 : i32
    %c0_i32_0 = arith.constant 0 : i32
    %c0_i32_1 = arith.constant 0 : i32
    return %c0_i32, %c0_i32_0 : i32, i32
  }
  func.func @transform_13(%arg0: i32) -> (i32, i32, i32) {
    %c0_i32 = arith.constant 0 : i32
    %c0_i32_0 = arith.constant 0 : i32
    %c0_i32_1 = arith.constant 0 : i32
    %c0_i32_2 = arith.constant 0 : i32
    return %c0_i32, %c0_i32_0, %c0_i32_1 : i32, i32, i32
  }
  func.func @transform_14(%arg0: i32) -> (i32, i32, i32) {
    %c0_i32 = arith.constant 0 : i32
    %c0_i32_0 = arith.constant 0 : i32
    %c0_i32_1 = arith.constant 0 : i32
    %c0_i32_2 = arith.constant 0 : i32
    return %c0_i32, %c0_i32_0, %c0_i32_1 : i32, i32, i32
  }
  func.func @transform_15(%arg0: i32) -> (i32, i32, i32) {
    %c0_i32 = arith.constant 0 : i32
    %c0_i32_0 = arith.constant 0 : i32
    %c0_i32_1 = arith.constant 0 : i32
    %c0_i32_2 = arith.constant 0 : i32
    return %c0_i32, %c0_i32_0, %c0_i32_1 : i32, i32, i32
  }
  func.func @transform_16(%arg0: i32) -> (i32, i32, i32) {
    %c0_i32 = arith.constant 0 : i32
    %c0_i32_0 = arith.constant 0 : i32
    %c0_i32_1 = arith.constant 0 : i32
    %c0_i32_2 = arith.constant 0 : i32
    return %c0_i32, %c0_i32_0, %c0_i32_1 : i32, i32, i32
  }
  func.func @transform_17(%arg0: i32) -> (i32, i32) {
    %c0_i32 = arith.constant 0 : i32
    %c0_i32_0 = arith.constant 0 : i32
    %c0_i32_1 = arith.constant 0 : i32
    return %c0_i32, %c0_i32_0 : i32, i32
  }
}

</mosaic_0001>

<bundles_post_ra>
// kernel: stm_forward.1
= control target key start
LH: loop header
LB: loop body
LE: loop exit
PB: predicated region body
PF: predicated region fallthrough
CT: control target
= control target key end

     0   :  { %s6881_s0 = inlined_call_operand.vmem [shape: f32[2,32], index: 0, kind: input, shape index: {}]   ;;  %s6882_s1 = inlined_call_operand.vmem [shape: f32[32,106], index: 1, kind: input, shape index: {}]   ;;  %s6883_s2 = inlined_call_operand.vmem [shape: f32[1,106], index: 2, kind: input, shape index: {}]   ;;  %s6884_s3 = inlined_call_operand.vmem [shape: s32[2,25], index: 3, kind: input, shape index: {}]   ;;  %s6885_s4 = inlined_call_operand.vmem [shape: f32[4,128], index: 4, kind: input, shape index: {}]   ;;  %s6886_s5 = inlined_call_operand.vmem [shape: f32[2,64,16], index: 5, kind: input, shape index: {}, may-alias: {5,13}]   ;;  %s6887_s6 = inlined_call_operand.vmem [shape: f32[2,25,16], index: 6, kind: input, shape index: {}, may-alias: {6,14}]   ;;  %s6888_s7 = inlined_call_operand.vmem [shape: f32[2,8,64], index: 7, kind: input, shape index: {}, may-alias: {7,15}]   ;;  %s6889_s8 = inlined_call_operand.vmem [shape: f32[2,8,64], index: 8, kind: input, shape index: {}, may-alias: {8,16}]   ;;  %s6890_s9 = inlined_call_operand.vmem [shape: s32[1,4], index: 9, kind: input, shape index: {}]   ;;  %s6891_s10 = inlined_call_operand.vmem [shape: f32[2,4,16], index: 10, kind: output, shape index: {0}]   ;;  %s6892_s11 = inlined_call_operand.hbm [shape: s32[2,25], index: 11, kind: output, shape index: {1}]   ;;  %s6893_s12 = inlined_call_operand.hbm [shape: f32[4,128], index: 12, kind: output, shape index: {2}]   ;;  %s6894_s13 = inlined_call_operand.vmem [shape: f32[2,64,16], index: 13, kind: output, shape index: {3}, may-alias: {5,13}]   ;;  %s6895_s14 = inlined_call_operand.vmem [shape: f32[2,25,16], index: 14, kind: output, shape index: {4}, may-alias: {6,14}]   ;;  %s6896_s15 = inlined_call_operand.vmem [shape: f32[2,8,64], index: 15, kind: output, shape index: {5}, may-alias: {7,15}]   ;;  %s6897_s16 = inlined_call_operand.vmem [shape: f32[2,8,64], index: 16, kind: output, shape index: {6}, may-alias: {8,16}]   ;;  %s6898_s17 = inlined_call_operand.hbm [shape: s32[1,4], index: 17, kind: output, shape index: {7}]  }
   0x1   :  { %6942 = sst [smem:[#allocation26_spill]] %s6881_s0 }
   0x2   :  { %6943 = sst [smem:[#allocation27_spill]] %s6882_s1 }
   0x3   :  { %23 = vsyncpa [#allocation3], 0  ;;  %v45_v0 = vlaneseq  ;;  %v211_v1 = vld [vmem:[%s6884_s3] sm:$0x1]  ;;  %s6944_s28 = sld [smem:[#allocation27_spill]]  ;;  %v6916_v3 = vmov 0.0  }
   0x4   :  { %4270 = vmatprep.subr.mxu1 %v6916_v3  ;;  %vm6900_vm0 = vmmov 0   ;;  %v212_v5 = vcvt.s32.f32 %v211_v1  ;;  %4259 = vmatprep.subr.mxu0 %v6916_v3  ;;  %v1013_v7 = vld [vmem:[%s6885_s4] sm:$0x7] }
   0x5   :  { %4286 = vmatprep.mubr.msk.f32.mxu1 %vm6900_vm0, %v6916_v3  ;;  %v4832_v4 = vshrl.u32 %v45_v0, 7  ;;  %4267 = vmatprep.mubr.msk.f32.mxu0 %vm6900_vm0, %v6916_v3 }
   0x9   :  { %v121_v2 = vld [vmem:[%s6944_s28 + $0x18] sm:$0xff]  ;;  %v120_v6 = vld [vmem:[%s6944_s28 + $0x10] sm:$0xff] }
   0xa   :  { %4260 = vmatpush3.msra.mxu0 %v121_v2 }
   0xb   :  { %24 = vsyncpa [#allocation5], 0  ;;  %v4844_v8 = vadd.s32 56, %v4832_v4  ;;  %v4847_v9 = vsub.s32 0, %v4832_v4  ;;  %v4850_v10 = vadd.s32 48, %v4832_v4  ;;  %v4853_v11 = vadd.s32 40, %v4832_v4  ;;  %4261 = vmatprep.subr.mxu0 %v6916_v3 }
   0xc   :  { %v119_v12 = vld [vmem:[%s6944_s28 + $0x8] sm:$0xff]  ;;  %s4713_s20 = smov 64   ;;  %v4861_v13 = vadd.s32 32, %v4832_v4  ;;  %v4864_v14 = vadd.s32 24, %v4832_v4  ;;  %4262 = vmatpush3.msra.mxu0 %v120_v6  ;;  %v118_v19 = vld [vmem:[%s6944_s28] sm:$0xff]  ;;  %s6945_s25 = sld [smem:[#allocation26_spill]]  ;;  %v57_v34 = vcvt.s32.f32 %v4832_v4 }
   0xd   :  { %1062 = vrot.lane.b32.xlu0 %v1013_v7, %s4713_s20  ;;  %v64_v15 = vcvt.s32.f32 %v4844_v8  ;;  %v4868_v16 = vrot.slane %v212_v5, %v4847_v9  ;;  %v63_v17 = vcvt.s32.f32 %v4850_v10  ;;  %v62_v18 = vcvt.s32.f32 %v4853_v11  ;;  %4263 = vmatprep.subr.mxu0 %v6916_v3  ;;  %v209_v37 = vld [vmem:[%s6885_s4] sm:$0x7]  ;;  %s4717_s18 = smov 47   ;;  %v633_v36 = vld [vmem:[%s6887_s6 + $0x10] sm:$0xff]  ;;  %s4719_s22 = smov 106  }
   0xe   :  { %4264 = vmatpush3.msra.mxu0 %v119_v12  ;;  %vm129_vm1 = vcmask 261120   ;;  %v61_v23 = vcvt.s32.f32 %v4861_v13  ;;  %v4891_v24 = vadd.s32 16, %v4832_v4  ;;  %v6913_v25 = vmov 1.0   ;;  %v1015_v38 = vld [vmem:[%s6884_s3 + $0x1] sm:$0x1]  ;;  %s4721_s28 = smov 96  }
   0xf   :  { %vm4880_vm2 = vcmp.eq.f32.partialorder %v64_v15, %v4868_v16  ;;  %vm4885_vm3 = vcmp.eq.f32.partialorder %v63_v17, %v4868_v16  ;;  %4265 = vmatprep.subr.mxu0 %v6916_v3  ;;  %vm4899_vm4 = vcmp.eq.f32.partialorder %v62_v18, %v4868_v16  ;;  %v60_v27 = vcvt.s32.f32 %v4864_v14  ;;  %v3918_v50 = vld [vmem:[%s6883_s2] ss:$0 sm:$0xff]  ;;  %s4716_s2 = smov 81   ;;  %s4722_s29 = smov 80  }
  0x10   :  { %4271 = vmatpush3.msk.msra.mxu1 %vm4880_vm2, %v6913_v25  ;;  %4266 = vmatpush3.msra.mxu0 %v118_v19  ;;  %v4905_v28 = vadd.s32 8, %v4832_v4  ;;  %vm4913_vm5 = vcmp.eq.f32.partialorder %v61_v23, %v4868_v16  ;;  %v59_v30 = vcvt.s32.f32 %v4891_v24  ;;  %vm4954_vm9 = vcmp.eq.f32.partialorder %v57_v34, %v4868_v16  ;;  %s4723_s0 = smov 17   ;;  %s4727_s30 = smov 120  }
  0x11   :  { %4272 = vmatprep.subr.mxu1 %v6916_v3  ;;  %4289 = vmatprep.subr.mxu0 %v6916_v3  ;;  %vm4925_vm6 = vcmp.eq.f32.partialorder %v60_v27, %v4868_v16  ;;  %vm6902_vm10 = vcmask 523264   ;;  %v1016_v39 = vcvt.s32.f32 %v1015_v38  ;;  %v6962_v41 = vmov 0 }
  0x12   :  { %v117_v20 = vld [vmem:[%s6945_s25] sm:$0x3]  ;;  %4273 = vmatpush3.msk.msra.mxu1 %vm4885_vm3, %v6913_v25  ;;  %v58_v32 = vcvt.s32.f32 %v4905_v28  ;;  %vm4935_vm7 = vcmp.eq.f32.partialorder %v59_v30, %v4868_v16  ;;  %v6964_v42 = vmov 0  ;;  %v6966_v43 = vmov 0  ;;  %s4720_s25 = smov 112  }
  0x13   :  { %4268 = vmatmul.mubr.msk.f32.vlgmr.msra.gmra.mxu0 %vm129_vm1, %v117_v20  ;;  %4274 = vmatprep.subr.mxu1 %v6916_v3  ;;  %v4976_v40 = vrot.slane %v1016_v39, %v4847_v9  ;;  %v6968_v44 = vmov 0  ;;  %v6970_v45 = vmov 0  ;;  %v6972_v46 = vmov 0 }
  0x14   :  { %4297 = vmatprep.mubr.msk.f32.mxu0 %vm6900_vm0, %v6916_v3  ;;  %4275 = vmatpush3.msk.msra.mxu1 %vm4899_vm4, %v6913_v25  ;;  %vm4945_vm8 = vcmp.eq.f32.partialorder %v58_v32, %v4868_v16  ;;  %v4715_v56 = vmov 80   ;;  %v5077_v8 = vand.u32 127, %v45_v0 }
  0x15   :  { %4276 = vmatprep.subr.mxu1 %v6916_v3  ;;  %vm4979_vm11 = vcmp.eq.f32.partialorder %v64_v15, %v4976_v40  ;;  %vm4984_vm12 = vcmp.eq.f32.partialorder %v63_v17, %v4976_v40  ;;  %vm4993_vm13 = vcmp.eq.f32.partialorder %v62_v18, %v4976_v40  ;;  %vm5002_vm14 = vcmp.eq.f32.partialorder %v61_v23, %v4976_v40 }
  0x16   :  { %4277 = vmatpush3.msk.msra.mxu1 %vm4913_vm5, %v6913_v25  ;;  %v6963_v41 = vsel %vm4979_vm11, 4294967295, %v6962_v41  ;;  %v6965_v42 = vsel %vm4984_vm12, 4294967295, %v6964_v42  ;;  %v6967_v43 = vsel %vm4993_vm13, 4294967295, %v6966_v43  ;;  %v6969_v44 = vsel %vm5002_vm14, 4294967295, %v6968_v44  ;;  %4583 = vset.pattern.permute.xlu1 %v4715_v56  ;;  %6979 = vst [vmem:[#allocation9_spill] sm:$0xff] %v5077_v8 }
  0x17   :  { %4278 = vmatprep.subr.mxu1 %v6916_v3  ;;  %vm5011_vm15 = vcmp.eq.f32.partialorder %v60_v27, %v4976_v40  ;;  %vm5020_vm1 = vcmp.eq.f32.partialorder %v59_v30, %v4976_v40 }
  0x18   :  { %4279 = vmatpush3.msk.msra.mxu1 %vm4925_vm6, %v6913_v25  ;;  %v6971_v45 = vsel %vm5011_vm15, 4294967295, %v6970_v45  ;;  %v6973_v46 = vsel %vm5020_vm1, 4294967295, %v6972_v46 }
  0x19   :  { %4280 = vmatprep.subr.mxu1 %v6916_v3 }
  0x1a   :  { %4281 = vmatpush3.msk.msra.mxu1 %vm4935_vm7, %v6913_v25 }
  0x1b   :  { %4282 = vmatprep.subr.mxu1 %v6916_v3 }
  0x1c   :  { %4283 = vmatpush3.msk.msra.mxu1 %vm4945_vm8, %v6913_v25 }
  0x1d   :  { %4284 = vmatprep.subr.mxu1 %v6916_v3 }
  0x1e   :  { %4285 = vmatpush3.msk.msra.mxu1 %vm4954_vm9, %v6913_v25 }
  0x1f   :  { %4287 = vmatmul.mubr.msk.f32.vlgmr.msra.gmra.mxu1 %vm6902_vm10, %v209_v37  ;;  %4320 = vmatprep.subr.mxu1 %v6916_v3  ;;  %vm5038_vm10 = vcmp.eq.f32.partialorder %v57_v34, %v4976_v40 }
  0x20   :  { %4336 = vmatprep.mubr.msk.f32.mxu1 %vm6900_vm0, %v6916_v3  ;;  %4321 = vmatpush3.msk.msra.mxu1 %vm4979_vm11, %v6913_v25  ;;  %vm5029_vm0 = vcmp.eq.f32.partialorder %v58_v32, %v4976_v40  ;;  %vm6978_vm11 = vcmask 523264  }
  0x21   :  { %4322 = vmatprep.subr.mxu1 %v6916_v3 }
  0x22   :  { %4323 = vmatpush3.msk.msra.mxu1 %vm4984_vm12, %v6913_v25  ;;  %vm6905_vm12 = vcmask 198658  }
  0x23   :  { %4324 = vmatprep.subr.mxu1 %v6916_v3 }
  0x24   :  { %4325 = vmatpush3.msk.msra.mxu1 %vm4993_vm13, %v6913_v25  ;;  %vm68_vm13 = vcmp.eq.s32.totalorder %v4905_v28, %v5077_v8 }
  0x25   :  { %4326 = vmatprep.subr.mxu1 %v6916_v3  ;;  %v5092_v0 = vsel %vm68_vm13, 1.0, %v6916_v3  ;;  %vm6909_vm13 = vcmask 196608  }
  0x26   :  { %4327 = vmatpush3.msk.msra.mxu1 %vm5002_vm14, %v6913_v25  ;;  %vm6908_vm14 = vcmask 203776   ;;  %v218_v13 = vmul.f32 %v5092_v0, %v4868_v16 }
  0x27   :  { %4328 = vmatprep.subr.mxu1 %v6916_v3 }
  0x28   :  { %4329 = vmatpush3.msk.msra.mxu1 %vm5011_vm15, %v6913_v25  ;;  %v225_v18 = vsel %vm6908_vm14, %v218_v13, 0.0  ;;  %vm6981_vm15 = vcmask 203776  }
  0x29   :  { %4330 = vmatprep.subr.mxu1 %v6916_v3 }
  0x2a   :  { %4331 = vmatpush3.msk.msra.mxu1 %vm5020_vm1, %v6913_v25 }
  0x2b   :  { %4332 = vmatprep.subr.mxu1 %v6916_v3 }
  0x2c   :  { %4333 = vmatpush3.msk.msra.mxu1 %vm5029_vm0, %v6913_v25 }
  0x2d   :  { %4334 = vmatprep.subr.mxu1 %v6916_v3 }
  0x2e   :  { %4335 = vmatpush3.msk.msra.mxu1 %vm5038_vm10, %v6913_v25 }
  0x7f   :  { %v1063_v49 = vpop.permute.xlu0 %1062 }
  0x80   :  { %4337 = vmatmul.mubr.msk.f32.vlgmr.msra.gmra.mxu1 %vm6978_vm11, %v1063_v49 }
  0xd3   :  { %v199_v51 = vpop.f32.mrf.mxu0 }
  0xd4   :  { %v5053_v52 = vadd.f32 %v3918_v50, %v199_v51 }
  0xd5   :  { %v4269_v53 = vpop.f32.mrf.mxu0 }
  0xd6   :  { %v359_v54 = vsub.f32 0.0, %v5053_v52 }
  0xd8   :  { %v360_v55 = vmul.f32 1.442695, %v359_v54 }
  0xda   :  { %4589 = vpow2.f32 %v360_v55 }
  0xdf   :  { %v5056_v57 = vpop.f32.mrf.mxu1 }
  0xe0   :  { %v342_v58 = vsel %vm6905_vm12, %v5056_v57, inf  ;;  %v5061_v59 = vadd.f32 1.0, %v5056_v57  ;;  %vm69_vm12 = vcmp.eq.s32.totalorder %v4891_v24, %v5077_v8 }
  0xe1   :  { %343 = vmin.xlane.f32.xlu0 %v342_v58  ;;  %v4288_v60 = vpop.f32.mrf.mxu1  ;;  %v5082_v10 = vsel %vm69_vm12, 1.0, %v6916_v3  ;;  %vm70_vm12 = vcmp.eq.s32.totalorder %v4864_v14, %v5077_v8 }
  0xe2   :  { %366 = vrot.lane.b32.xlu1 %v5061_v59, %s4716_s2  ;;  %v219_v11 = vmul.f32 %v5082_v10, %v4868_v16  ;;  %v5118_v49 = vsel %vm70_vm12, 1.0, %v6916_v3 }
  0xe3   :  { %v220_v50 = vmul.f32 %v5118_v49, %v4868_v16  ;;  %v1024_v21 = vmul.f32 %v5118_v49, %v4976_v40 }
  0xe4   :  { %v228_v12 = vsel %vm6908_vm14, %v219_v11, 0.0 }
  0xe5   :  { %229 = vadd.xlane.f32.xlu0 %v228_v12  ;;  %v232_v51 = vsel %vm6909_vm13, %v220_v50, 0.0  ;;  %vm89_vm13 = vcmp.gt.s32.totalorder %v4832_v4, %v5077_v8 }
  0xe7   :  { %v4590_v61 = vpop.eup %4589 }
  0xe8   :  { %v362_v62 = vadd.f32 1.0, %v4590_v61 }
  0xe9   :  { %226 = vadd.xlane.f32.xlu0 %v225_v18 }
  0xea   :  { %4591 = vrcp.f32 %v362_v62  ;;  %v5145_v62 = vsel %vm89_vm13, 1.0, %v6916_v3 }
  0xf7   :  { %v5065_v63 = vpop.eup %4591 }
  0xf8   :  { %380 = vperm.xlu1 %4583, %v5065_v63   ;;  %v6915_v27 = vsub.f32 1.0, %v5065_v63 }
 0x140   :  { %v5068_v2 = vpop.f32.mrf.mxu1 }
 0x142   :  { %v4338_v6 = vpop.f32.mrf.mxu1 }
 0x154   :  { %v367_v20 = vpop.permute.xlu1 %366 }
 0x155   :  { %v369_v32 = vmul.f32 %v5065_v63, %v367_v20 }
 0x16a   :  { %v344_v1 = vpop.xlane.xlu0 %343 }
 0x16b   :  { %vm345_vm11 = vcmp.eq.f32.partialorder %v5056_v57, %v344_v1 }
 0x16c   :  { %v5072_v5 = vsel %vm345_vm11, 1.0, %v6916_v3  ;;  %vm65_vm11 = vcmp.eq.s32.totalorder %v4832_v4, %v5077_v8 }
 0x16d   :  { %v372_v7 = vrot.slane %v5072_v5, 2  ;;  %v5097_v15 = vsel %vm65_vm11, 1.0, %v6916_v3  ;;  %vm6980_vm11 = vcmask 198658  }
 0x16e   :  { %v217_v17 = vmul.f32 %v5097_v15, %v4868_v16  ;;  %v1144_v53 = vsel %vm6980_vm11, %v5068_v2, inf  ;;  %v5125_v54 = vpop.xlane.xlu0 %229 }
 0x16f   :  { %373 = vrot.lane.b32.xlu1 %v372_v7, %s4716_s2 }
 0x170   :  { %v222_v19 = vsel %vm6908_vm14, %v217_v17, 0.0  ;;  %vm90_vm14 = vcmp.gt.s32.totalorder %v4905_v28, %v5077_v8 }
 0x171   :  { %223 = vadd.xlane.f32.xlu0 %v222_v19  ;;  %v5134_v56 = vsel %vm90_vm14, 1.0, %v6916_v3  ;;  %vm6982_vm14 = vmmov %vm6981_vm15  ;;  %v335_v19 = vrot.slane %v5056_v57, 1 }
 0x172   :  { %v5127_v55 = vpop.xlane.xlu0 %226  ;;  %vm6983_vm13 = vmmov %vm6982_vm14 }
 0x173   :  { %v5103_v23 = vpop.permute.xlu1 %380  ;;  %vm385_vm12 = vcmp.eq.f32.partialorder %v5127_v55, %v4868_v16 }
 0x174   :  { %v3940_v60 = vsel %vm385_vm12, 1.0, %v6916_v3  ;;  %vm6984_vm12 = vcmask 196608  }
 0x175   :  { %v417_v61 = vmul.f32 %v3940_v60, %v5134_v56 }
 0x177   :  { %v5149_v6 = vsel %vm6981_vm15, %v417_v61, -inf  ;;  %vm6985_vm15 = vmmov %vm6983_vm13 }
 0x1e1   :  { %v374_v30 = vpop.permute.xlu1 %373 }
 0x1e2   :  { %v376_v34 = vmul.f32 %v374_v30, %v6915_v27 }
 0x1e4   :  { %v377_v37 = vadd.f32 %v376_v34, %v369_v32  ;;  %v337_v34 = vadd.f32 %v335_v19, %v5061_v59  ;;  %v5171_v59 = vsub.s32 2, %v4832_v4 }
 0x1e6   :  { %v383_v38 = vmul.f32 %v5103_v23, %v377_v37 }
 0x1e8   :  { %v5111_v39 = vrot.slane %v383_v38, %v4847_v9 }
 0x1ea   :  { %612 = vrot.lane.b32.xlu1 %v5111_v39, %s4717_s18 }
 0x1fa   :  { %v5136_v58 = vpop.xlane.xlu0 %223 }
 0x1fb   :  { %vm384_vm11 = vcmp.eq.f32.partialorder %v5136_v58, %v4868_v16 }
 0x1fc   :  { %v3939_v1 = vsel %vm384_vm11, 1.0, %v6916_v3  ;;  %vm338_vm11 = vcmp.gt.f32.partialorder %v337_v34, 0.005 }
 0x1fd   :  { %v416_v7 = vmul.f32 %v3939_v1, %v5145_v62 }
 0x1ff   :  { %v5153_v11 = vsel %vm6982_vm14, %v416_v7, -inf  ;;  %vm6986_vm14 = vmmov %vm6983_vm13 }
 0x200   :  { %v424_v12 = vmax.f32 %v5153_v11, %v5149_v6  ;;  %v634_v11 = vld [vmem:[%s6887_s6 + $0x18] sm:$0x1] }
 0x20e   :  { %233 = vadd.xlane.f32.xlu1 %v232_v51  ;;  %v3937_v51 = vsel %vm338_vm11, 1.0, %v6916_v3 }
 0x20f   :  { %v350_v7 = vrot.slane %v3937_v51, 6 }
 0x212   :  { %1145 = vmin.xlane.f32.xlu1 %v1144_v53  ;;  %v353_v53 = vsub.f32 1.0, %v3937_v51 }
 0x214   :  { %v355_v61 = vrot.slane %v353_v53, 6 }
 0x25c   :  { %v613_v13 = vpop.permute.xlu1 %612 }
 0x25d   :  { %v616_v17 = vmul.f32 %v5092_v0, %v613_v13  ;;  %v618_v18 = vmul.f32 %v5118_v49, %v613_v13  ;;  %v617_v32 = vmul.f32 %v5082_v10, %v613_v13  ;;  %v615_v38 = vmul.f32 %v5097_v15, %v613_v13 }
 0x25f   :  { %v622_v20 = vsel %vm6983_vm13, %v616_v17, 0.0  ;;  %v628_v30 = vsel %vm6984_vm12, %v618_v18, 0.0  ;;  %v625_v37 = vsel %vm6985_vm15, %v617_v32, 0.0  ;;  %v619_v50 = vsel %vm6986_vm14, %v615_v38, 0.0 }
 0x260   :  { %623 = vadd.xlane.f32.xlu1 %v622_v20  ;;  %629 = vadd.xlane.f32.xlu0 %v628_v30  ;;  %v348_v17 = vsub.f32 1.0, %v5056_v57  ;;  %v357_v18 = vmul.f32 %v355_v61, %v5056_v57  ;;  %v594_v30 = vrot.slane %v5072_v5, %v5171_v59  ;;  %vm386_vm13 = vcmp.eq.f32.partialorder %v5125_v54, %v4868_v16 }
 0x261   :  { %vm80_vm12 = vcmp.lt.s32.totalorder %v4864_v14, %v5077_v8  ;;  %vm79_vm15 = vcmp.lt.s32.totalorder %v4891_v24, %v5077_v8  ;;  %v5186_v32 = vsel %vm386_vm13, 1.0, %v6916_v3  ;;  %vm78_vm14 = vcmp.lt.s32.totalorder %v4905_v28, %v5077_v8 }
 0x262   :  { %v352_v20 = vmul.f32 %v350_v7, %v348_v17  ;;  %6987 = vst [vmem:[#allocation10_spill] sm:$0xff] %v5186_v32  ;;  %v5189_v34 = vsel %vm80_vm12, 1.0, %v6916_v3  ;;  %v596_v5 = vmul.f32 %v5092_v0, %v594_v30  ;;  %v5207_v53 = vsel %vm78_vm14, 1.0, %v6916_v3 }
 0x263   :  { %vm6989_vm13 = vcmask 196608   ;;  %vm6990_vm12 = vcmask 203776   ;;  %v397_v7 = vmul.f32 %v3940_v60, %v5207_v53  ;;  %v597_v60 = vmul.f32 %v5082_v10, %v594_v30 }
 0x264   :  { %626 = vadd.xlane.f32.xlu0 %v625_v37  ;;  %v358_v19 = vadd.f32 %v357_v18, %v352_v20  ;;  %v5192_v37 = vsel %vm79_vm15, 1.0, %v6916_v3  ;;  %vm6991_vm15 = vmmov %vm6990_vm12  ;;  %v598_v20 = vmul.f32 %v5118_v49, %v594_v30 }
 0x265   :  { %v398_v51 = vmul.f32 %v5186_v32, %v5192_v37  ;;  %vm6992_vm1 = vmmov %vm6990_vm12 }
 0x266   :  { %v492_v13 = vrot.slane %v358_v19, %v5171_v59  ;;  %v403_v17 = vsel %vm6992_vm1, %v397_v7, -inf  ;;  %vm6993_vm14 = vmmov %vm6989_vm13 }
 0x267   :  { %v406_v28 = vsel %vm6991_vm15, %v398_v51, -inf  ;;  %v595_v51 = vmul.f32 %v5097_v15, %v594_v30  ;;  %vm6912_vm15 = vcmp.eq.s32.totalorder %v4832_v4, 0 }
 0x268   :  { %620 = vadd.xlane.f32.xlu0 %v619_v50 }
 0x27e   :  { %494 = vrot.lane.b32.xlu0 %v492_v13, %s4716_s2  ;;  %v608_v13 = vsel %vm6993_vm14, %v598_v20, 0.0 }
 0x297   :  { %v5183_v57 = vpop.xlane.xlu1 %233 }
 0x298   :  { %vm387_vm11 = vcmp.eq.f32.partialorder %v5183_v57, %v4868_v16  ;;  %v602_v16 = vsel %vm6990_vm12, %v596_v5, 0.0  ;;  %vm6995_vm12 = vmmov %vm6992_vm1 }
 0x299   :  { %v5200_v38 = vsel %vm387_vm11, 1.0, %v6916_v3  ;;  %vm77_vm11 = vcmp.lt.s32.totalorder %v4832_v4, %v5077_v8 }
 0x29a   :  { %6988 = vst [vmem:[#allocation11_spill] sm:$0xff] %v5200_v38  ;;  %v399_v50 = vmul.f32 %v5200_v38, %v5189_v34  ;;  %v5217_v18 = vsel %vm77_vm11, 1.0, %v6916_v3 }
 0x29b   :  { %v396_v19 = vmul.f32 %v3939_v1, %v5217_v18  ;;  %v5229_v1 = vrot.slane %v5053_v52, %v4847_v9 }
 0x29c   :  { %v409_v61 = vsel %vm6989_vm13, %v399_v50, -inf  ;;  %vm6994_vm13 = vmmov %vm6992_vm1  ;;  %v605_v50 = vsel %vm6995_vm12, %v597_v60, 0.0 }
 0x29d   :  { %410 = vmax.xlane.f32.xlu1 %v409_v61  ;;  %603 = vadd.xlane.f32.xlu0 %v602_v16  ;;  %v400_v5 = vsel %vm6994_vm13, %v396_v19, -inf  ;;  %v599_v61 = vsel %vm6992_vm1, %v595_v51, 0.0  ;;  %v1146_v16 = vpop.xlane.xlu1 %1145  ;;  %vm507_vm13 = vcmask 1040384  }
 0x29e   :  { %vm1147_vm11 = vcmp.eq.f32.partialorder %v5068_v2, %v1146_v16 }
 0x2a1   :  { %407 = vmax.xlane.f32.xlu1 %v406_v28 }
 0x2a5   :  { %404 = vmax.xlane.f32.xlu1 %v403_v17 }
 0x2a9   :  { %609 = vadd.xlane.f32.xlu1 %v608_v13 }
 0x2ad   :  { %401 = vmax.xlane.f32.xlu1 %v400_v5 }
 0x2b1   :  { %606 = vadd.xlane.f32.xlu1 %v605_v50  ;;  %v5243_v50 = vadd.f32 1.0, %v5068_v2 }
 0x2b3   :  { %v1162_v51 = vrot.slane %v5243_v50, 7 }
 0x2b5   :  { %600 = vadd.xlane.f32.xlu1 %v599_v61  ;;  %v5250_v61 = vsel %vm1147_vm11, 1.0, %v6916_v3 }
 0x2e9   :  { %v624_v28 = vpop.xlane.xlu1 %623  ;;  %v630_v7 = vpop.xlane.xlu0 %629 }
 0x2ea   :  { %v648_v17 = vmul.f32 %v5229_v1, %v624_v28  ;;  %v650_v5 = vmul.f32 %v5229_v1, %v630_v7  ;;  %v1168_v28 = vrot.slane %v5250_v61, 1  ;;  %v5256_v7 = vcvt.s32.f32 %v5077_v8 }
 0x2ec   :  { %657 = vrot.lane.b32.xlu0 %v648_v17, %s4713_s20  ;;  %vm437_vm14 = vcmp.eq.f32.partialorder %v5256_v7, %v5183_v57  ;;  %vm436_vm12 = vcmp.eq.f32.partialorder %v5256_v7, %v5125_v54  ;;  %vm435_vm11 = vcmp.eq.f32.partialorder %v5256_v7, %v5127_v55 }
 0x2ed   :  { %v627_v20 = vpop.xlane.xlu0 %626  ;;  %v5272_v57 = vsel %vm436_vm12, 1.0, %v6916_v3  ;;  %vm434_vm12 = vcmp.eq.f32.partialorder %v5256_v7, %v5136_v58 }
 0x2ee   :  { %v649_v60 = vmul.f32 %v5229_v1, %v627_v20  ;;  %v5261_v20 = vsel %vm437_vm14, 1.0, %v6916_v3  ;;  %vm6996_vm14 = vmmov %vm6992_vm1 }
 0x2f1   :  { %v621_v19 = vpop.xlane.xlu0 %620 }
 0x2f5   :  { %v495_v13 = vpop.permute.xlu0 %494 }
 0x2f6   :  { %v497_v30 = vsel %vm6912_vm15, %v5111_v39, %v495_v13  ;;  %v647_v39 = vmul.f32 %v5229_v1, %v621_v19  ;;  %vm6998_vm15 = vcmask 203776  }
 0x2f7   :  { %503 = vrot.lane.b32.xlu1 %v497_v30, %s4717_s18  ;;  %v1023_v30 = vmul.f32 %v5082_v10, %v4976_v40 }
 0x2fb   :  { %661 = vrot.lane.b32.xlu1 %v650_v5, %s4713_s20  ;;  %v1022_v5 = vmul.f32 %v5092_v0, %v4976_v40 }
 0x2ff   :  { %659 = vrot.lane.b32.xlu1 %v649_v60, %s4713_s20 }
 0x303   :  { %1163 = vrot.lane.b32.xlu1 %v1162_v51, %s4716_s2  ;;  %v1031_v51 = vsel %vm6992_vm1, %v1023_v30, 0.0  ;;  %vm92_vm1 = vcmp.gt.s32.totalorder %v4864_v14, %v5077_v8 }
 0x307   :  { %655 = vrot.lane.b32.xlu1 %v647_v39, %s4713_s20 }
 0x30b   :  { %1169 = vrot.lane.b32.xlu1 %v1168_v28, %s4716_s2  ;;  %1032 = vadd.xlane.f32.xlu0 %v1031_v51  ;;  %v1028_v28 = vsel %vm6996_vm14, %v1022_v5, 0.0  ;;  %v5293_v5 = vsel %vm434_vm12, 1.0, %v6916_v3  ;;  %v5297_v51 = vsel %vm92_vm1, 1.0, %v6916_v3  ;;  %vm6997_vm14 = vcmask 196608   ;;  %vm7000_vm12 = vmmov %vm6998_vm15 }
 0x30c   :  { %v419_v58 = vmul.f32 %v5200_v38, %v5297_v51  ;;  %vm7009_vm1 = vmmov 0  }
 0x30f   :  { %1029 = vadd.xlane.f32.xlu0 %v1028_v28 }
 0x326   :  { %v411_v16 = vpop.xlane.xlu1 %410 }
 0x327   :  { %v415_v17 = vsub.f32 1.0, %v411_v16 }
 0x329   :  { %v501_v19 = vmul.f32 %v5261_v20, %v415_v17  ;;  %v5281_v17 = vsel %vm435_vm11, 1.0, %v6916_v3  ;;  %vm91_vm11 = vcmp.gt.s32.totalorder %v4891_v24, %v5077_v8  ;;  %v423_v24 = vsel %vm6997_vm14, %v419_v58, -inf }
 0x32a   :  { %v408_v13 = vpop.xlane.xlu1 %407 }
 0x32b   :  { %v414_v60 = vsub.f32 1.0, %v408_v13  ;;  %4290 = vmatpush3.msk.msra.mxu0 %vm507_vm13, %v501_v19 }
 0x32c   :  { %4291 = vmatprep.subr.mxu0 %v6916_v3 }
 0x32d   :  { %v500_v54 = vmul.f32 %v5272_v57, %v414_v60 }
 0x32e   :  { %v405_v39 = vpop.xlane.xlu1 %404 }
 0x32f   :  { %v413_v16 = vsub.f32 1.0, %v405_v39  ;;  %4292 = vmatpush3.msra.mxu0 %v500_v54  ;;  %v5300_v54 = vsel %vm91_vm11, 1.0, %v6916_v3 }
 0x330   :  { %4293 = vmatprep.subr.mxu0 %v6916_v3  ;;  %v418_v14 = vmul.f32 %v5186_v32, %v5300_v54  ;;  %v6999_v32 = vmov 0.0  }
 0x331   :  { %v499_v19 = vmul.f32 %v5281_v17, %v413_v16  ;;  %v5316_v58 = vsel %vm4954_vm9, 1.0, %v6999_v32  ;;  %v5358_v33 = vsel %vm4913_vm5, 1.0, %v6999_v32  ;;  %v5371_v29 = vsel %vm4899_vm4, 1.0, %v6999_v32 }
 0x332   :  { %v610_v13 = vpop.xlane.xlu1 %609  ;;  %v422_v39 = vsel %vm6998_vm15, %v418_v14, -inf  ;;  %v5393_v22 = vsel %vm4880_vm2, 1.0, %v6999_v32  ;;  %vm7010_vm2 = vmmov %vm6997_vm14 }
 0x333   :  { %4294 = vmatpush3.msra.mxu0 %v499_v19  ;;  %v425_v28 = vmax.f32 %v422_v39, %v423_v24  ;;  %v638_v14 = vsub.f32 1.0, %v610_v13  ;;  %vm7012_vm14 = vmmov %vm7010_vm2 }
 0x334   :  { %4295 = vmatprep.subr.mxu0 %v6916_v3 }
 0x335   :  { %v426_v16 = vmax.f32 %v424_v12, %v425_v28  ;;  %v642_v12 = vmul.f32 %v638_v14, %v634_v11  ;;  %v631_v11 = vld [vmem:[%s6887_s6] sm:$0xff] }
 0x336   :  { %v402_v55 = vpop.xlane.xlu1 %401 }
 0x337   :  { %v412_v30 = vsub.f32 1.0, %v402_v55  ;;  %v427_v19 = vrot.slane %v426_v16, 4 }
 0x339   :  { %v498_v60 = vmul.f32 %v5293_v5, %v412_v30  ;;  %v428_v55 = vmax.f32 %v426_v16, %v427_v19  ;;  %v632_v16 = vld [vmem:[%s6887_s6 + $0x8] sm:$0xff] }
 0x33a   :  { %v607_v27 = vpop.xlane.xlu1 %606 }
 0x33b   :  { %4296 = vmatpush3.msra.mxu0 %v498_v60  ;;  %v429_v30 = vrot.slane %v428_v55, 2 }
 0x33d   :  { %v430_v25 = vmax.f32 %v428_v55, %v429_v30 }
 0x33e   :  { %v601_v38 = vpop.xlane.xlu1 %600 }
 0x33f   :  { %v431_v60 = vrot.slane %v430_v25, 1  ;;  %v635_v14 = vsub.f32 1.0, %v601_v38  ;;  %v5344_v38 = vsel %vm4935_vm7, 1.0, %v6999_v32  ;;  %vm7002_vm7 = vmmov %vm7000_vm12 }
 0x341   :  { %v432_v3 = vmax.f32 %v430_v25, %v431_v60  ;;  %v604_v25 = vpop.xlane.xlu0 %603 }
 0x342   :  { %v636_v13 = vsub.f32 1.0, %v604_v25  ;;  %v639_v25 = vmul.f32 %v635_v14, %v631_v11  ;;  %v1034_v11 = vsel %vm7010_vm2, %v1024_v21, 0.0 }
 0x343   :  { %v5311_v8 = vsub.f32 1.0, %v432_v3  ;;  %v637_v3 = vsub.f32 1.0, %v607_v27 }
 0x344   :  { %v640_v27 = vmul.f32 %v636_v13, %v632_v16  ;;  %v5351_v13 = vsel %vm4925_vm6, 1.0, %v6999_v32  ;;  %vm7003_vm6 = vmmov %vm7002_vm7 }
 0x345   :  { %v695_v6 = vmul.f32 %v5316_v58, %v5311_v8  ;;  %v641_v19 = vmul.f32 %v637_v3, %v633_v36  ;;  %v5339_v3 = vsel %vm4945_vm8, 1.0, %v6999_v32  ;;  %v697_v35 = vmul.f32 %v5344_v38, %v5311_v8  ;;  %vm7004_vm5 = vmmov %vm7003_vm6 }
 0x346   :  { %v696_v36 = vmul.f32 %v5339_v3, %v5311_v8  ;;  %vm7005_vm8 = vmmov %vm7004_vm5 }
 0x35e   :  { %v658_v55 = vpop.permute.xlu0 %657 }
 0x369   :  { %v504_v24 = vpop.permute.xlu1 %503 }
 0x36a   :  { %4298 = vmatmul.mubr.msk.f32.vlgmr.msra.gmra.mxu0 %vm6998_vm15, %v504_v24  ;;  %v668_v24 = vadd.f32 %v658_v55, %v640_v27  ;;  %v699_v27 = vmul.f32 %v5358_v33, %v5311_v8 }
 0x36b   :  { %4308 = vmatprep.mubr.msk.f32.mxu0 %vm7000_vm12, %v695_v6 }
 0x36d   :  { %v662_v39 = vpop.permute.xlu1 %661 }
 0x36e   :  { %v670_v28 = vadd.f32 %v662_v39, %v642_v12 }
 0x370   :  { %4300 = vmatprep.subr.msk.mxu0 %vm507_vm13, %v670_v28 }
 0x371   :  { %v660_v30 = vpop.permute.xlu1 %659  ;;  %4301 = vmatpush3.msk.msra.mxu0 %vm507_vm13, %v670_v28 }
 0x372   :  { %v669_v60 = vadd.f32 %v660_v30, %v641_v19  ;;  %v7001_v19 = vsub.f32 1.0, %v5065_v63  ;;  %v698_v30 = vmul.f32 %v5351_v13, %v5311_v8 }
 0x374   :  { %4302 = vmatprep.subr.mxu0 %v669_v60 }
 0x375   :  { %v1164_v6 = vpop.permute.xlu1 %1163  ;;  %4303 = vmatpush3.msra.mxu0 %v669_v60  ;;  %v1276_v60 = vsub.s32 1, %v4832_v4 }
 0x376   :  { %4304 = vmatprep.subr.mxu0 %v668_v24  ;;  %v1166_v16 = vmul.f32 %v5065_v63, %v1164_v6  ;;  %v5378_v63 = vsel %vm4885_vm3, 1.0, %v6999_v32  ;;  %vm7006_vm3 = vmmov %vm7004_vm5 }
 0x377   :  { %4305 = vmatpush3.msra.mxu0 %v668_v24  ;;  %v700_v24 = vmul.f32 %v5371_v29, %v5311_v8  ;;  %v701_v6 = vmul.f32 %v5378_v63, %v5311_v8  ;;  %vm7007_vm4 = vmmov %vm7006_vm3 }
 0x378   :  { %vm7008_vm9 = vmmov %vm7006_vm3 }
 0x379   :  { %v656_v12 = vpop.permute.xlu1 %655  ;;  %vm7011_vm11 = vmmov %vm7006_vm3 }
 0x37a   :  { %v667_v39 = vadd.f32 %v656_v12, %v639_v25  ;;  %v1021_v25 = vmul.f32 %v5097_v15, %v4976_v40  ;;  %vm7013_vm15 = vmmov %vm7006_vm3 }
 0x37c   :  { %4306 = vmatprep.subr.mxu0 %v667_v39  ;;  %v1025_v12 = vsel %vm7011_vm11, %v1021_v25, 0.0 }
 0x37d   :  { %v1170_v28 = vpop.permute.xlu1 %1169  ;;  %4307 = vmatpush3.msra.mxu0 %v667_v39  ;;  %v1138_v39 = vrot.slane %v5068_v2, 1 }
 0x37e   :  { %v1172_v55 = vmul.f32 %v1170_v28, %v7001_v19  ;;  %4309 = vmatmul.mubr.msk.f32.vlgmr.msra.gmra.mxu0 %vm7002_vm7, %v696_v36  ;;  %4339 = vmatprep.subr.mxu0 %v6999_v32  ;;  %vm449_vm7 = vcmask 516096  }
 0x37f   :  { %4311 = vmatprep.mubr.msk.f32.mxu0 %vm7003_vm6, %v697_v35  ;;  %v5417_v35 = vrot.slane %v5250_v61, %v5171_v59  ;;  %vm7014_vm6 = vmmov %vm7006_vm3 }
 0x380   :  { %v1173_v31 = vadd.f32 %v1172_v55, %v1166_v16  ;;  %v1140_v16 = vadd.f32 %v1138_v39, %v5243_v50 }
 0x381   :  { %v1396_v61 = vmul.f32 %v5118_v49, %v5417_v35  ;;  %v1395_v25 = vmul.f32 %v5082_v10, %v5417_v35 }
 0x382   :  { %v1174_v14 = vmul.f32 %v1173_v31, %v5103_v23  ;;  %4312 = vmatmul.mubr.msk.f32.gmra.mxu0 %vm7004_vm5, %v698_v30  ;;  %v702_v23 = vmul.f32 %v5393_v22, %v5311_v8  ;;  %vm1141_vm12 = vcmp.gt.f32.partialorder %v1140_v16, 0.005  ;;  %vm7015_vm5 = vmmov %vm7006_vm3 }
 0x383   :  { %4314 = vmatprep.mubr.msk.f32.mxu0 %vm7005_vm8, %v699_v27  ;;  %v3975_v50 = vsel %vm1141_vm12, 1.0, %v6999_v32  ;;  %vm7016_vm8 = vcmask 523264  }
 0x384   :  { %v5386_v26 = vrot.slane %v1174_v14, %v1276_v60  ;;  %v1152_v16 = vrot.slane %v3975_v50, 6 }
 0x386   :  { %1410 = vrot.lane.b32.xlu1 %v5386_v26, %s4717_s18  ;;  %4315 = vmatmul.mubr.msk.f32.gmra.mxu0 %vm7006_vm3, %v700_v24  ;;  %v450_v24 = vsel %vm449_vm7, %v5261_v20, -inf  ;;  %vm7017_vm3 = vmmov %vm7016_vm8 }
 0x387   :  { %4317 = vmatprep.mubr.msk.f32.mxu0 %vm7007_vm4, %v701_v6  ;;  %v448_v6 = vsel %vm7016_vm8, %v5272_v57, -inf  ;;  %vm7018_vm4 = vmmov %vm7017_vm3 }
 0x388   :  { %v446_v21 = vsel %vm7018_vm4, %v5293_v5, -inf }
 0x38a   :  { %4318 = vmatmul.mubr.msk.f32.gmra.mxu0 %vm7008_vm9, %v702_v23  ;;  %v447_v23 = vsel %vm7017_vm3, %v5281_v17, -inf  ;;  %vm7019_vm9 = vmmov %vm7010_vm2 }
 0x38b   :  { %4347 = vmatprep.mubr.msk.f32.mxu0 %vm7009_vm1, %v6999_v32  ;;  %v451_v39 = vmax.f32 %v446_v21, %v447_v23  ;;  %vm7020_vm2 = vmmov %vm7015_vm5 }
 0x38c   :  { %vm7026_vm3 = vmmov %vm7020_vm2 }
 0x3aa   :  { %1035 = vadd.xlane.f32.xlu1 %v1034_v11  ;;  %v1406_v11 = vsel %vm7019_vm9, %v1396_v61, 0.0 }
 0x3ae   :  { %1026 = vadd.xlane.f32.xlu1 %v1025_v12  ;;  %v1155_v12 = vsub.f32 1.0, %v3975_v50  ;;  %v207_v50 = vld [vmem:[%s6885_s4 + $0x1] sm:$0x1] }
 0x3f8   :  { %v1411_v8 = vpop.permute.xlu1 %1410 }
 0x3f9   :  { %v1416_v36 = vmul.f32 %v5118_v49, %v1411_v8  ;;  %v1415_v28 = vmul.f32 %v5082_v10, %v1411_v8  ;;  %v1414_v31 = vmul.f32 %v5092_v0, %v1411_v8  ;;  %v1413_v30 = vmul.f32 %v5097_v15, %v1411_v8 }
 0x3fa   :  { %v452_v8 = vmax.f32 %v448_v6, %v450_v24 }
 0x3fb   :  { %v1426_v19 = vsel %vm7012_vm14, %v1416_v36, 0.0  ;;  %v1423_v55 = vsel %vm7013_vm15, %v1415_v28, 0.0  ;;  %v1420_v27 = vsel %vm7014_vm6, %v1414_v31, 0.0  ;;  %v1417_v14 = vsel %vm7015_vm5, %v1413_v30, 0.0  ;;  %vm7021_vm14 = vmmov %vm7020_vm2 }
 0x3fc   :  { %1427 = vadd.xlane.f32.xlu0 %v1426_v19  ;;  %1424 = vadd.xlane.f32.xlu1 %v1423_v55  ;;  %v1403_v36 = vsel %vm7020_vm2, %v1395_v25, 0.0  ;;  %v1150_v28 = vsub.f32 1.0, %v5068_v2  ;;  %v1157_v19 = vrot.slane %v1155_v12, 6  ;;  %v453_v17 = vmax.f32 %v451_v39, %v452_v8  ;;  %v5453_v8 = vpop.xlane.xlu0 %1032  ;;  %vm7023_vm6 = vmmov %vm7020_vm2 }
 0x3fd   :  { %vm1177_vm11 = vcmp.eq.f32.partialorder %v5453_v8, %v4976_v40  ;;  %vm7024_vm5 = vmmov %vm7019_vm9 }
 0x3fe   :  { %v1154_v55 = vmul.f32 %v1152_v16, %v1150_v28  ;;  %v1159_v5 = vmul.f32 %v1157_v19, %v5068_v2  ;;  %v454_v31 = vrot.slane %v453_v17, 4  ;;  %v208_v2 = vld [vmem:[%s6885_s4 + $0x2] sm:$0x1]  ;;  %v481_v19 = vsel %vm7021_vm14, %v5393_v22, -inf  ;;  %vm7025_vm8 = vmmov %vm7024_vm5 }
 0x3ff   :  { %vm7027_vm9 = vmmov %vm7020_vm2 }
 0x400   :  { %1421 = vadd.xlane.f32.xlu0 %v1420_v27  ;;  %1418 = vadd.xlane.f32.xlu1 %v1417_v14  ;;  %v1160_v30 = vadd.f32 %v1159_v5, %v1154_v55  ;;  %v455_v27 = vmax.f32 %v453_v17, %v454_v31  ;;  %v5461_v16 = vpop.xlane.xlu0 %1029  ;;  %v5472_v55 = vsel %vm1177_vm11, 1.0, %v6999_v32  ;;  %vm7028_vm11 = vmmov %vm7020_vm2 }
 0x401   :  { %vm1176_vm15 = vcmp.eq.f32.partialorder %v5461_v16, %v4976_v40  ;;  %7022 = vst [vmem:[#allocation12_spill] sm:$0xff] %v5472_v55  ;;  %v1209_v5 = vmul.f32 %v5472_v55, %v5300_v54  ;;  %v1394_v54 = vmul.f32 %v5092_v0, %v5417_v35  ;;  %vm7029_vm14 = vmmov %vm7020_vm2 }
 0x402   :  { %v1281_v14 = vrot.slane %v1160_v30, %v5171_v59  ;;  %v456_v61 = vrot.slane %v455_v27, 2  ;;  %v3978_v22 = vsel %vm1176_vm15, 1.0, %v6999_v32  ;;  %vm7030_vm15 = vmmov %vm7020_vm2 }
 0x404   :  { %1407 = vadd.xlane.f32.xlu1 %v1406_v11  ;;  %v457_v24 = vmax.f32 %v455_v27, %v456_v61  ;;  %v469_v27 = vsel %vm7023_vm6, %v5351_v13, -inf  ;;  %v1208_v61 = vmul.f32 %v3978_v22, %v5134_v56  ;;  %v1189_v56 = vmul.f32 %v5472_v55, %v5192_v37  ;;  %vm7032_vm6 = vmmov %vm7020_vm2 }
 0x406   :  { %v458_v6 = vrot.slane %v457_v24, 1  ;;  %v1212_v13 = vsel %vm7027_vm9, %v1208_v61, -inf  ;;  %vm7038_vm9 = vcmp.eq.s32.totalorder %v4832_v4, 0 }
 0x408   :  { %1404 = vadd.xlane.f32.xlu1 %v1403_v36  ;;  %v459_v23 = vmax.f32 %v457_v24, %v458_v6 }
 0x40a   :  { %v581_v21 = vsub.f32 1.0, %v459_v23 }
 0x40c   :  { %v582_v11 = vmul.f32 %v581_v21, %v207_v50  ;;  %v584_v59 = vmul.f32 %v581_v21, %v208_v2  ;;  %v1213_v21 = vsel %vm7026_vm3, %v1209_v5, -inf  ;;  %v1188_v5 = vmul.f32 %v3978_v22, %v5207_v53  ;;  %vm7035_vm3 = vmmov %vm7020_vm2 }
 0x416   :  { %1283 = vrot.lane.b32.xlu0 %v1281_v14, %s4716_s2  ;;  %s4726_s2 = smov 126  }
 0x42a   :  { %v577_v25 = vpop.f32.mrf.mxu0 }
 0x42b   :  { %v5451_v12 = vadd.f32 %v582_v11, %v577_v25  ;;  %v586_v39 = vrot.slane %v577_v25, 1  ;;  %v1400_v11 = vsel %vm7020_vm2, %v1394_v54, 0.0 }
 0x42c   :  { %v4299_v36 = vpop.f32.mrf.mxu0 }
 0x42d   :  { %v5455_v28 = vadd.f32 %v586_v39, %v584_v59  ;;  %589 = vst.msk [vmem:[#allocation4 + $0x1] sm:$0x1] %vm449_vm7, %v5451_v12  ;;  %v1393_v36 = vmul.f32 %v5097_v15, %v5417_v35  ;;  %v5516_v35 = vsel %vm5038_vm10, 1.0, %v6999_v32  ;;  %vm7037_vm10 = vmmov %vm7020_vm2 }
 0x42f   :  { %590 = vst.msk [vmem:[#allocation4 + $0x2] sm:$0x1] %vm449_vm7, %v5455_v28 }
 0x433   :  { %v5469_v17 = vpop.xlane.xlu1 %1035 }
 0x434   :  { %vm1178_vm12 = vcmp.eq.f32.partialorder %v5469_v17, %v4976_v40 }
 0x435   :  { %v5479_v31 = vsel %vm1178_vm12, 1.0, %v6999_v32  ;;  %482 = vmax.xlane.f32.xlu0 %v481_v19  ;;  %vm7031_vm12 = vmmov %vm7020_vm2 }
 0x436   :  { %v1210_v30 = vmul.f32 %v5479_v31, %v5297_v51  ;;  %v1190_v14 = vmul.f32 %v5479_v31, %v5189_v34 }
 0x437   :  { %v5491_v24 = vpop.xlane.xlu1 %1026 }
 0x438   :  { %v1214_v6 = vsel %vm7024_vm5, %v1210_v30, -inf  ;;  %v1200_v23 = vsel %vm7025_vm8, %v1190_v14, -inf  ;;  %vm1175_vm4 = vcmp.eq.f32.partialorder %v5491_v24, %v4976_v40  ;;  %v1197_v40 = vsel %vm7029_vm14, %v1189_v56, -inf  ;;  %vm7033_vm5 = vmmov %vm7020_vm2 }
 0x439   :  { %470 = vmax.xlane.f32.xlu0 %v469_v27  ;;  %1201 = vmax.xlane.f32.xlu1 %v1200_v23  ;;  %v3977_v51 = vsel %vm1175_vm4, 1.0, %v6999_v32  ;;  %v1216_v2 = vmax.f32 %v1213_v21, %v1214_v6  ;;  %v1194_v14 = vsel %vm7031_vm12, %v1188_v5, -inf  ;;  %v478_v56 = vsel %vm7033_vm5, %v5378_v63, -inf  ;;  %vm7034_vm8 = vmmov %vm7020_vm2 }
 0x43a   :  { %v1207_v50 = vmul.f32 %v3977_v51, %v5145_v62  ;;  %v1397_v62 = vsel %vm7030_vm15, %v1393_v36, 0.0  ;;  %v1187_v61 = vmul.f32 %v3977_v51, %v5217_v18  ;;  %vm7036_vm4 = vmmov %vm7020_vm2  ;;  %v5534_v63 = vrot.slane %v5053_v52, %v1276_v60 }
 0x43b   :  { %v472_v48 = vsel %vm7036_vm4, %v5358_v33, -inf  ;;  %v463_v36 = vsel %vm7020_vm2, %v5339_v3, -inf  ;;  %vm1872_vm14 = vcmp.eq.s32.totalorder %v4832_v4, 1  ;;  %vm1228_vm15 = vcmp.eq.f32.partialorder %v5256_v7, %v5469_v17 }
 0x43c   :  { %v1211_v25 = vsel %vm7028_vm11, %v1207_v50, -inf  ;;  %v1191_v23 = vsel %vm7032_vm6, %v1187_v61, -inf  ;;  %v466_v50 = vsel %vm7037_vm10, %v5344_v38, -inf  ;;  %vm7039_vm11 = vmmov %vm7020_vm2  ;;  %v2101_v61 = vld [vmem:[%s6884_s3] sm:$0x1]  ;;  %vm1881_vm12 = vcmp.eq.s32.totalorder %v4832_v4, 2 }
 0x43d   :  { %1401 = vadd.xlane.f32.xlu1 %v1400_v11  ;;  %v1215_v59 = vmax.f32 %v1211_v25, %v1212_v13  ;;  %v475_v13 = vsel %vm7035_vm3, %v5371_v29, -inf  ;;  %v460_v5 = vsel %vm7039_vm11, %v5316_v58, -inf  ;;  %v2102_v3 = vcvt.s32.f32 %v2101_v61  ;;  %vm7043_vm10 = vmmov %vm7020_vm2 }
 0x43e   :  { %vm843_vm6 = vcmask 130048   ;;  %v5592_v17 = vsel %vm1228_vm15, 1.0, %v6999_v32  ;;  %vm1890_vm5 = vcmp.eq.s32.totalorder %v4832_v4, 3  ;;  %vm1226_vm3 = vcmp.eq.f32.partialorder %v5256_v7, %v5461_v16  ;;  %vm7048_vm11 = vmmov %vm7043_vm10 }
 0x43f   :  { %v1217_v39 = vmax.f32 %v1215_v59, %v1216_v2  ;;  %vm1225_vm4 = vcmp.eq.f32.partialorder %v5256_v7, %v5491_v24  ;;  %vm7047_vm2 = vnez %v6969_v44  ;;  %vm7050_vm15 = vnez %v6967_v43 }
 0x441   :  { %1198 = vmax.xlane.f32.xlu1 %v1197_v40  ;;  %v1218_v19 = vrot.slane %v1217_v39, 4 }
 0x443   :  { %v1219_v30 = vmax.f32 %v1217_v39, %v1218_v19  ;;  %v5548_v39 = vpop.f32.mrf.mxu0 }
 0x445   :  { %1398 = vadd.xlane.f32.xlu1 %v1397_v62  ;;  %v1220_v27 = vrot.slane %v1219_v30, 2  ;;  %v5552_v19 = vpop.f32.mrf.mxu0 }
 0x447   :  { %v1221_v54 = vmax.f32 %v1219_v30, %v1220_v27  ;;  %v4718_v30 = vmov 1966171168   ;;  %v4313_v27 = vpop.f32.mrf.mxu0 }
 0x448   :  { %v2105_v62 = vunpack.c.l.s4 %v4718_v30 }
 0x449   :  { %1195 = vmax.xlane.f32.xlu1 %v1194_v14  ;;  %v1222_v6 = vrot.slane %v1221_v54, 1  ;;  %v5556_v14 = vpop.f32.mrf.mxu0 }
 0x44b   :  { %v1223_v21 = vmax.f32 %v1221_v54, %v1222_v6 }
 0x44d   :  { %v5518_v22 = vsub.f32 1.0, %v1223_v21  ;;  %1192 = vmax.xlane.f32.xlu1 %v1191_v23  ;;  %v5566_v23 = vpop.f32.mrf.mxu0 }
 0x44f   :  { %v1495_v51 = vmul.f32 %v5516_v35, %v5518_v22  ;;  %v5569_v21 = vpop.f32.mrf.mxu0 }
 0x451   :  { %479 = vmax.xlane.f32.xlu1 %v478_v56  ;;  %4358 = vmatprep.mubr.msk.f32.mxu1 %vm7034_vm8, %v1495_v51  ;;  %v678_v51 = vld [vmem:[%s6886_s5 + $0x38] sm:$0xff]  ;;  %vm1227_vm8 = vcmp.eq.f32.partialorder %v5256_v7, %v5453_v8  ;;  %v853_v8 = vrot.slane %v5217_v18, 7 }
 0x455   :  { %476 = vmax.xlane.f32.xlu1 %v475_v13 }
 0x459   :  { %473 = vmax.xlane.f32.xlu1 %v472_v48 }
 0x45d   :  { %467 = vmax.xlane.f32.xlu1 %v466_v50  ;;  %v5578_v50 = vsel %vm1872_vm14, 1.0, %v6999_v32  ;;  %vm7049_vm14 = vmmov %vm7043_vm10 }
 0x45e   :  { %7040 = vst [vmem:[#allocation13_spill] sm:$0xff] %v5578_v50 }
 0x485   :  { %v1425_v2 = vpop.xlane.xlu1 %1424  ;;  %v1428_v11 = vpop.xlane.xlu0 %1427 }
 0x486   :  { %v1448_v25 = vmul.f32 %v5534_v63, %v1425_v2  ;;  %v1449_v29 = vmul.f32 %v5534_v63, %v1428_v11  ;;  %v4319_v11 = vpop.f32.mrf.mxu0 }
 0x488   :  { %1458 = vrot.lane.b32.xlu0 %v1448_v25, %s4713_s20  ;;  %1460 = vrot.lane.b32.xlu1 %v1449_v29, %s4713_s20 }
 0x489   :  { %v1422_v33 = vpop.xlane.xlu0 %1421  ;;  %v1419_v38 = vpop.xlane.xlu1 %1418 }
 0x48a   :  { %v1447_v59 = vmul.f32 %v5534_v63, %v1422_v33  ;;  %v1446_v52 = vmul.f32 %v5534_v63, %v1419_v38  ;;  %v674_v33 = vld [vmem:[%s6886_s5 + $0x18] sm:$0xff] }
 0x48c   :  { %1456 = vrot.lane.b32.xlu0 %v1447_v59, %s4713_s20 }
 0x48d   :  { %v1284_v40 = vpop.permute.xlu0 %1283  ;;  %v5561_v54 = vpop.xlane.xlu1 %1407 }
 0x48e   :  { %v1286_v60 = vsel %vm7038_vm9, %v5386_v26, %v1284_v40  ;;  %v2106_v26 = vunpack.c.0.s8 %v2105_v62  ;;  %vm7044_vm9 = vnez %v6973_v46 }
 0x48f   :  { %1292 = vrot.lane.b32.xlu1 %v1286_v60, %s4717_s18  ;;  %v1875_v60 = vmul.f32 %v5578_v50, %v5229_v1 }
 0x490   :  { %1454 = vrot.lane.b32.xlu0 %v1446_v52, %s4713_s20  ;;  %v5564_v6 = vsub.s32 %v2106_v26, %v4832_v4 }
 0x491   :  { %v5572_v56 = vpop.xlane.xlu1 %1404 }
 0x492   :  { %v2110_v58 = vrot.slane %v2102_v3, %v5564_v6  ;;  %v5614_v3 = vsel %vm1890_vm5, 1.0, %v6999_v32  ;;  %vm7052_vm5 = vmmov %vm7043_vm10 }
 0x493   :  { %7041 = vst [vmem:[#allocation14_spill] sm:$0xff] %v5614_v3 }
 0x494   :  { %v2117_v2 = vrot.slane %v2110_v58, %v5564_v6 }
 0x4af   :  { %464 = vmax.xlane.f32.xlu0 %v463_v36  ;;  %v5595_v36 = vsel %vm1881_vm12, 1.0, %v6999_v32  ;;  %vm7051_vm12 = vnez %v6965_v42 }
 0x4b0   :  { %v1884_v61 = vmul.f32 %v5595_v36, %v5229_v1 }
 0x4b3   :  { %461 = vmax.xlane.f32.xlu1 %v460_v5 }
 0x4be   :  { %v483_v13 = vpop.xlane.xlu0 %482 }
 0x4bf   :  { %v686_v48 = vsub.f32 1.0, %v483_v13  ;;  %v5628_v13 = vsel %vm1227_vm8, 1.0, %v6999_v32  ;;  %vm7053_vm8 = vmmov %vm7052_vm5 }
 0x4c1   :  { %v694_v25 = vmul.f32 %v686_v48, %v678_v51  ;;  %v1893_v51 = vmul.f32 %v5614_v3, %v5229_v1 }
 0x4c2   :  { %v1202_v29 = vpop.xlane.xlu1 %1201  ;;  %v471_v59 = vpop.xlane.xlu0 %470 }
 0x4c3   :  { %v5587_v38 = vadd.f32 %v4319_v11, %v694_v25  ;;  %v1206_v40 = vsub.f32 1.0, %v1202_v29  ;;  %v682_v52 = vsub.f32 1.0, %v471_v59  ;;  %v5639_v29 = vsel %vm1226_vm3, 1.0, %v6999_v32 }
 0x4c4   :  { %2118 = vrot.lane.b32.xlu1 %v2117_v2, %s4719_s22  ;;  %vm7054_vm3 = vnez %v6963_v41 }
 0x4c5   :  { %851 = vst.msk [vmem:[%s6894_s13 + $0x38] sm:$0xff] %vm843_vm6, %v5587_v38  ;;  %v1290_v5 = vmul.f32 %v5592_v17, %v1206_v40  ;;  %v690_v30 = vmul.f32 %v682_v52, %v674_v33  ;;  %1877 = vrot.lane.b32.xlu0 %v1875_v60, %s4720_s25  ;;  %v5645_v52 = vsel %vm1225_vm4, 1.0, %v6999_v32  ;;  %v5780_v42 = vsel %vm7054_vm3, 1.0, %v6999_v32  ;;  %vm7055_vm4 = vmmov %vm7052_vm5 }
 0x4c6   :  { %v5606_v62 = vpop.xlane.xlu1 %1401  ;;  %v1502_v41 = vmul.f32 %v5780_v42, %v5518_v22  ;;  %vm7064_vm3 = vcmask 523264  }
 0x4c7   :  { %v5608_v26 = vadd.f32 %v4313_v27, %v690_v30  ;;  %4340 = vmatpush3.msk.msra.mxu0 %vm507_vm13, %v1290_v5 }
 0x4c8   :  { %4341 = vmatprep.subr.mxu0 %v6999_v32 }
 0x4c9   :  { %847 = vst.msk [vmem:[%s6894_s13 + $0x18] sm:$0xff] %vm843_vm6, %v5608_v26  ;;  %1886 = vrot.lane.b32.xlu0 %v1884_v61, %s4721_s28  ;;  %v826_v61 = vpop.f32.mrf.mxu0 }
 0x4ca   :  { %v1199_v27 = vpop.xlane.xlu1 %1198 }
 0x4cb   :  { %v1205_v58 = vsub.f32 1.0, %v1199_v27 }
 0x4cd   :  { %v1289_v48 = vmul.f32 %v5628_v13, %v1205_v58  ;;  %1895 = vrot.lane.b32.xlu0 %v1893_v51, %s4722_s29 }
 0x4ce   :  { %v5633_v2 = vpop.xlane.xlu1 %1398 }
 0x4cf   :  { %4342 = vmatpush3.msra.mxu0 %v1289_v48 }
 0x4d0   :  { %4343 = vmatprep.subr.mxu0 %v6999_v32  ;;  %v677_v60 = vld [vmem:[%s6886_s5 + $0x30] sm:$0xff]  ;;  %v676_v27 = vld [vmem:[%s6886_s5 + $0x28] sm:$0xff] }
 0x4d1   :  { %854 = vrot.lane.b32.xlu0 %v853_v8, %s4723_s0 }
 0x4d2   :  { %v1196_v11 = vpop.xlane.xlu1 %1195 }
 0x4d3   :  { %v1204_v25 = vsub.f32 1.0, %v1196_v11 }
 0x4d5   :  { %v1288_v33 = vmul.f32 %v5639_v29, %v1204_v25 }
 0x4d6   :  { %v1193_v59 = vpop.xlane.xlu1 %1192 }
 0x4d7   :  { %v1203_v40 = vsub.f32 1.0, %v1193_v59  ;;  %4344 = vmatpush3.msra.mxu0 %v1288_v33  ;;  %v6922_v33 = vmov 2  }
 0x4d8   :  { %4345 = vmatprep.subr.mxu0 %v6999_v32  ;;  %4584 = vset.pattern.permute.xlu0 %v6922_v33 }
 0x4d9   :  { %v1287_v16 = vmul.f32 %v5645_v52, %v1203_v40  ;;  %4586 = vset.pattern.permute.xlu1 %v6922_v33 }
 0x4da   :  { %v480_v5 = vpop.xlane.xlu1 %479 }
 0x4db   :  { %v685_v30 = vsub.f32 1.0, %v480_v5  ;;  %4346 = vmatpush3.msra.mxu0 %v1287_v16 }
 0x4dc   :  { %4370 = vmatprep.subr.mxu0 %v6999_v32 }
 0x4dd   :  { %v693_v24 = vmul.f32 %v685_v30, %v677_v60 }
 0x4de   :  { %v477_v58 = vpop.xlane.xlu1 %476 }
 0x4df   :  { %v5656_v51 = vadd.f32 %v826_v61, %v693_v24  ;;  %v684_v48 = vsub.f32 1.0, %v477_v58  ;;  %v1436_v58 = vsub.f32 1.0, %v5572_v56 }
 0x4e1   :  { %850 = vst.msk [vmem:[%s6894_s13 + $0x30] sm:$0xff] %vm843_vm6, %v5656_v51  ;;  %v692_v8 = vmul.f32 %v684_v48, %v676_v27  ;;  %v3990_v27 = vld [vmem:[%s6887_s6 + $0x38] sm:$0x1]  ;;  %v3989_v48 = vld [vmem:[%s6887_s6 + $0x30] sm:$0xff]  ;;  %v2002_v43 = vmul.f32 %v5656_v51, %v5656_v51 }
 0x4e2   :  { %v474_v25 = vpop.xlane.xlu1 %473 }
 0x4e3   :  { %v5669_v59 = vadd.f32 %v5566_v23, %v692_v8  ;;  %v683_v40 = vsub.f32 1.0, %v474_v25 }
 0x4e6   :  { %v468_v5 = vpop.xlane.xlu1 %467 }
 0x4e7   :  { %v681_v24 = vsub.f32 1.0, %v468_v5 }
 0x4e8   :  { %v675_v11 = vld [vmem:[%s6886_s5 + $0x20] sm:$0xff] }
 0x4e9   :  { %849 = vst.msk [vmem:[%s6894_s13 + $0x28] sm:$0xff] %vm843_vm6, %v5669_v59  ;;  %v691_v16 = vmul.f32 %v683_v40, %v675_v11  ;;  %v3988_v40 = vld [vmem:[%s6887_s6 + $0x28] sm:$0xff] }
 0x4eb   :  { %v5680_v30 = vadd.f32 %v5569_v21, %v691_v16  ;;  %v1437_v21 = vsub.f32 1.0, %v5561_v54  ;;  %v1440_v16 = vmul.f32 %v3989_v48, %v1436_v58  ;;  %v5722_v48 = vsel %vm7044_vm9, 1.0, %v6999_v32  ;;  %vm7057_vm9 = vmmov %vm7055_vm4 }
 0x4ec   :  { %v1497_v46 = vmul.f32 %v5722_v48, %v5518_v22 }
 0x4ed   :  { %v1441_v8 = vmul.f32 %v3990_v27, %v1437_v21 }
 0x4f0   :  { %v673_v60 = vld [vmem:[%s6886_s5 + $0x10] sm:$0xff] }
 0x4f1   :  { %848 = vst.msk [vmem:[%s6894_s13 + $0x20] sm:$0xff] %vm843_vm6, %v5680_v30  ;;  %v689_v23 = vmul.f32 %v681_v24, %v673_v60  ;;  %v1434_v60 = vsub.f32 1.0, %v5633_v2  ;;  %v5716_v2 = vsel %vm5029_vm0, 1.0, %v6999_v32  ;;  %vm7045_vm0 = vnez %v6971_v45 }
 0x4f2   :  { %7042 = vst [vmem:[#allocation15_spill] sm:$0xff] %v5716_v2  ;;  %v1496_v47 = vmul.f32 %v5716_v2, %v5518_v22  ;;  %v5757_v45 = vsel %vm7050_vm15, 1.0, %v6999_v32  ;;  %vm6941_vm15 = vcmask 523265  }
 0x4f3   :  { %v5688_v61 = vadd.f32 %v5556_v14, %v689_v23  ;;  %v1435_v14 = vsub.f32 1.0, %v5606_v62  ;;  %v3987_v62 = vld [vmem:[%s6887_s6 + $0x20] sm:$0xff] }
 0x4f4   :  { %v1438_v27 = vmul.f32 %v3987_v62, %v1434_v60 }
 0x4f5   :  { %846 = vst.msk [vmem:[%s6894_s13 + $0x10] sm:$0xff] %vm843_vm6, %v5688_v61  ;;  %v1439_v56 = vmul.f32 %v3988_v40, %v1435_v14 }
 0x4fa   :  { %v1461_v11 = vpop.permute.xlu1 %1460  ;;  %v1459_v25 = vpop.permute.xlu0 %1458 }
 0x4fb   :  { %v1469_v54 = vadd.f32 %v1461_v11, %v1441_v8  ;;  %v1468_v5 = vadd.f32 %v1459_v25, %v1440_v16  ;;  %v5734_v8 = vsel %vm7045_vm0, 1.0, %v6999_v32  ;;  %v5741_v11 = vsel %vm7047_vm2, 1.0, %v6999_v32 }
 0x4fc   :  { %7046 = vst [vmem:[#allocation16_spill] sm:$0xff] %v5734_v8  ;;  %v2003_v25 = vmul.f32 %v5587_v38, %v5587_v38  ;;  %v1498_v44 = vmul.f32 %v5734_v8, %v5518_v22  ;;  %v1499_v40 = vmul.f32 %v5741_v11, %v5518_v22  ;;  %v1500_v16 = vmul.f32 %v5757_v45, %v5518_v22  ;;  %v672_v62 = vld [vmem:[%s6886_s5 + $0x8] sm:$0xff] }
 0x4fd   :  { %4350 = vmatprep.subr.msk.mxu1 %vm507_vm13, %v1469_v54  ;;  %vm7058_vm0 = vcmp.eq.s32.totalorder %v4832_v4, 0  ;;  %vm863_vm2 = vcmask 196744  }
 0x4fe   :  { %4351 = vmatpush3.msk.msra.mxu1 %vm507_vm13, %v1469_v54  ;;  %v1457_v24 = vpop.permute.xlu0 %1456  ;;  %v5765_v54 = vsel %vm7051_vm12, 1.0, %v6999_v32 }
 0x4ff   :  { %v1467_v23 = vadd.f32 %v1457_v24, %v1439_v56  ;;  %4352 = vmatprep.subr.mxu1 %v1468_v5  ;;  %v1501_v60 = vmul.f32 %v5765_v54, %v5518_v22  ;;  %v2000_v56 = vmul.f32 %v5680_v30, %v5680_v30  ;;  %v1999_v22 = vmul.f32 %v5608_v26, %v5608_v26 }
 0x500   :  { %4353 = vmatpush3.msra.mxu1 %v1468_v5  ;;  %v2001_v5 = vmul.f32 %v5669_v59, %v5669_v59  ;;  %v1998_v24 = vmul.f32 %v5688_v61, %v5688_v61 }
 0x501   :  { %v1293_v21 = vpop.permute.xlu1 %1292  ;;  %4354 = vmatprep.subr.mxu1 %v1467_v23 }
 0x502   :  { %4355 = vmatpush3.msra.mxu1 %v1467_v23  ;;  %v1455_v58 = vpop.permute.xlu0 %1454  ;;  %4348 = vmatmul.mubr.msk.f32.vlgmr.msra.gmra.mxu0 %vm7043_vm10, %v1293_v21  ;;  %vm7056_vm10 = vmmov %vm7055_vm4 }
 0x503   :  { %v1466_v14 = vadd.f32 %v1455_v58, %v1438_v27  ;;  %4371 = vmatpush3.xpose.msk.msra.mxu0 %vm843_vm6, %v5587_v38  ;;  %4386 = vmatprep.mubr.msk.f32.mxu0 %vm7009_vm1, %v6999_v32  ;;  %v671_v58 = vld [vmem:[%s6886_s5] sm:$0xff] }
 0x504   :  { %4372 = vmatprep.subr.mxu0 %v6999_v32 }
 0x505   :  { %4356 = vmatprep.subr.mxu1 %v1466_v14 }
 0x506   :  { %4357 = vmatpush3.msra.mxu1 %v1466_v14 }
 0x507   :  { %4373 = vmatpush3.xpose.msk.msra.mxu0 %vm843_vm6, %v5656_v51  ;;  %4359 = vmatmul.mubr.msk.f32.vlgmr.msra.gmra.mxu1 %vm7048_vm11, %v1496_v47  ;;  %v5826_v47 = vsel %vm7058_vm0, 1.0, %v6999_v32  ;;  %vm859_vm11 = vcmask 203913   ;;  %vm1000_vm0 = vcmask 57344  }
 0x508   :  { %4389 = vmatprep.subr.mxu1 %v6999_v32  ;;  %4361 = vmatprep.mubr.msk.f32.mxu1 %vm7049_vm14, %v1497_v46  ;;  %7059 = vst [vmem:[#allocation17_spill] sm:$0xff] %v5826_v47  ;;  %vm874_vm14 = vcmask 64512  }
 0x509   :  { %4390 = vmatpush3.xpose.msk.msra.mxu1 %vm843_vm6, %v2003_v25  ;;  %4374 = vmatprep.subr.mxu0 %v6999_v32 }
 0x50a   :  { %4391 = vmatprep.subr.mxu1 %v6999_v32 }
 0x50b   :  { %4375 = vmatpush3.xpose.msk.msra.mxu0 %vm843_vm6, %v5669_v59  ;;  %4362 = vmatmul.mubr.msk.f32.gmra.mxu1 %vm7052_vm5, %v1498_v44  ;;  %vm204_vm5 = vcmask 1040512  }
 0x50c   :  { %4364 = vmatprep.mubr.msk.f32.mxu1 %vm7053_vm8, %v1499_v40  ;;  %4376 = vmatprep.subr.mxu0 %v6999_v32  ;;  %205 = vst.msk [vmem:[#allocation4 + $0x3] sm:$0x1] %vm204_vm5, %v6999_v32  ;;  %vm6927_vm8 = vcmask 1046528  }
 0x50d   :  { %4392 = vmatpush3.xpose.msk.msra.mxu1 %vm843_vm6, %v2002_v43  ;;  %v1871_v43 = vmul.f32 %v5826_v47, %v5229_v1 }
 0x50e   :  { %4393 = vmatprep.subr.mxu1 %v6999_v32 }
 0x50f   :  { %4377 = vmatpush3.xpose.msk.msra.mxu0 %vm843_vm6, %v5680_v30  ;;  %4365 = vmatmul.mubr.msk.f32.gmra.mxu1 %vm7055_vm4, %v1500_v16  ;;  %vm7065_vm4 = vmmov %vm7064_vm3 }
 0x510   :  { %4367 = vmatprep.mubr.msk.f32.mxu1 %vm7056_vm10, %v1501_v60  ;;  %4378 = vmatprep.subr.mxu0 %v6999_v32  ;;  %vm7069_vm10 = vmmov %vm7064_vm3 }
 0x511   :  { %4394 = vmatpush3.xpose.msk.msra.mxu1 %vm843_vm6, %v2001_v5 }
 0x512   :  { %4395 = vmatprep.subr.mxu1 %v6999_v32 }
 0x513   :  { %4379 = vmatpush3.xpose.msk.msra.mxu0 %vm843_vm6, %v5608_v26  ;;  %4368 = vmatmul.mubr.msk.f32.gmra.mxu1 %vm7057_vm9, %v1502_v41  ;;  %vm7071_vm9 = vmmov %vm7064_vm3 }
 0x514   :  { %4380 = vmatprep.subr.mxu0 %v6999_v32  ;;  %4405 = vmatprep.mubr.msk.f32.mxu1 %vm7009_vm1, %v6999_v32 }
 0x515   :  { %4396 = vmatpush3.xpose.msk.msra.mxu1 %vm843_vm6, %v2000_v56  ;;  %v5848_v56 = vld [vmem:[%s6885_s4 + $0x3] sm:$0x1] }
 0x516   :  { %4397 = vmatprep.subr.mxu1 %v6999_v32 }
 0x517   :  { %4381 = vmatpush3.xpose.msk.msra.mxu0 %vm843_vm6, %v5688_v61 }
 0x518   :  { %4382 = vmatprep.subr.mxu0 %v6999_v32 }
 0x519   :  { %4398 = vmatpush3.xpose.msk.msra.mxu1 %vm843_vm6, %v1999_v22 }
 0x51a   :  { %4399 = vmatprep.subr.mxu1 %v6999_v32 }
 0x51d   :  { %4400 = vmatpush3.xpose.msk.msra.mxu1 %vm843_vm6, %v1998_v24  ;;  %v872_v24 = vrot.slane %v5848_v56, %v4847_v9 }
 0x51e   :  { %4401 = vmatprep.subr.mxu1 %v6999_v32 }
 0x538   :  { %v465_v23 = vpop.xlane.xlu0 %464 }
 0x539   :  { %v680_v21 = vsub.f32 1.0, %v465_v23  ;;  %v7060_v23 = vmov 1.0  }
 0x53b   :  { %v688_v27 = vmul.f32 %v680_v21, %v672_v62  ;;  %v7061_v21 = vld [vmem:[#allocation11_spill] sm:$0xff] }
 0x53c   :  { %v462_v14 = vpop.xlane.xlu1 %461  ;;  %v1878_v46 = vpop.permute.xlu0 %1877 }
 0x53d   :  { %v836_v25 = vadd.f32 %v5548_v39, %v688_v27  ;;  %v679_v44 = vsub.f32 1.0, %v462_v14  ;;  %v1880_v41 = vadd.f32 %v1878_v46, %v1871_v43 }
 0x53f   :  { %845 = vst.msk [vmem:[%s6894_s13 + $0x8] sm:$0xff] %vm843_vm6, %v836_v25  ;;  %v687_v40 = vmul.f32 %v679_v44, %v671_v58  ;;  %4383 = vmatpush3.xpose.msk.msra.mxu0 %vm843_vm6, %v836_v25  ;;  %v1997_v16 = vmul.f32 %v836_v25, %v836_v25  ;;  %v7062_v58 = vld [vmem:[#allocation10_spill] sm:$0xff] }
 0x540   :  { %v1887_v60 = vpop.permute.xlu0 %1886  ;;  %4384 = vmatprep.subr.mxu0 %v6999_v32 }
 0x541   :  { %v835_v5 = vadd.f32 %v5552_v19, %v687_v40  ;;  %4402 = vmatpush3.xpose.msk.msra.mxu1 %vm843_vm6, %v1997_v16  ;;  %v1889_v39 = vadd.f32 %v1887_v60, %v1880_v41  ;;  %v902_v40 = vrot.slane %v5451_v12, %v4847_v9 }
 0x542   :  { %4403 = vmatprep.subr.mxu1 %v6999_v32 }
 0x543   :  { %844 = vst.msk [vmem:[%s6894_s13] sm:$0xff] %vm843_vm6, %v835_v5  ;;  %4385 = vmatpush3.xpose.msk.msra.mxu0 %vm843_vm6, %v835_v5  ;;  %v1996_v1 = vmul.f32 %v835_v5, %v835_v5  ;;  %v903_v43 = vmul.f32 %v5272_v57, %v902_v40  ;;  %v904_v16 = vmul.f32 %v5261_v20, %v902_v40 }
 0x544   :  { %v1896_v19 = vpop.permute.xlu0 %1895  ;;  %4408 = vmatprep.subr.mxu0 %v5587_v38 }
 0x545   :  { %v5851_v22 = vadd.f32 %v1896_v19, %v1889_v39  ;;  %4404 = vmatpush3.xpose.msk.msra.mxu1 %vm843_vm6, %v1996_v1  ;;  %v5901_v39 = vld [vmem:[%s6890_s9] sm:$0x1] }
 0x546   :  { %4430 = vmatprep.subr.mxu1 %v6999_v32  ;;  %7063 = vst [vmem:[#allocation11_spill] sm:$0xff] %v5901_v39  ;;  %vm6940_vm12 = vcmp.gt.s32.totalorder %v5901_v39, 0 }
 0x547   :  { %4387 = vmatmul.mubr.msk.f32.vlgmr.msra.gmra.mxu0 %vm843_vm6, %v5851_v22 }
 0x548   :  { %4409 = vmatpush3.msra.mxu0 %v5587_v38  ;;  %v5860_v62 = vpop.permute.xlu0 %854  ;;  %4406 = vmatmul.mubr.msk.f32.vlgmr.msra.gmra.mxu1 %vm843_vm6, %v7060_v23  ;;  %v873_v38 = vmul.f32 %v5097_v15, %v872_v24 }
 0x549   :  { %4410 = vmatprep.subr.mxu0 %v5656_v51  ;;  %v858_v27 = vmul.f32 %v7061_v21, %v5860_v62  ;;  %v857_v14 = vmul.f32 %v7062_v58, %v5860_v62  ;;  %4438 = vmatprep.mubr.msk.f32.mxu1 %vm7009_vm1, %v6999_v32 }
 0x54a   :  { %4411 = vmatpush3.msra.mxu0 %v5656_v51  ;;  %v875_v51 = vsel %vm874_vm14, %v873_v38, 0.0 }
 0x54b   :  { %4412 = vmatprep.subr.mxu0 %v5669_v59  ;;  %v864_v46 = vsel %vm863_vm2, %v858_v27, -inf  ;;  %v860_v44 = vsel %vm859_vm11, %v857_v14, -inf  ;;  %v924_v27 = vsub.f32 1.0, %v5451_v12 }
 0x54c   :  { %4413 = vmatpush3.msra.mxu0 %v5669_v59  ;;  %865 = vmax.xlane.f32.xlu1 %v864_v46  ;;  %v4644_v59 = vld [vmem:[%s6885_s4] ss:$0 sm:$0xff] }
 0x54d   :  { %861 = vmax.xlane.f32.xlu0 %v860_v44  ;;  %4414 = vmatprep.subr.mxu0 %v5680_v30  ;;  %v917_v41 = vmul.f32 %v4644_v59, %v5261_v20  ;;  %v929_v38 = vrot.slane %v924_v27, %v4847_v9 }
 0x54e   :  { %4415 = vmatpush3.msra.mxu0 %v5680_v30  ;;  %v906_v30 = vsel %vm6941_vm15, %v903_v43, 0.0 }
 0x54f   :  { %4416 = vmatprep.subr.mxu0 %v5608_v26 }
 0x550   :  { %4417 = vmatpush3.msra.mxu0 %v5608_v26  ;;  %v909_v26 = vsel %vm449_vm7, %v904_v16, 0.0 }
 0x551   :  { %876 = vadd.xlane.f32.xlu0 %v875_v51  ;;  %4418 = vmatprep.subr.mxu0 %v5688_v61  ;;  %v925_v51 = vld [vmem:[%s6888_s7] sm:$0xff] }
 0x552   :  { %4419 = vmatpush3.msra.mxu0 %v5688_v61  ;;  %v916_v61 = vmul.f32 %v4644_v59, %v5272_v57  ;;  %v930_v59 = vmul.f32 %v929_v38, %v925_v51  ;;  %v936_v38 = vld [vmem:[%s6889_s8] sm:$0xff] }
 0x553   :  { %4420 = vmatprep.subr.mxu0 %v836_v25  ;;  %v938_v51 = vrot.slane %v936_v38, 7 }
 0x554   :  { %4421 = vmatpush3.msra.mxu0 %v836_v25  ;;  %v918_v60 = vsel %vm6941_vm15, %v916_v61, 0.0  ;;  %v921_v25 = vsel %vm449_vm7, %v917_v41, 0.0 }
 0x555   :  { %4422 = vmatprep.subr.mxu0 %v835_v5  ;;  %907 = vadd.xlane.f32.xlu0 %v906_v30 }
 0x556   :  { %4423 = vmatpush3.msra.mxu0 %v835_v5  ;;  %v2119_v5 = vpop.permute.xlu1 %2118 }
 0x557   :  { %4441 = vmatprep.subr.mxu0 %v6999_v32  ;;  %v2121_v1 = vsel %vm6940_vm12, 64.0, %v2119_v5 }
 0x558   :  { %v2126_v19 = vrot.slane %v2121_v1, %v4847_v9 }
 0x559   :  { %910 = vadd.xlane.f32.xlu0 %v909_v26 }
 0x55d   :  { %919 = vadd.xlane.f32.xlu0 %v918_v60 }
 0x561   :  { %922 = vadd.xlane.f32.xlu0 %v921_v25 }
 0x577   :  { %2128 = vperm.xlu0 %4584, %v2126_v19  }
 0x5c2   :  { %v5908_v24 = vpop.f32.mrf.mxu0 }
 0x5c4   :  { %v4349_v21 = vpop.f32.mrf.mxu0 }
 0x5d5   :  { %v866_v58 = vpop.xlane.xlu1 %865 }
 0x5d6   :  { %v862_v14 = vpop.xlane.xlu0 %861  ;;  %v868_v46 = vsub.f32 1.0, %v866_v58 }
 0x5d7   :  { %v867_v44 = vsub.f32 1.0, %v862_v14 }
 0x5d8   :  { %v879_v30 = vmul.f32 %v5261_v20, %v868_v46 }
 0x5d9   :  { %v878_v16 = vmul.f32 %v5272_v57, %v867_v44  ;;  %v5927_v44 = vpop.f32.mrf.mxu1 }
 0x5da   :  { %v877_v43 = vpop.xlane.xlu0 %876  ;;  %7066 = vst [vmem:[#allocation10_spill] sm:$0xff] %v5927_v44 }
 0x5db   :  { %v881_v26 = vrot.slane %v877_v43, 7  ;;  %v931_v61 = vmul.f32 %v902_v40, %v877_v43 }
 0x5dd   :  { %v883_v60 = vmul.f32 %v881_v26, %v878_v16  ;;  %v884_v12 = vmul.f32 %v881_v26, %v879_v30  ;;  %v932_v41 = vadd.f32 %v931_v61, %v930_v59 }
 0x5de   :  { %v908_v25 = vpop.xlane.xlu0 %907 }
 0x5df   :  { %v888_v5 = vrot.slane %v883_v60, 1  ;;  %v889_v1 = vrot.slane %v884_v12, 1  ;;  %v933_v19 = vmul.f32 %v5097_v15, %v932_v41  ;;  %v934_v43 = vsub.f32 1.0, %v908_v25  ;;  %v5930_v41 = vpop.f32.mrf.mxu1 }
 0x5e1   :  { %v890_v21 = vsel %vm6927_vm8, %v888_v5, %v889_v1  ;;  %951 = vst.msk [vmem:[%s6896_s15] sm:$0xff] %vm7064_vm3, %v933_v19  ;;  %v5933_v5 = vrot.slane %v5097_v15, 7  ;;  %vm6928_vm3 = vcmask 519168  }
 0x5e2   :  { %v892_v20 = vsel %vm7065_vm4, %v890_v21, 0.0  ;;  %v911_v57 = vpop.xlane.xlu0 %910 }
 0x5e3   :  { %v893_v40 = vrot.slane %v892_v20, 4  ;;  %v935_v16 = vsub.f32 1.0, %v911_v57  ;;  %7067 = vst [vmem:[#allocation18_spill] sm:$0xff] %v5933_v5 }
 0x5e5   :  { %v894_v27 = vadd.f32 %v893_v40, %v892_v20  ;;  %v940_v20 = vmul.f32 %v938_v51, %v934_v43 }
 0x5e6   :  { %v920_v58 = vpop.xlane.xlu0 %919 }
 0x5e7   :  { %v895_v14 = vrot.slane %v894_v27, 2  ;;  %v956_v26 = vrot.slane %v920_v58, 1 }
 0x5e9   :  { %v896_v46 = vadd.f32 %v895_v14, %v894_v27  ;;  %v941_v27 = vmul.f32 %v938_v51, %v935_v16 }
 0x5ea   :  { %v923_v59 = vpop.xlane.xlu0 %922 }
 0x5eb   :  { %v897_v30 = vrot.slane %v896_v46, 1  ;;  %v957_v61 = vrot.slane %v923_v59, 1 }
 0x5ed   :  { %v898_v60 = vadd.f32 %v897_v30, %v896_v46  ;;  %v958_v12 = vsel %vm6927_vm8, %v956_v26, %v957_v61  ;;  %v5937_v30 = vpop.f32.mrf.mxu1 }
 0x5ee   :  { %v983_v1 = vmul.f32 %v5097_v15, %v958_v12  ;;  %v991_v21 = vrot.slane %v958_v12, 4  ;;  %7068 = vst [vmem:[#allocation19_spill] sm:$0xff] %v5937_v30  ;;  %v960_v44 = vmul.f32 %v958_v12, %v933_v19 }
 0x5ef   :  { %v942_v40 = vmul.f32 %v908_v25, %v898_v60  ;;  %v943_v14 = vmul.f32 %v911_v57, %v898_v60  ;;  %v5949_v43 = vpop.f32.mrf.mxu1 }
 0x5f0   :  { %v984_v38 = vsel %vm874_vm14, %v983_v1, 0.0  ;;  %v992_v33 = vadd.f32 %v991_v21, %v958_v12 }
 0x5f1   :  { %v944_v55 = vadd.f32 %v942_v40, %v940_v20  ;;  %v945_v23 = vadd.f32 %v943_v14, %v941_v27  ;;  %v985_v46 = vrot.slane %v984_v38, 4 }
 0x5f2   :  { %v993_v26 = vrot.slane %v992_v33, 2 }
 0x5f3   :  { %v949_v61 = vmul.f32 %v5933_v5, %v944_v55  ;;  %v950_v47 = vmul.f32 %v5933_v5, %v945_v23  ;;  %v986_v3 = vadd.f32 %v985_v46, %v984_v38 }
 0x5f4   :  { %v994_v50 = vadd.f32 %v993_v26, %v992_v33  ;;  %v961_v33 = vsel %vm7069_vm10, %v960_v44, 0.0  ;;  %vm7073_vm10 = vmmov %vm7065_vm4 }
 0x5f5   :  { %952 = vst.msk [vmem:[%s6897_s16 - $0x1] sm:$0xfe] %vm6941_vm15, %v949_v61  ;;  %v968_v25 = vmul.f32 %v949_v61, %v920_v58  ;;  %v969_v57 = vmul.f32 %v950_v47, %v923_v59  ;;  %v987_v51 = vrot.slane %v986_v3, 2  ;;  %v5953_v58 = vpop.f32.mrf.mxu1  ;;  %v962_v20 = vrot.slane %v961_v33, 4 }
 0x5f6   :  { %953 = vst.msk [vmem:[%s6897_s16 + $0x7] sm:$0x1] %vm449_vm7, %v950_v47  ;;  %v995_v55 = vrot.slane %v994_v50, 1  ;;  %7070 = vst [vmem:[#allocation20_spill] sm:$0xff] %v5953_v58  ;;  %vm7101_vm15 = vcmask 203776  }
 0x5f7   :  { %v972_v23 = vrot.slane %v968_v25, 1  ;;  %v973_v19 = vrot.slane %v969_v57, 1  ;;  %v988_v16 = vadd.f32 %v987_v51, %v986_v3  ;;  %v5957_v27 = vpop.f32.mrf.mxu1  ;;  %v963_v3 = vadd.f32 %v962_v20, %v961_v33  ;;  %v2129_v51 = vpop.permute.xlu0 %2128 }
 0x5f8   :  { %v996_v60 = vadd.f32 %v995_v55, %v994_v50  ;;  %vm2131_vm5 = vcmp.lt.f32.partialorder %v5256_v7, %v2129_v51 }
 0x5f9   :  { %v974_v12 = vsel %vm6927_vm8, %v972_v23, %v973_v19  ;;  %v989_v1 = vrot.slane %v988_v16, 1  ;;  %v5959_v50 = vpop.f32.mrf.mxu1  ;;  %v964_v46 = vrot.slane %v963_v3, 2 }
 0x5fa   :  { %v997_v21 = vsub.f32 1.0, %v996_v60  ;;  %v976_v40 = vsel %vm7071_vm9, %v974_v12, 0.0  ;;  %7072 = vst [vmem:[#allocation21_spill] sm:$0xff] %v5959_v50 }
 0x5fb   :  { %v990_v47 = vadd.f32 %v989_v1, %v988_v16  ;;  %v977_v14 = vrot.slane %v976_v40, 4  ;;  %v5961_v26 = vpop.f32.mrf.mxu1  ;;  %v965_v61 = vadd.f32 %v964_v46, %v963_v3 }
 0x5fc   :  { %v998_v59 = vmul.f32 %v997_v21, %v5848_v56 }
 0x5fd   :  { %v978_v44 = vadd.f32 %v977_v14, %v976_v40  ;;  %v966_v33 = vrot.slane %v965_v61, 1 }
 0x5fe   :  { %v999_v38 = vadd.f32 %v998_v59, %v990_v47 }
 0x5ff   :  { %v979_v25 = vrot.slane %v978_v44, 2  ;;  %v967_v20 = vadd.f32 %v966_v33, %v965_v61 }
 0x600   :  { %1001 = vst.msk [vmem:[#allocation4 + $0x3] sm:$0x1] %vm1000_vm0, %v999_v38 }
 0x601   :  { %v980_v60 = vadd.f32 %v979_v25, %v978_v44  ;;  %v2215_v47 = vsel %vm7065_vm4, %v967_v20, -inf }
 0x603   :  { %v981_v40 = vrot.slane %v980_v60, 1 }
 0x605   :  { %v982_v59 = vadd.f32 %v981_v40, %v980_v60 }
 0x607   :  { %v1992_v57 = vpop.f32.mrf.mxu0  ;;  %v2270_v14 = vsel %vm7073_vm10, %v982_v59, -inf }
 0x608   :  { %v2132_v55 = vmul.f32 2.0, %v1992_v57  ;;  %v2097_v23 = vpop.f32.mrf.mxu1 }
 0x609   :  { %v2136_v56 = vrot.slane %v2097_v23, %v4847_v9  ;;  %v4388_v19 = vpop.f32.mrf.mxu0 }
 0x60a   :  { %v4407_v16 = vpop.f32.mrf.mxu1 }
 0x60b   :  { %v2137_v12 = vsub.f32 %v2132_v55, %v2136_v56 }
 0x60d   :  { %v2138_v1 = vsel %vm2131_vm5, %v2137_v12, -1e+30  ;;  %vm7074_vm5 = vmmov %vm7065_vm4 }
 0x60e   :  { %v2140_v21 = vsel %vm6928_vm3, %v2138_v1, -inf  ;;  %vm7075_vm10 = vmmov %vm7074_vm5 }
 0x60f   :  { %2141 = vmax.xlane.f32.xlu1 %v2140_v21 }
 0x613   :  { %2216 = vmax.xlane.f32.xlu1 %v2215_v47 }
 0x617   :  { %2271 = vmax.xlane.f32.xlu1 %v2270_v14 }
 0x698   :  { %v2142_v3 = vpop.xlane.xlu1 %2141 }
 0x699   :  { %vm2143_vm9 = vcmp.eq.f32.partialorder %v2138_v1, %v2142_v3 }
 0x69a   :  { %v2144_v38 = vsel %vm2143_vm9, %v5256_v7, 64.0 }
 0x69b   :  { %v2145_v44 = vsel %vm6928_vm3, %v2144_v38, inf }
 0x69c   :  { %2146 = vmin.xlane.f32.xlu1 %v2145_v44  ;;  %v2217_v46 = vpop.xlane.xlu1 %2216 }
 0x69d   :  { %vm2218_vm0 = vcmp.eq.f32.partialorder %v967_v20, %v2217_v46 }
 0x69e   :  { %v2219_v61 = vsel %vm2218_vm0, %v5256_v7, 64.0 }
 0x69f   :  { %v2220_v25 = vsel %vm7074_vm5, %v2219_v61, inf }
 0x6a0   :  { %2221 = vmin.xlane.f32.xlu1 %v2220_v25  ;;  %v2272_v57 = vpop.xlane.xlu1 %2271 }
 0x6a1   :  { %vm2273_vm4 = vcmp.eq.f32.partialorder %v982_v59, %v2272_v57 }
 0x6a2   :  { %v2274_v51 = vsel %vm2273_vm4, %v5256_v7, 64.0 }
 0x6a3   :  { %v2275_v55 = vsel %vm7075_vm10, %v2274_v51, inf  ;;  %vm7076_vm10 = vmmov %vm7074_vm5 }
 0x6a4   :  { %2276 = vmin.xlane.f32.xlu1 %v2275_v55 }
 0x725   :  { %v5974_v23 = vpop.xlane.xlu1 %2146 }
 0x726   :  { %vm2158_vm9 = vcmp.eq.f32.partialorder %v5256_v7, %v5974_v23 }
 0x727   :  { %v2159_v56 = vsel %vm2158_vm9, -2e+30, %v2138_v1 }
 0x728   :  { %v2160_v19 = vsel %vm6928_vm3, %v2159_v56, -inf }
 0x729   :  { %2161 = vmax.xlane.f32.xlu1 %v2160_v19  ;;  %v5979_v16 = vpop.xlane.xlu1 %2221 }
 0x72a   :  { %vm2225_vm0 = vcmp.eq.f32.partialorder %v5256_v7, %v5979_v16 }
 0x72b   :  { %v2226_v33 = vsel %vm2225_vm0, -2e+30, %v967_v20 }
 0x72c   :  { %v2227_v60 = vsel %vm7074_vm5, %v2226_v33, -inf }
 0x72d   :  { %2228 = vmax.xlane.f32.xlu1 %v2227_v60  ;;  %v5984_v12 = vpop.xlane.xlu1 %2276 }
 0x72e   :  { %vm2283_vm4 = vcmp.eq.f32.partialorder %v5256_v7, %v5984_v12 }
 0x72f   :  { %v2284_v21 = vsel %vm2283_vm4, -2e+30, %v982_v59  ;;  %vm7077_vm4 = vmmov %vm7074_vm5 }
 0x730   :  { %v2285_v1 = vsel %vm7076_vm10, %v2284_v21, -inf }
 0x731   :  { %2286 = vmax.xlane.f32.xlu1 %v2285_v1 }
 0x7b2   :  { %v2162_v40 = vpop.xlane.xlu1 %2161 }
 0x7b3   :  { %vm2163_vm9 = vcmp.eq.f32.partialorder %v2159_v56, %v2162_v40 }
 0x7b4   :  { %v2164_v47 = vsel %vm2163_vm9, %v5256_v7, 64.0 }
 0x7b5   :  { %v2165_v14 = vsel %vm6928_vm3, %v2164_v47, inf }
 0x7b6   :  { %2166 = vmin.xlane.f32.xlu1 %v2165_v14  ;;  %v2229_v20 = vpop.xlane.xlu1 %2228 }
 0x7b7   :  { %vm2230_vm0 = vcmp.eq.f32.partialorder %v2226_v33, %v2229_v20 }
 0x7b8   :  { %v2231_v3 = vsel %vm2230_vm0, %v5256_v7, 64.0  ;;  %vm7078_vm0 = vmmov %vm7077_vm4 }
 0x7b9   :  { %v2232_v38 = vsel %vm7074_vm5, %v2231_v3, inf  ;;  %vm7079_vm5 = vmmov %vm7078_vm0 }
 0x7ba   :  { %2233 = vmin.xlane.f32.xlu1 %v2232_v38  ;;  %v2287_v44 = vpop.xlane.xlu1 %2286 }
 0x7bb   :  { %vm2288_vm8 = vcmp.eq.f32.partialorder %v2284_v21, %v2287_v44 }
 0x7bc   :  { %v2289_v59 = vsel %vm2288_vm8, %v5256_v7, 64.0 }
 0x7bd   :  { %v2290_v46 = vsel %vm7077_vm4, %v2289_v59, inf  ;;  %v1002_v59 = vsel %vm449_vm7, %v5455_v28, inf }
 0x7be   :  { %2291 = vmin.xlane.f32.xlu0 %v2290_v46  ;;  %v6929_v46 = vmov 0  }
 0x7bf   :  { %4585 = vset.pattern.permute.xlu0 %v6929_v46 }
 0x83f   :  { %v5995_v61 = vpop.xlane.xlu1 %2166 }
 0x840   :  { %vm2177_vm10 = vcmp.eq.f32.partialorder %v5256_v7, %v5995_v61 }
 0x841   :  { %v2178_v25 = vsel %vm2177_vm10, -2e+30, %v2159_v56 }
 0x842   :  { %v2179_v57 = vsel %vm6928_vm3, %v2178_v25, -inf }
 0x843   :  { %2180 = vmax.xlane.f32.xlu1 %v2179_v57  ;;  %v6000_v51 = vpop.xlane.xlu1 %2233 }
 0x844   :  { %vm2240_vm9 = vcmp.eq.f32.partialorder %v5256_v7, %v6000_v51 }
 0x845   :  { %v2241_v55 = vsel %vm2240_vm9, -2e+30, %v2226_v33  ;;  %vm7080_vm9 = vmmov %vm7078_vm0 }
 0x846   :  { %v2242_v19 = vsel %vm7078_vm0, %v2241_v55, -inf }
 0x847   :  { %v6005_v60 = vpop.xlane.xlu0 %2291  ;;  %2243 = vmax.xlane.f32.xlu1 %v2242_v19 }
 0x848   :  { %vm2298_vm8 = vcmp.eq.f32.partialorder %v5256_v7, %v6005_v60 }
 0x849   :  { %v2299_v1 = vsel %vm2298_vm8, -2e+30, %v2284_v21  ;;  %vm7081_vm8 = vmmov %vm7079_vm5 }
 0x84a   :  { %v2300_v56 = vsel %vm7079_vm5, %v2299_v1, -inf }
 0x84b   :  { %2301 = vmax.xlane.f32.xlu1 %v2300_v56 }
 0x8cc   :  { %v2181_v40 = vpop.xlane.xlu1 %2180 }
 0x8cd   :  { %vm2182_vm4 = vcmp.eq.f32.partialorder %v2178_v25, %v2181_v40 }
 0x8ce   :  { %v2183_v47 = vsel %vm2182_vm4, %v5256_v7, 64.0 }
 0x8cf   :  { %v2184_v14 = vsel %vm6928_vm3, %v2183_v47, inf }
 0x8d0   :  { %2185 = vmin.xlane.f32.xlu1 %v2184_v14  ;;  %v2244_v33 = vpop.xlane.xlu1 %2243 }
 0x8d1   :  { %vm2245_vm10 = vcmp.eq.f32.partialorder %v2241_v55, %v2244_v33 }
 0x8d2   :  { %v2246_v20 = vsel %vm2245_vm10, %v5256_v7, 64.0  ;;  %vm7082_vm10 = vmmov %vm7081_vm8 }
 0x8d3   :  { %v2247_v3 = vsel %vm7080_vm9, %v2246_v20, inf }
 0x8d4   :  { %2248 = vmin.xlane.f32.xlu1 %v2247_v3  ;;  %v2302_v38 = vpop.xlane.xlu1 %2301 }
 0x8d5   :  { %vm2303_vm0 = vcmp.eq.f32.partialorder %v2299_v1, %v2302_v38 }
 0x8d6   :  { %v2304_v21 = vsel %vm2303_vm0, %v5256_v7, 64.0  ;;  %vm7083_vm0 = vmmov %vm7081_vm8 }
 0x8d7   :  { %v2305_v44 = vsel %vm7081_vm8, %v2304_v21, inf }
 0x8d8   :  { %2306 = vmin.xlane.f32.xlu1 %v2305_v44 }
 0x8dc   :  { %1003 = vmin.xlane.f32.xlu1 %v1002_v59 }
 0x959   :  { %v2186_v57 = vpop.xlane.xlu1 %2185 }
 0x95a   :  { %vm2196_vm5 = vcmp.eq.f32.partialorder %v5256_v7, %v2186_v57 }
 0x95b   :  { %v2197_v19 = vsel %vm2196_vm5, -2e+30, %v2178_v25 }
 0x95c   :  { %v2198_v56 = vsel %vm6928_vm3, %v2197_v19, -inf }
 0x95d   :  { %2199 = vmax.xlane.f32.xlu1 %v2198_v56  ;;  %v6021_v40 = vpop.xlane.xlu1 %2248 }
 0x95e   :  { %vm2255_vm4 = vcmp.eq.f32.partialorder %v5256_v7, %v6021_v40 }
 0x95f   :  { %v2256_v47 = vsel %vm2255_vm4, -2e+30, %v2241_v55  ;;  %v1835_v55 = vsel %vm6940_vm12, 1, %v6929_v46 }
 0x960   :  { %v2257_v14 = vsel %vm7082_vm10, %v2256_v47, -inf  ;;  %vm7084_vm10 = vmmov %vm7083_vm0 }
 0x961   :  { %2258 = vmax.xlane.f32.xlu0 %v2257_v14  ;;  %v6026_v33 = vpop.xlane.xlu1 %2306 }
 0x962   :  { %vm2313_vm9 = vcmp.eq.f32.partialorder %v5256_v7, %v6026_v33 }
 0x963   :  { %v2314_v20 = vsel %vm2313_vm9, -2e+30, %v2299_v1 }
 0x964   :  { %v2315_v25 = vsel %vm7083_vm0, %v2314_v20, -inf }
 0x965   :  { %2316 = vmax.xlane.f32.xlu1 %v2315_v25  ;;  %v1004_v3 = vpop.xlane.xlu1 %1003 }
 0x966   :  { %vm1005_vm8 = vcmp.eq.f32.partialorder %v5455_v28, %v1004_v3 }
 0x967   :  { %v1006_v38 = vsel %vm1005_vm8, %v5256_v7, 64.0 }
 0x968   :  { %v1007_v21 = vsel %vm449_vm7, %v1006_v38, inf }
 0x969   :  { %1008 = vmin.xlane.f32.xlu0 %v1007_v21  ;;  %v7085_v21 = vmov 0 }
 0x976   :  { %1836 = vrot.lane.b32.xlu1 %v1835_v55, %s4726_s2 }
 0x9e6   :  { %v2200_v44 = vpop.xlane.xlu1 %2199 }
 0x9e7   :  { %vm2201_vm5 = vcmp.eq.f32.partialorder %v2197_v19, %v2200_v44  ;;  %v101_v44 = vmul.u32 4, %v4832_v4 }
 0x9e8   :  { %v2202_v1 = vsel %vm2201_vm5, %v5256_v7, 64.0  ;;  %vm1833_vm5 = vcmp.ge.s32.totalorder %v5901_v39, 63 }
 0x9e9   :  { %v2203_v59 = vsel %vm6928_vm3, %v2202_v1, inf  ;;  %v105_v1 = vadd.s32 1, %v101_v44 }
 0x9ea   :  { %v2259_v56 = vpop.xlane.xlu0 %2258  ;;  %2204 = vmin.xlane.f32.xlu0 %v2203_v59  ;;  %v109_v59 = vadd.s32 2, %v101_v44 }
 0x9eb   :  { %vm2260_vm4 = vcmp.eq.f32.partialorder %v2256_v47, %v2259_v56  ;;  %v7089_v56 = vld [vmem:[#allocation9_spill] sm:$0xff] }
 0x9ec   :  { %v2261_v28 = vsel %vm2260_vm4, %v5256_v7, 64.0  ;;  %vm106_vm4 = vcmp.eq.s32.totalorder %v7089_v56, %v105_v1 }
 0x9ed   :  { %v2262_v14 = vsel %vm7084_vm10, %v2261_v28, inf  ;;  %vm102_vm10 = vcmp.eq.s32.totalorder %v7089_v56, %v101_v44  ;;  %v6059_v28 = vsel %vm106_vm4, 1.0, %v6999_v32  ;;  %vm7094_vm4 = vcmask 203776  }
 0x9ee   :  { %2263 = vmin.xlane.f32.xlu0 %v2262_v14  ;;  %v2317_v25 = vpop.xlane.xlu1 %2316  ;;  %7090 = vst [vmem:[#allocation23_spill] sm:$0xff] %v6059_v28  ;;  %v6062_v14 = vsel %vm102_vm10, 1.0, %v6999_v32  ;;  %v2168_v4 = vmul.f32 %v6059_v28, %v5995_v61 }
 0x9ef   :  { %vm2318_vm9 = vcmp.eq.f32.partialorder %v2314_v20, %v2317_v25  ;;  %v7088_v20 = vmov 2   ;;  %7091 = vst [vmem:[#allocation24_spill] sm:$0xff] %v6062_v14 }
 0x9f0   :  { %v2319_v3 = vsel %vm2318_vm9, %v5256_v7, 64.0  ;;  %vm110_vm9 = vcmp.eq.s32.totalorder %v7089_v56, %v109_v59 }
 0x9f1   :  { %v2320_v38 = vsel %vm7083_vm0, %v2319_v3, inf  ;;  %v6065_v25 = vsel %vm110_vm9, 1.0, %v6999_v32  ;;  %v2148_v3 = vmul.f32 %v6062_v14, %v5974_v23  ;;  %vm2149_vm0 = vcmask 199680   ;;  %vm7096_vm9 = vmmov %vm7094_vm4 }
 0x9f2   :  { %2321 = vmin.xlane.f32.xlu0 %v2320_v38  ;;  %v1837_v19 = vpop.permute.xlu1 %1836  ;;  %v6048_v47 = vpop.xlane.xlu0 %1008  ;;  %7092 = vst [vmem:[#allocation25_spill] sm:$0xff] %v6065_v25  ;;  %v2187_v38 = vmul.f32 %v6065_v25, %v2186_v57 }
 0x9f3   :  { %vm1838_vm8 = vcmp.ne.s32.totalorder %v1837_v19, 0  ;;  %v2169_v19 = vsel %vm2149_vm0, %v2168_v4, 0.0 }
 0x9f4   :  { %vm6044_vm3 = vmor %vm1833_vm5, %vm1838_vm8  ;;  %v2170_v1 = vrot.slane %v2169_v19, 4  ;;  %vm7093_vm5 = vcmask 196608  }
 0x9f5   :  { %v7086_v21 = vsel %vm6044_vm3, 4294967295, %v7085_v21  ;;  %v1840_v55 = vsel %vm6044_vm3, 63.0, %v6048_v47  ;;  %vm7095_vm10 = vmmov %vm7093_vm5 }
 0x9f6   :  { %7087 = vst [vmem:[#allocation22_spill] sm:$0xff] %v7086_v21  ;;  %v113_v21 = vadd.s32 3, %v101_v44  ;;  %v2171_v5 = vadd.f32 %v2170_v1, %v2169_v19 }
 0x9f8   :  { %vm114_vm8 = vcmp.eq.s32.totalorder %v7089_v56, %v113_v21  ;;  %v2172_v61 = vrot.slane %v2171_v5, 2 }
 0x9f9   :  { %v6077_v57 = vsel %vm114_vm8, 1.0, %v6999_v32  ;;  %vm7097_vm8 = vmmov %vm7094_vm4 }
 0x9fa   :  { %v2173_v4 = vadd.f32 %v2172_v61, %v2171_v5  ;;  %v2235_v5 = vmul.f32 %v5082_v10, %v6000_v51  ;;  %v2250_v61 = vmul.f32 %v5082_v10, %v6021_v40  ;;  %v2308_v40 = vmul.f32 %v5082_v10, %v6026_v33 }
 0x9fc   :  { %v2174_v44 = vrot.slane %v2173_v4, 1 }
 0x9fe   :  { %v2175_v21 = vadd.f32 %v2174_v44, %v2173_v4 }
 0xa08   :  { %2333 = vperm.xlu0 %4585, %v1840_v55   ;;  %v2150_v55 = vsel %vm2149_vm0, %v2148_v3, 0.0 }
 0xa09   :  { %v2151_v59 = vrot.slane %v2150_v55, 4 }
 0xa0b   :  { %v2152_v39 = vadd.f32 %v2151_v59, %v2150_v55 }
 0xa0c   :  { %4588 = vset.pattern.permute.xlu0 %v7088_v20  ;;  %v2188_v20 = vsel %vm2149_vm0, %v2187_v38, 0.0 }
 0xa0d   :  { %v2189_v46 = vrot.slane %v2188_v20, 4  ;;  %v2153_v23 = vrot.slane %v2152_v39, 2 }
 0xa0f   :  { %v2190_v30 = vadd.f32 %v2189_v46, %v2188_v20  ;;  %v2154_v38 = vadd.f32 %v2153_v23, %v2152_v39  ;;  %v2237_v23 = vrot.slane %v2235_v5, 1 }
 0xa11   :  { %v2191_v28 = vrot.slane %v2190_v30, 2  ;;  %v2155_v55 = vrot.slane %v2154_v38, 1 }
 0xa13   :  { %v2192_v14 = vadd.f32 %v2191_v28, %v2190_v30  ;;  %v2156_v59 = vadd.f32 %v2155_v55, %v2154_v38  ;;  %v2223_v28 = vmul.f32 %v5082_v10, %v5979_v16  ;;  %v2252_v38 = vrot.slane %v2250_v61, 2 }
 0xa15   :  { %v2193_v46 = vrot.slane %v2192_v14, 1  ;;  %v2176_v2 = vadd.f32 %v2175_v21, %v2156_v59  ;;  %v2328_v59 = vmul.f32 %v5118_v49, %v6048_v47 }
 0xa17   :  { %v2194_v56 = vadd.f32 %v2193_v46, %v2192_v14 }
 0xa73   :  { %v2205_v25 = vpop.xlane.xlu0 %2204 }
 0xa74   :  { %v2206_v3 = vmul.f32 %v6077_v57, %v2205_v25  ;;  %v2195_v25 = vadd.f32 %v2194_v56, %v2176_v2  ;;  %v2293_v2 = vmul.f32 %v5082_v10, %v6005_v60 }
 0xa76   :  { %v2207_v58 = vsel %vm2149_vm0, %v2206_v3, 0.0  ;;  %v2278_v3 = vmul.f32 %v5082_v10, %v5984_v12 }
 0xa77   :  { %v2208_v19 = vrot.slane %v2207_v58, 4  ;;  %v2264_v30 = vpop.xlane.xlu0 %2263 }
 0xa78   :  { %v2265_v14 = vmul.f32 %v5082_v10, %v2264_v30  ;;  %v2280_v16 = vrot.slane %v2278_v3, 4 }
 0xa79   :  { %v2209_v20 = vadd.f32 %v2208_v19, %v2207_v58  ;;  %v2295_v19 = vrot.slane %v2293_v2, 5 }
 0xa7b   :  { %v2210_v1 = vrot.slane %v2209_v20, 2  ;;  %v2322_v51 = vpop.xlane.xlu0 %2321 }
 0xa7c   :  { %v2323_v46 = vmul.f32 %v5082_v10, %v2322_v51 }
 0xa7d   :  { %v2211_v50 = vadd.f32 %v2210_v1, %v2209_v20  ;;  %v2310_v20 = vrot.slane %v2308_v40, 6 }
 0xa7e   :  { %v2325_v1 = vrot.slane %v2323_v46, 7 }
 0xa7f   :  { %v2212_v8 = vrot.slane %v2211_v50, 1 }
 0xa81   :  { %v2213_v39 = vadd.f32 %v2212_v8, %v2211_v50  ;;  %v2267_v50 = vrot.slane %v2265_v14, 3 }
 0xa83   :  { %v2214_v58 = vadd.f32 %v2213_v39, %v2195_v25  ;;  %v2334_v5 = vpop.permute.xlu0 %2333 }
 0xa84   :  { %v6098_v30 = vrot.slane %v2334_v5, %v4847_v9 }
 0xa85   :  { %v2224_v4 = vadd.f32 %v2223_v28, %v2214_v58 }
 0xa87   :  { %v2239_v44 = vadd.f32 %v2237_v23, %v2224_v4 }
 0xa89   :  { %v2254_v8 = vadd.f32 %v2252_v38, %v2239_v44 }
 0xa8b   :  { %v2269_v56 = vadd.f32 %v2267_v50, %v2254_v8 }
 0xa8d   :  { %v2282_v55 = vadd.f32 %v2280_v16, %v2269_v56 }
 0xa8f   :  { %v2297_v21 = vadd.f32 %v2295_v19, %v2282_v55 }
 0xa91   :  { %v2312_v12 = vadd.f32 %v2310_v20, %v2297_v21 }
 0xa93   :  { %v2327_v60 = vadd.f32 %v2325_v1, %v2312_v12 }
 0xa95   :  { %v2329_v25 = vadd.f32 %v2328_v59, %v2327_v60 }
 0xa97   :  { %v2330_v39 = vmax.f32 %v2329_v25, 0.0 }
 0xa99   :  { %v2340_v33 = vmin.f32 %v2330_v39, %v6098_v30 }
 0xa9b   :  { %v6102_v28 = vrot.slane %v2340_v33, %v4847_v9  ;;  %v4558_v61 = vtrunc.f32 %v2340_v33 }
 0xa9d   :  { %v2350_v58 = vmul.f32 %v5118_v49, %v6102_v28  ;;  %v2347_v23 = vmul.f32 %v5097_v15, %v6102_v28  ;;  %v4559_v4 = vcvt.f32.s32 %v4558_v61  ;;  %v2348_v38 = vmul.f32 %v5092_v0, %v6102_v28  ;;  %v3075_v61 = vld [vmem:[%s6884_s3 + $0x1] sm:$0x1] }
 0xa9e   :  { %v2349_v2 = vmul.f32 %v5082_v10, %v6102_v28 }
 0xa9f   :  { %v2360_v14 = vsel %vm7093_vm5, %v2350_v58, 0.0  ;;  %v2351_v3 = vsel %vm7094_vm4, %v2347_v23, 0.0  ;;  %2342 = vst.msk [vmem:[#allocation2] sm:$0x1] %vm7095_vm10, %v4559_v4  ;;  %v2354_v44 = vsel %vm7096_vm9, %v2348_v38, 0.0  ;;  %vm7098_vm4 = vcmask 523264  }
 0xaa0   :  { %2361 = vadd.xlane.f32.xlu0 %v2360_v14  ;;  %2352 = vadd.xlane.f32.xlu1 %v2351_v3  ;;  %v2357_v8 = vsel %vm7097_vm8, %v2349_v2, 0.0  ;;  %vm7099_vm8 = vmmov %vm7098_vm4  ;;  %v3076_v58 = vcvt.s32.f32 %v3075_v61  ;;  %v3997_v3 = vld [vmem:[%s6886_s5 + $0x70] sm:$0xff] }
 0xaa4   :  { %2355 = vadd.xlane.f32.xlu1 %v2354_v44 }
 0xaa8   :  { %2358 = vadd.xlane.f32.xlu1 %v2357_v8 }
 0xb29   :  { %v6117_v50 = vpop.xlane.xlu1 %2352  ;;  %v6126_v40 = vpop.xlane.xlu0 %2361 }
 0xb2a   :  { %vm2363_vm5 = vcmp.eq.f32.partialorder %v5256_v7, %v6117_v50 }
 0xb2b   :  { %v6122_v51 = vsel %vm2363_vm5, 1.0, %v6999_v32  ;;  %vm2366_vm5 = vcmp.eq.f32.partialorder %v5256_v7, %v6126_v40 }
 0xb2c   :  { %4424 = vmatprep.mubr.msk.f32.mxu0 %vm7098_vm4, %v6122_v51  ;;  %v6145_v21 = vsel %vm2366_vm5, 1.0, %v6999_v32 }
 0xb2d   :  { %v2356_v16 = vpop.xlane.xlu1 %2355 }
 0xb2e   :  { %vm2364_vm10 = vcmp.eq.f32.partialorder %v5256_v7, %v2356_v16  ;;  %vm2729_vm9 = vcmp.eq.f32.partialorder %v2356_v16, %v6102_v28 }
 0xb2f   :  { %v6130_v56 = vsel %vm2364_vm10, 1.0, %v6999_v32  ;;  %v4063_v20 = vsel %vm2729_vm9, 1.0, %v6999_v32  ;;  %vm7100_vm10 = vmmov %vm7099_vm8 }
 0xb30   :  { %4425 = vmatmul.mubr.msk.f32.vlgmr.msra.gmra.mxu0 %vm7099_vm8, %v6130_v56  ;;  %v2741_v59 = vmul.f32 %v4063_v20, %v5207_v53 }
 0xb31   :  { %v2359_v19 = vpop.xlane.xlu1 %2358 }
 0xb32   :  { %vm2365_vm12 = vcmp.eq.f32.partialorder %v5256_v7, %v2359_v19  ;;  %vm2730_vm4 = vcmp.eq.f32.partialorder %v2359_v19, %v6102_v28 }
 0xb33   :  { %v6140_v55 = vsel %vm2365_vm12, 1.0, %v6999_v32  ;;  %v4064_v46 = vsel %vm2730_vm4, 1.0, %v6999_v32  ;;  %vm7102_vm12 = vmmov %vm7101_vm15 }
 0xb34   :  { %4427 = vmatprep.mubr.msk.f32.mxu0 %vm7100_vm10, %v6140_v55  ;;  %v2742_v12 = vmul.f32 %v4064_v46, %v5192_v37  ;;  %v2747_v60 = vsel %vm7102_vm12, %v2741_v59, -inf  ;;  %vm7103_vm9 = vmmov %vm7102_vm12  ;;  %vm2530_vm10 = vcmask 125952  }
 0xb35   :  { %4428 = vmatmul.mubr.msk.f32.gmra.mxu0 %vm7099_vm8, %v6145_v21  ;;  %v1268_v5 = vsel %vm7103_vm9, %v5765_v54, -inf  ;;  %vm7104_vm5 = vmmov %vm7103_vm9  ;;  %v2864_v54 = vmul.f32 %v5595_v36, %v5534_v63  ;;  %v1653_v36 = vmul.f32 %v5479_v31, %v5860_v62 }
 0xb36   :  { %v2750_v1 = vsel %vm7101_vm15, %v2742_v12, -inf  ;;  %4449 = vmatprep.mubr.msk.f32.mxu0 %vm7009_vm1, %v6999_v32  ;;  %v1262_v25 = vsel %vm7104_vm5, %v5741_v11, -inf  ;;  %vm7105_vm4 = vmmov %vm7104_vm5  ;;  %v4645_v11 = vld [vmem:[%s6885_s4] ss:$0 sm:$0xff] }
 0xb37   :  { %2751 = vmax.xlane.f32.xlu0 %v2750_v1  ;;  %v1256_v39 = vsel %vm7105_vm4, %v5722_v48, -inf  ;;  %vm7106_vm15 = vmmov %vm7105_vm4  ;;  %v1657_v23 = vsel %vm863_vm2, %v1653_v36, -inf  ;;  %vm2475_vm2 = vcmask 122880  }
 0xb38   :  { %v1250_v33 = vsel %vm7106_vm15, %v5516_v35, -inf  ;;  %v3084_v35 = vrot.slane %v3076_v58, %v5564_v6 }
 0xb3a   :  { %v3091_v48 = vrot.slane %v3084_v35, %v5564_v6  ;;  %v3995_v6 = vld [vmem:[%s6886_s5 + $0x60] sm:$0xff] }
 0xb3b   :  { %2748 = vmax.xlane.f32.xlu0 %v2747_v60 }
 0xb3f   :  { %1269 = vmax.xlane.f32.xlu0 %v1268_v5 }
 0xb43   :  { %1263 = vmax.xlane.f32.xlu0 %v1262_v25 }
 0xb47   :  { %1257 = vmax.xlane.f32.xlu0 %v1256_v39 }
 0xb4b   :  { %1251 = vmax.xlane.f32.xlu0 %v1250_v33 }
 0xb61   :  { %2866 = vrot.lane.b32.xlu0 %v2864_v54, %s4721_s28 }
 0xb65   :  { %1376 = vrot.lane.b32.xlu0 %v5908_v24, %s4713_s20 }
 0xb69   :  { %1715 = vrot.lane.b32.xlu0 %v4645_v11, %s4713_s20 }
 0xb6d   :  { %3092 = vrot.lane.b32.xlu0 %v3091_v48, %s4719_s22 }
 0xb8c   :  { %1658 = vmax.xlane.f32.xlu0 %v1657_v23 }
 0xbc0   :  { %v6183_v4 = vpop.xlane.xlu0 %2751 }
 0xbc4   :  { %v6185_v14 = vpop.xlane.xlu0 %2748 }
 0xbc8   :  { %v1270_v38 = vpop.xlane.xlu0 %1269 }
 0xbc9   :  { %v1485_v44 = vsub.f32 1.0, %v1270_v38  ;;  %v2529_v38 = vmul.f32 %v5851_v22, %v5851_v22 }
 0xbcb   :  { %v1493_v2 = vmul.f32 %v3997_v3, %v1485_v44  ;;  %v2531_v44 = vsel %vm2530_vm10, %v2529_v38, 0.0 }
 0xbcc   :  { %v1264_v8 = vpop.xlane.xlu0 %1263 }
 0xbcd   :  { %v6194_v31 = vadd.f32 %v5961_v26, %v1493_v2  ;;  %v1483_v16 = vsub.f32 1.0, %v1264_v8 }
 0xbcf   :  { %4014 = vst.msk [vmem:[%s6894_s13 + $0x70] sm:$0xff] %vm843_vm6, %v6194_v31  ;;  %v1491_v19 = vmul.f32 %v3995_v6, %v1483_v16 }
 0xbd0   :  { %v1258_v20 = vpop.xlane.xlu0 %1257 }
 0xbd1   :  { %v6205_v12 = vadd.f32 %v5957_v27, %v1491_v19  ;;  %v1481_v1 = vsub.f32 1.0, %v1258_v20 }
 0xbd4   :  { %v1252_v60 = vpop.xlane.xlu0 %1251 }
 0xbd5   :  { %v1479_v25 = vsub.f32 1.0, %v1252_v60 }
 0xbd6   :  { %v3993_v46 = vld [vmem:[%s6886_s5 + $0x50] sm:$0xff] }
 0xbd7   :  { %4012 = vst.msk [vmem:[%s6894_s13 + $0x60] sm:$0xff] %vm843_vm6, %v6205_v12  ;;  %v1489_v26 = vmul.f32 %v3993_v46, %v1481_v1 }
 0xbd9   :  { %v6216_v5 = vadd.f32 %v5949_v43, %v1489_v26 }
 0xbde   :  { %v3991_v59 = vld [vmem:[%s6886_s5 + $0x40] sm:$0xff] }
 0xbdf   :  { %4010 = vst.msk [vmem:[%s6894_s13 + $0x50] sm:$0xff] %vm843_vm6, %v6216_v5  ;;  %v1487_v27 = vmul.f32 %v3991_v59, %v1479_v25 }
 0xbe1   :  { %v6224_v39 = vadd.f32 %v5930_v41, %v1487_v27 }
 0xbe3   :  { %4008 = vst.msk [vmem:[%s6894_s13 + $0x40] sm:$0xff] %vm843_vm6, %v6224_v39 }
 0xbf0   :  { %v6231_v33 = vpop.f32.mrf.mxu0 }
 0xbf1   :  { %2473 = vst.msk [vmem:[%s6895_s14 + $0x8] sm:$0xff] %vm843_vm6, %v6231_v33  ;;  %v2478_v48 = vmul.f32 %v6231_v33, %v6231_v33 }
 0xbf2   :  { %v6238_v43 = vpop.f32.mrf.mxu0 }
 0xbf3   :  { %2472 = vst.msk [vmem:[%s6895_s14] sm:$0xff] %vm843_vm6, %v6238_v43  ;;  %v2484_v36 = vsel %vm843_vm6, %v2478_v48, 0.0  ;;  %v2477_v23 = vmul.f32 %v6238_v43, %v6238_v43 }
 0xbf5   :  { %v6245_v41 = vpop.f32.mrf.mxu0  ;;  %v2481_v3 = vsel %vm843_vm6, %v2477_v23, 0.0 }
 0xbf6   :  { %2476 = vst.msk [vmem:[%s6895_s14 + $0x18] sm:$0x1] %vm2475_vm2, %v6245_v41  ;;  %4442 = vmatpush3.msk.msra.mxu0 %vm507_vm13, %v6245_v41  ;;  %v2480_v61 = vmul.f32 %v6245_v41, %v6245_v41 }
 0xbf7   :  { %v6256_v54 = vpop.f32.mrf.mxu0  ;;  %4443 = vmatprep.subr.mxu0 %v6999_v32 }
 0xbf8   :  { %2474 = vst.msk [vmem:[%s6895_s14 + $0x10] sm:$0xff] %vm843_vm6, %v6256_v54  ;;  %4444 = vmatpush3.msra.mxu0 %v6256_v54  ;;  %v2490_v58 = vsel %vm2475_vm2, %v2480_v61, 0.0  ;;  %v2479_v11 = vmul.f32 %v6256_v54, %v6256_v54 }
 0xbf9   :  { %2491 = vadd.xlane.f32.xlu1 %v2490_v58  ;;  %4445 = vmatprep.subr.mxu0 %v6999_v32 }
 0xbfa   :  { %4446 = vmatpush3.msra.mxu0 %v6231_v33  ;;  %v2487_v35 = vsel %vm843_vm6, %v2479_v11, 0.0 }
 0xbfb   :  { %4447 = vmatprep.subr.mxu0 %v6999_v32 }
 0xbfc   :  { %4448 = vmatpush3.msra.mxu0 %v6238_v43 }
 0xbfd   :  { %2488 = vadd.xlane.f32.xlu1 %v2487_v35  ;;  %4463 = vmatprep.subr.mxu0 %v6999_v32 }
 0xc01   :  { %2485 = vadd.xlane.f32.xlu1 %v2484_v36 }
 0xc05   :  { %2482 = vadd.xlane.f32.xlu1 %v2481_v3 }
 0xc09   :  { %2532 = vadd.xlane.f32.xlu1 %v2531_v44 }
 0xc82   :  { %v2492_v2 = vpop.xlane.xlu1 %2491 }
 0xc83   :  { %4593 = vrsqrt.f32 %v2492_v2  ;;  %vm2516_vm8 = vcmp.eq.f32.partialorder %v2492_v2, inf  ;;  %v2519_v20 = vand.u32 2147483648, %v2492_v2  ;;  %vm2518_vm12 = vcmp.eq.f32.partialorder %v2492_v2, 0.0 }
 0xc86   :  { %v2489_v6 = vpop.xlane.xlu1 %2488 }
 0xc87   :  { %4595 = vrsqrt.f32 %v2489_v6  ;;  %vm2509_vm9 = vcmp.eq.f32.partialorder %v2489_v6, inf  ;;  %v2512_v61 = vand.u32 2147483648, %v2489_v6  ;;  %vm2511_vm5 = vcmp.eq.f32.partialorder %v2489_v6, 0.0 }
 0xc8a   :  { %v2486_v8 = vpop.xlane.xlu1 %2485 }
 0xc8b   :  { %4597 = vrsqrt.f32 %v2486_v8  ;;  %vm2502_vm4 = vcmp.eq.f32.partialorder %v2486_v8, inf  ;;  %v2505_v23 = vand.u32 2147483648, %v2486_v8  ;;  %vm2504_vm15 = vcmp.eq.f32.partialorder %v2486_v8, 0.0 }
 0xc8e   :  { %v2483_v16 = vpop.xlane.xlu1 %2482 }
 0xc8f   :  { %4599 = vrsqrt.f32 %v2483_v16 }
 0xc90   :  { %v4594_v19 = vpop.eup %4593 }
 0xc91   :  { %v2515_v46 = vmul.f32 %v4594_v19, %v2492_v2 }
 0xc92   :  { %v2533_v1 = vpop.xlane.xlu1 %2532 }
 0xc93   :  { %v2517_v26 = vsel %vm2516_vm8, %v2492_v2, %v2515_v46  ;;  %4601 = vrsqrt.f32 %v2533_v1  ;;  %vm2495_vm8 = vcmp.eq.f32.partialorder %v2483_v16, inf  ;;  %v2498_v46 = vand.u32 2147483648, %v2483_v16 }
 0xc94   :  { %v4596_v59 = vpop.eup %4595  ;;  %v2520_v60 = vsel %vm2518_vm12, %v2519_v20, %v2517_v26  ;;  %vm2497_vm12 = vcmp.eq.f32.partialorder %v2483_v16, 0.0 }
 0xc95   :  { %v2524_v25 = vadd.f32 1e-06, %v2520_v60  ;;  %v2508_v27 = vmul.f32 %v4596_v59, %v2489_v6 }
 0xc97   :  { %4603 = vrcp.f32 %v2524_v25  ;;  %v2510_v58 = vsel %vm2509_vm9, %v2489_v6, %v2508_v27  ;;  %vm2536_vm9 = vcmp.eq.f32.partialorder %v2533_v1, inf  ;;  %v2539_v25 = vand.u32 2147483648, %v2533_v1 }
 0xc98   :  { %v4598_v11 = vpop.eup %4597  ;;  %v2513_v35 = vsel %vm2511_vm5, %v2512_v61, %v2510_v58  ;;  %vm2538_vm5 = vcmp.eq.f32.partialorder %v2533_v1, 0.0 }
 0xc99   :  { %v2523_v48 = vadd.f32 1e-06, %v2513_v35  ;;  %v2501_v36 = vmul.f32 %v4598_v11, %v2486_v8 }
 0xc9b   :  { %4605 = vrcp.f32 %v2523_v48  ;;  %v2503_v3 = vsel %vm2502_vm4, %v2486_v8, %v2501_v36  ;;  %vm2731_vm4 = vcmp.eq.f32.partialorder %v6126_v40, %v6102_v28 }
 0xc9c   :  { %v4600_v38 = vpop.eup %4599  ;;  %v2506_v44 = vsel %vm2504_vm15, %v2505_v23, %v2503_v3  ;;  %vm2728_vm15 = vcmp.eq.f32.partialorder %v6117_v50, %v6102_v28 }
 0xc9d   :  { %v2522_v2 = vadd.f32 1e-06, %v2506_v44  ;;  %v2494_v19 = vmul.f32 %v4600_v38, %v2483_v16 }
 0xc9f   :  { %4607 = vrcp.f32 %v2522_v2  ;;  %v2496_v20 = vsel %vm2495_vm8, %v2483_v16, %v2494_v19  ;;  %v4065_v19 = vsel %vm2731_vm4, 1.0, %v6999_v32  ;;  %vm7107_vm8 = vcmask 196608  }
 0xca0   :  { %v4602_v26 = vpop.eup %4601  ;;  %v2499_v6 = vsel %vm2497_vm12, %v2498_v46, %v2496_v20  ;;  %v2743_v20 = vmul.f32 %v4065_v19, %v5189_v34  ;;  %vm7108_vm12 = vcmask 203776   ;;  %v2758_v19 = vsub.f32 1.0, %v6183_v4 }
 0xca1   :  { %v2521_v59 = vadd.f32 1e-06, %v2499_v6  ;;  %v2535_v60 = vmul.f32 %v4602_v26, %v2533_v1  ;;  %v4062_v6 = vsel %vm2728_vm15, 1.0, %v6999_v32  ;;  %v1271_v40 = vsel %vm7108_vm12, %v5780_v42, -inf }
 0xca2   :  { %v2753_v26 = vsel %vm7107_vm8, %v2743_v20, -inf  ;;  %v2757_v20 = vsub.f32 1.0, %v6185_v14 }
 0xca3   :  { %4609 = vrcp.f32 %v2521_v59  ;;  %v2537_v27 = vsel %vm2536_vm9, %v2533_v1, %v2535_v60  ;;  %v2740_v59 = vmul.f32 %v4062_v6, %v5217_v18  ;;  %vm7109_vm9 = vmmov %vm7108_vm12  ;;  %v3998_v6 = vld [vmem:[%s6886_s5 + $0x78] sm:$0xff] }
 0xca4   :  { %v4604_v61 = vpop.eup %4603  ;;  %v2540_v8 = vsel %vm2538_vm5, %v2539_v25, %v2537_v27  ;;  %v1240_v25 = vsel %vm449_vm7, %v5592_v17, -inf  ;;  %vm7110_vm5 = vcmask 523264   ;;  %vm7113_vm8 = vmmov %vm7109_vm9 }
 0xca5   :  { %v2541_v58 = vadd.f32 1e-06, %v2540_v8  ;;  %v2547_v11 = vmul.f32 %v4604_v61, %v6245_v41  ;;  %v2744_v60 = vsel %vm7109_vm9, %v2740_v59, -inf  ;;  %v1239_v27 = vsel %vm7110_vm5, %v5628_v13, -inf  ;;  %vm7111_vm4 = vmmov %vm7110_vm5 }
 0xca6   :  { %v1238_v28 = vsel %vm7111_vm4, %v5639_v29, -inf  ;;  %vm7112_vm15 = vmmov %vm7111_vm4  ;;  %v1265_v42 = vsel %vm7113_vm8, %v5757_v45, -inf  ;;  %v1242_v8 = vmax.f32 %v1239_v27, %v1240_v25  ;;  %v2777_v59 = vmul.f32 %v6140_v55, %v2758_v19  ;;  %v7120_v27 = vld [vmem:[#allocation21_spill] sm:$0xff] }
 0xca7   :  { %4611 = vrcp.f32 %v2541_v58  ;;  %4431 = vmatpush3.xpose.msk.msra.mxu1 %vm843_vm6, %v2547_v11  ;;  %v1237_v50 = vsel %vm7112_vm15, %v5645_v52, -inf  ;;  %v7114_v58 = vld [vmem:[#allocation16_spill] sm:$0xff]  ;;  %vm7115_vm12 = vmmov %vm7113_vm8  ;;  %v2776_v25 = vmul.f32 %v6130_v56, %v2757_v20  ;;  %vm1386_vm15 = vcmask 1040896  }
 0xca8   :  { %v4606_v35 = vpop.eup %4605  ;;  %4432 = vmatprep.subr.mxu1 %v6999_v32  ;;  %v1241_v61 = vmax.f32 %v1237_v50, %v1238_v28  ;;  %v1259_v11 = vsel %vm7115_vm12, %v7114_v58, -inf  ;;  %vm7117_vm9 = vmmov %vm7113_vm8 }
 0xca9   :  { %v2546_v16 = vmul.f32 %v4606_v35, %v6256_v54  ;;  %vm7121_vm5 = vmmov %vm7113_vm8  ;;  %vm7129_vm8 = vcmask 523265  }
 0xcaa   :  { %v1243_v35 = vmax.f32 %v1241_v61, %v1242_v8  ;;  %vm7124_vm4 = vmmov %vm7121_vm5 }
 0xcab   :  { %4433 = vmatpush3.xpose.msk.msra.mxu1 %vm843_vm6, %v2546_v16  ;;  %v7116_v16 = vld [vmem:[#allocation15_spill] sm:$0xff]  ;;  %vm7130_vm12 = vmmov %vm7129_vm8 }
 0xcac   :  { %v4608_v48 = vpop.eup %4607  ;;  %4434 = vmatprep.subr.mxu1 %v6999_v32 }
 0xcad   :  { %v2545_v1 = vmul.f32 %v4608_v48, %v6231_v33  ;;  %v1253_v48 = vsel %vm7117_vm9, %v7116_v16, -inf }
 0xcaf   :  { %4435 = vmatpush3.xpose.msk.msra.mxu1 %vm843_vm6, %v2545_v1  ;;  %v1244_v1 = vrot.slane %v1243_v35, 4 }
 0xcb0   :  { %v4610_v36 = vpop.eup %4609  ;;  %4436 = vmatprep.subr.mxu1 %v6999_v32 }
 0xcb1   :  { %v2544_v41 = vmul.f32 %v4610_v36, %v6238_v43  ;;  %v1245_v29 = vmax.f32 %v1243_v35, %v1244_v1 }
 0xcb3   :  { %4437 = vmatpush3.xpose.msk.msra.mxu1 %vm843_vm6, %v2544_v41  ;;  %v1246_v36 = vrot.slane %v1245_v29, 2  ;;  %v7118_v41 = vld [vmem:[#allocation13_spill] sm:$0xff] }
 0xcb4   :  { %v4612_v23 = vpop.eup %4611  ;;  %4452 = vmatprep.subr.mxu1 %v6999_v32 }
 0xcb5   :  { %v2543_v54 = vmul.f32 %v4612_v23, %v5851_v22  ;;  %v1247_v52 = vmax.f32 %v1245_v29, %v1246_v36  ;;  %v2858_v23 = vmul.f32 %v7118_v41, %v5534_v63  ;;  %v7122_v36 = vld [vmem:[#allocation20_spill] sm:$0xff] }
 0xcb7   :  { %4439 = vmatmul.mubr.msk.f32.vlgmr.msra.gmra.mxu1 %vm843_vm6, %v2543_v54  ;;  %v1248_v45 = vrot.slane %v1247_v52, 1  ;;  %v7119_v54 = vld [vmem:[#allocation14_spill] sm:$0xff] }
 0xcb8   :  { %4460 = vmatprep.mubr.msk.f32.mxu1 %vm7009_vm1, %v6999_v32 }
 0xd77   :  { %v2629_v33 = vpop.f32.mrf.mxu1 }
 0xd78   :  { %v2633_v3 = vsel %vm2149_vm0, %v2629_v33, -inf }
 0xd79   :  { %2634 = vmax.xlane.f32.xlu1 %v2633_v3  ;;  %v4440_v38 = vpop.f32.mrf.mxu1  ;;  %v1249_v3 = vmax.f32 %v1247_v52, %v1248_v45 }
 0xd7a   :  { %v4646_v38 = vld [vmem:[%s6885_s4 + $0x3] ss:$0 sm:$0xff] }
 0xe02   :  { %v2635_v44 = vpop.xlane.xlu1 %2634 }
 0xe03   :  { %v2636_v2 = vsub.f32 %v2629_v33, %v2635_v44  ;;  %v2870_v33 = vmul.f32 %v7119_v54, %v5534_v63  ;;  %v1369_v44 = vsub.f32 1.0, %v1249_v3 }
 0xe05   :  { %v2637_v43 = vmul.f32 1.442695, %v2636_v2 }
 0xe07   :  { %4613 = vpow2.f32 %v2637_v43 }
 0xe14   :  { %v6303_v22 = vpop.eup %4613 }
 0xe15   :  { %v2639_v46 = vsel %vm2149_vm0, %v6303_v22, 0.0 }
 0xe16   :  { %2640 = vadd.xlane.f32.xlu1 %v2639_v46 }
 0xe1a   :  { %2754 = vmax.xlane.f32.xlu1 %v2753_v26 }
 0xe1e   :  { %1272 = vmax.xlane.f32.xlu1 %v1271_v40 }
 0xe22   :  { %2745 = vmax.xlane.f32.xlu1 %v2744_v60 }
 0xe26   :  { %1266 = vmax.xlane.f32.xlu1 %v1265_v42 }
 0xe2a   :  { %1260 = vmax.xlane.f32.xlu1 %v1259_v11 }
 0xe2e   :  { %1254 = vmax.xlane.f32.xlu1 %v1253_v48 }
 0xe3f   :  { %2860 = vrot.lane.b32.xlu1 %v2858_v23, %s4720_s25  ;;  %s4729_s25 = smov [#allocation2]  }
 0xe43   :  { %2872 = vrot.lane.b32.xlu1 %v2870_v33, %s4722_s29  ;;  %s3849_s29 = sshll.u32 %s4729_s25, 4  ;;  %s3850_s29 = int_to_ptr.vmem [resolvable:$true] %s3849_s29 }
 0xe44   :  { %s4647_s18 = scalar_lea.vmem %s3850_s29, 32  ;;  %p4652_p1 = scmp.lt.s32.totalorder %s3850_s29, %s3850_s29 }
 0xe45   :  { %p4648_p0 = scmp.ne.s32.totalorder %s3850_s29, %s4647_s18  ;;  %p4653_p2 = scmp.lt.s32.totalorder %s4647_s18, %s4647_s18 }
 0xe47   :  { %1371 = vrot.lane.b32.xlu1 %v1369_v44, %s4713_s20  ;;  %v7123_v44 = vld [vmem:[#allocation19_spill] sm:$0xff]  ;;  %p4654_p3 = por %p4653_p2, %p4652_p1 }
 0xe49   :  { %p4655_p4 = pnand %p4654_p3, %p4648_p0 }
 0xe4b   :  { %1667 = vrot.lane.b32.xlu1 %v4646_v38, %s4727_s30 }
 0xe9f   :  { %v2641_v2 = vpop.xlane.xlu1 %2640 }
 0xea0   :  { %4615 = vrcp.f32 %v2641_v2 }
 0xea3   :  { %v2755_v43 = vpop.xlane.xlu1 %2754 }
 0xea4   :  { %v2759_v46 = vsub.f32 1.0, %v2755_v43 }
 0xea6   :  { %v2778_v26 = vmul.f32 %v6145_v21, %v2759_v46  ;;  %v2867_v46 = vpop.permute.xlu0 %2866 }
 0xea7   :  { %v1273_v40 = vpop.xlane.xlu1 %1272 }
 0xea8   :  { %v1486_v60 = vsub.f32 1.0, %v1273_v40  ;;  %4453 = vmatpush3.msk.msra.mxu1 %vm507_vm13, %v2778_v26  ;;  %v2979_v26 = vmul.f32 %v6194_v31, %v6194_v31 }
 0xea9   :  { %4454 = vmatprep.subr.mxu1 %v6999_v32 }
 0xeaa   :  { %v1494_v4 = vmul.f32 %v3998_v6, %v1486_v60  ;;  %4455 = vmatpush3.msra.mxu1 %v2777_v59  ;;  %v7125_v6 = vld [vmem:[#allocation10_spill] sm:$0xff] }
 0xeab   :  { %4456 = vmatprep.subr.mxu1 %v6999_v32  ;;  %v2746_v14 = vpop.xlane.xlu1 %2745 }
 0xeac   :  { %v6352_v28 = vadd.f32 %v7120_v27, %v1494_v4  ;;  %v2756_v50 = vsub.f32 1.0, %v2746_v14  ;;  %4457 = vmatpush3.msra.mxu1 %v2776_v25  ;;  %v1377_v25 = vpop.permute.xlu0 %1376  ;;  %v1011_v4 = vld [vmem:[%s6885_s4 + $0x1] sm:$0x1]  ;;  %v2977_v27 = vmul.f32 %v6205_v12, %v6205_v12 }
 0xead   :  { %v4616_v42 = vpop.eup %4615  ;;  %4458 = vmatprep.subr.mxu1 %v6999_v32 }
 0xeae   :  { %v2643_v61 = vmul.f32 %v4616_v42, %v6303_v22  ;;  %4015 = vst.msk [vmem:[%s6894_s13 + $0x78] sm:$0xff] %vm843_vm6, %v6352_v28  ;;  %v2775_v8 = vmul.f32 %v6122_v51, %v2756_v50  ;;  %v2980_v38 = vmul.f32 %v6352_v28, %v6352_v28  ;;  %v7126_v50 = vld [vmem:[#allocation17_spill] sm:$0xff] }
 0xeaf   :  { %v1267_v11 = vpop.xlane.xlu1 %1266  ;;  %v2857_v42 = vmul.f32 %v7126_v50, %v5534_v63 }
 0xeb0   :  { %v1484_v35 = vsub.f32 1.0, %v1267_v11  ;;  %4450 = vmatmul.mubr.msk.f32.vlgmr.msra.gmra.mxu0 %vm7121_vm5, %v2643_v61  ;;  %4459 = vmatpush3.msra.mxu1 %v2775_v8  ;;  %v2721_v16 = vrot.slane %v2643_v61, 1  ;;  %v1716_v11 = vpop.permute.xlu0 %1715 }
 0xeb1   :  { %4464 = vmatpush3.xpose.msk.msra.mxu0 %vm843_vm6, %v6352_v28  ;;  %4482 = vmatprep.subr.mxu1 %v6999_v32 }
 0xeb2   :  { %4465 = vmatprep.subr.mxu0 %v6999_v32  ;;  %v2723_v48 = vmul.f32 %v2721_v16, %v2643_v61  ;;  %4479 = vmatprep.mubr.msk.f32.mxu0 %vm7009_vm1, %v6999_v32 }
 0xeb3   :  { %v1261_v29 = vpop.xlane.xlu1 %1260 }
 0xeb4   :  { %v1482_v41 = vsub.f32 1.0, %v1261_v29  ;;  %v2725_v23 = vrot.slane %v2723_v48, 2 }
 0xeb5   :  { %v3996_v58 = vld [vmem:[%s6886_s5 + $0x68] sm:$0xff]  ;;  %v3994_v1 = vld [vmem:[%s6886_s5 + $0x58] sm:$0xff]  ;;  %4466 = vmatpush3.xpose.msk.msra.mxu0 %vm843_vm6, %v6194_v31 }
 0xeb6   :  { %v1492_v22 = vmul.f32 %v3996_v58, %v1484_v35  ;;  %v1490_v45 = vmul.f32 %v3994_v1, %v1482_v41  ;;  %4467 = vmatprep.subr.mxu0 %v6999_v32  ;;  %v2727_v54 = vmul.f32 %v2725_v23, %v2723_v48  ;;  %v1719_v48 = vmul.f32 %v5592_v17, %v1716_v11 }
 0xeb7   :  { %v1255_v3 = vpop.xlane.xlu1 %1254 }
 0xeb8   :  { %v6376_v52 = vadd.f32 %v7122_v36, %v1492_v22  ;;  %v6392_v2 = vadd.f32 %v7123_v44, %v1490_v45  ;;  %v1480_v43 = vsub.f32 1.0, %v1255_v3  ;;  %4461 = vmatmul.mubr.msk.f32.vlgmr.msra.gmra.mxu1 %vm7124_vm4, %v2727_v54  ;;  %v2975_v36 = vmul.f32 %v6216_v5, %v6216_v5 }
 0xeb9   :  { %4483 = vmatpush3.xpose.msk.msra.mxu1 %vm843_vm6, %v2980_v38  ;;  %4498 = vmatprep.mubr.msk.f32.mxu1 %vm7009_vm1, %v6999_v32  ;;  %v1723_v23 = vsel %vm449_vm7, %v1719_v48, 0.0  ;;  %v2973_v54 = vmul.f32 %v6224_v39, %v6224_v39 }
 0xeba   :  { %4013 = vst.msk [vmem:[%s6894_s13 + $0x68] sm:$0xff] %vm843_vm6, %v6376_v52  ;;  %4468 = vmatpush3.xpose.msk.msra.mxu0 %vm843_vm6, %v6376_v52  ;;  %4484 = vmatprep.subr.mxu1 %v6999_v32  ;;  %v2978_v60 = vmul.f32 %v6376_v52, %v6376_v52  ;;  %v2976_v63 = vmul.f32 %v6392_v2, %v6392_v2 }
 0xebb   :  { %4469 = vmatprep.subr.mxu0 %v6999_v32  ;;  %v2861_v20 = vpop.permute.xlu1 %2860 }
 0xebc   :  { %v2863_v8 = vadd.f32 %v2861_v20, %v2857_v42 }
 0xebd   :  { %4485 = vmatpush3.xpose.msk.msra.mxu1 %vm843_vm6, %v2979_v26  ;;  %v2763_v26 = vsel %vm449_vm7, %v6145_v21, -inf }
 0xebe   :  { %4470 = vmatpush3.xpose.msk.msra.mxu0 %vm843_vm6, %v6205_v12  ;;  %4486 = vmatprep.subr.mxu1 %v6999_v32  ;;  %v2869_v1 = vadd.f32 %v2867_v46, %v2863_v8 }
 0xebf   :  { %4471 = vmatprep.subr.mxu0 %v6999_v32  ;;  %v2873_v59 = vpop.permute.xlu1 %2872 }
 0xec0   :  { %v6469_v41 = vadd.f32 %v2873_v59, %v2869_v1  ;;  %v4016_v59 = vld [vmem:[%s6888_s7 + $0x8] sm:$0xff] }
 0xec1   :  { %v3992_v33 = vld [vmem:[%s6886_s5 + $0x48] sm:$0xff]  ;;  %4487 = vmatpush3.xpose.msk.msra.mxu1 %vm843_vm6, %v2978_v60 }
 0xec2   :  { %4011 = vst.msk [vmem:[%s6894_s13 + $0x58] sm:$0xff] %vm843_vm6, %v6392_v2  ;;  %v1488_v19 = vmul.f32 %v3992_v33, %v1480_v43  ;;  %4472 = vmatpush3.xpose.msk.msra.mxu0 %vm843_vm6, %v6392_v2  ;;  %4488 = vmatprep.subr.mxu1 %v6999_v32  ;;  %v7131_v43 = vld [vmem:[#allocation11_spill] sm:$0xff] }
 0xec3   :  { %4473 = vmatprep.subr.mxu0 %v6999_v32  ;;  %v6432_v14 = vpop.permute.xlu1 %1371  ;;  %vm7132_vm9 = vcmp.gt.s32.totalorder %v7131_v43, 0 }
 0xec4   :  { %v6410_v40 = vadd.f32 %v7125_v6, %v1488_v19  ;;  %v1374_v61 = vmul.f32 %v6432_v14, %v1011_v4 }
 0xec5   :  { %4489 = vmatpush3.xpose.msk.msra.mxu1 %vm843_vm6, %v2977_v27 }
 0xec6   :  { %4009 = vst.msk [vmem:[%s6894_s13 + $0x48] sm:$0xff] %vm843_vm6, %v6410_v40  ;;  %4474 = vmatpush3.xpose.msk.msra.mxu0 %vm843_vm6, %v6216_v5  ;;  %v6442_v58 = vadd.f32 %v1377_v25, %v1374_v61  ;;  %4490 = vmatprep.subr.mxu1 %v6999_v32  ;;  %v2974_v45 = vmul.f32 %v6410_v40, %v6410_v40 }
 0xec7   :  { %4475 = vmatprep.subr.mxu0 %v6999_v32  ;;  %v1668_v35 = vpop.permute.xlu1 %1667 }
 0xec8   :  { %1387 = vst.msk [vmem:[#allocation4 + $0x1] sm:$0x1] %vm1386_vm15, %v6442_v58  ;;  %v1670_v16 = vmul.f32 %v5097_v15, %v1668_v35  ;;  %v6453_v22 = vrot.slane %v6442_v58, %v4847_v9  ;;  %v4641_v35 = vld [vmem:[%s6885_s4] sm:$0x1] }
 0xec9   :  { %4491 = vmatpush3.xpose.msk.msra.mxu1 %vm843_vm6, %v2976_v63 }
 0xeca   :  { %4476 = vmatpush3.xpose.msk.msra.mxu0 %vm843_vm6, %v6410_v40  ;;  %1699 = vrot.lane.b32.xlu1 %v6453_v22, %s4713_s20  ;;  %v1671_v29 = vsel %vm874_vm14, %v1670_v16, 0.0 }
 0xecb   :  { %4477 = vmatprep.subr.mxu0 %v6999_v32  ;;  %4492 = vmatprep.subr.mxu1 %v6999_v32 }
 0xecc   :  { %1672 = vadd.xlane.f32.xlu0 %v1671_v29 }
 0xecd   :  { %4493 = vmatpush3.xpose.msk.msra.mxu1 %vm843_vm6, %v2975_v36 }
 0xece   :  { %4478 = vmatpush3.xpose.msk.msra.mxu0 %vm843_vm6, %v6224_v39  ;;  %4494 = vmatprep.subr.mxu1 %v6999_v32 }
 0xecf   :  { %4501 = vmatprep.subr.mxu0 %v6352_v28 }
 0xed0   :  { %1724 = vadd.xlane.f32.xlu0 %v1723_v23 }
 0xed1   :  { %4480 = vmatmul.mubr.msk.f32.vlgmr.msra.gmra.mxu0 %vm843_vm6, %v6469_v41  ;;  %4495 = vmatpush3.xpose.msk.msra.mxu1 %vm843_vm6, %v2974_v45 }
 0xed2   :  { %4502 = vmatpush3.msra.mxu0 %v6352_v28  ;;  %4496 = vmatprep.subr.mxu1 %v6999_v32  ;;  %v7127_v28 = vmov 1.0  }
 0xed3   :  { %4503 = vmatprep.subr.mxu0 %v6194_v31 }
 0xed4   :  { %4504 = vmatpush3.msra.mxu0 %v6194_v31  ;;  %v7128_v31 = vld [vmem:[#allocation12_spill] sm:$0xff] }
 0xed5   :  { %4505 = vmatprep.subr.mxu0 %v6376_v52  ;;  %4497 = vmatpush3.xpose.msk.msra.mxu1 %vm843_vm6, %v2973_v54 }
 0xed6   :  { %4506 = vmatpush3.msra.mxu0 %v6376_v52  ;;  %4523 = vmatprep.subr.mxu1 %v6999_v32  ;;  %v1718_v52 = vmul.f32 %v5628_v13, %v1716_v11 }
 0xed7   :  { %4507 = vmatprep.subr.mxu0 %v6205_v12 }
 0xed8   :  { %4508 = vmatpush3.msra.mxu0 %v6205_v12  ;;  %4499 = vmatmul.mubr.msk.f32.vlgmr.msra.gmra.mxu1 %vm843_vm6, %v7127_v28  ;;  %v1652_v12 = vmul.f32 %v7128_v31, %v5860_v62  ;;  %v3093_v62 = vpop.permute.xlu0 %3092 }
 0xed9   :  { %4509 = vmatprep.subr.mxu0 %v6392_v2  ;;  %4531 = vmatprep.mubr.msk.f32.mxu1 %vm7009_vm1, %v6999_v32  ;;  %v3095_v19 = vsel %vm7132_vm9, 64.0, %v3093_v62 }
 0xeda   :  { %4510 = vmatpush3.msra.mxu0 %v6392_v2  ;;  %v1654_v33 = vsel %vm859_vm11, %v1652_v12, -inf  ;;  %v3100_v46 = vrot.slane %v3095_v19, %v4847_v9  ;;  %vm7133_vm11 = vcmask 523264  }
 0xedb   :  { %4511 = vmatprep.subr.mxu0 %v6216_v5  ;;  %v2762_v20 = vsel %vm7133_vm11, %v6140_v55, -inf  ;;  %vm7134_vm5 = vmmov %vm7133_vm11  ;;  %v7136_v55 = vmov 0   ;;  %vm7140_vm11 = vcmask 519168  }
 0xedc   :  { %4512 = vmatpush3.msra.mxu0 %v6216_v5  ;;  %v1720_v5 = vsel %vm7129_vm8, %v1718_v52, 0.0  ;;  %v2761_v6 = vsel %vm7134_vm5, %v6130_v56, -inf  ;;  %vm7135_vm4 = vmmov %vm7134_vm5  ;;  %v1659_v28 = vpop.xlane.xlu0 %1658  ;;  %vm7137_vm8 = vcmask 1046528   ;;  %vm7141_vm5 = vcmask 523265  }
 0xedd   :  { %4513 = vmatprep.subr.mxu0 %v6410_v40  ;;  %v2760_v60 = vsel %vm7135_vm4, %v6122_v51, -inf  ;;  %v1661_v52 = vsub.f32 1.0, %v1659_v28 }
 0xede   :  { %4514 = vmatpush3.msra.mxu0 %v6410_v40  ;;  %v2765_v40 = vmax.f32 %v2762_v20, %v2763_v26  ;;  %v2764_v25 = vmax.f32 %v2760_v60, %v2761_v6 }
 0xedf   :  { %4515 = vmatprep.subr.mxu0 %v6224_v39 }
 0xee0   :  { %4516 = vmatpush3.msra.mxu0 %v6224_v39  ;;  %v2766_v21 = vmax.f32 %v2764_v25, %v2765_v40 }
 0xee1   :  { %4534 = vmatprep.subr.mxu0 %v6999_v32 }
 0xee2   :  { %v2767_v4 = vrot.slane %v2766_v21, 4 }
 0xee4   :  { %v2768_v27 = vmax.f32 %v2766_v21, %v2767_v4 }
 0xee6   :  { %v2769_v56 = vrot.slane %v2768_v27, 2 }
 0xee8   :  { %v2770_v50 = vmax.f32 %v2768_v27, %v2769_v56 }
 0xeea   :  { %v2771_v42 = vrot.slane %v2770_v50, 1 }
 0xeec   :  { %v2772_v61 = vmax.f32 %v2770_v50, %v2771_v42 }
 0xeee   :  { %1655 = vmax.xlane.f32.xlu1 %v1654_v33  ;;  %v2773_v11 = vsub.f32 1.0, %v2772_v61 }
 0xef0   :  { %v2774_v63 = vmul.f32 %v4641_v35, %v2773_v11 }
 0xef2   :  { %1721 = vadd.xlane.f32.xlu1 %v1720_v5 }
 0xf3c   :  { %v1700_v3 = vpop.permute.xlu1 %1699 }
 0xf3d   :  { %v1702_v38 = vmul.f32 %v5628_v13, %v1700_v3  ;;  %v1703_v44 = vmul.f32 %v5592_v17, %v1700_v3  ;;  %v1675_v3 = vmul.f32 %v5592_v17, %v1661_v52  ;;  %v1726_v17 = vsub.f32 1.0, %v6442_v58 }
 0xf3f   :  { %v1707_v39 = vsel %vm449_vm7, %v1703_v44, 0.0  ;;  %v1704_v2 = vsel %vm7130_vm12, %v1702_v38, 0.0  ;;  %vm7138_vm12 = vmmov %vm7135_vm4  ;;  %v1732_v42 = vrot.slane %v1726_v17, %v4847_v9 }
 0xf40   :  { %1708 = vadd.xlane.f32.xlu0 %v1707_v39  ;;  %1705 = vadd.xlane.f32.xlu1 %v1704_v2  ;;  %vm7142_vm4 = vmmov %vm7137_vm8 }
 0xf51   :  { %3102 = vperm.xlu1 %4586, %v3100_v46  }
 0xf55   :  { %1740 = vrot.lane.b32.xlu1 %v5097_v15, %s4713_s20  ;;  %v1673_v12 = vpop.xlane.xlu0 %1672 }
 0xf56   :  { %1734 = vrot.lane.b32.xlu0 %v4016_v59, %s4713_s20  ;;  %4587 = vset.pattern.permute.xlu1 %v7136_v55  ;;  %v1677_v5 = vrot.slane %v1673_v12, 7  ;;  %v1738_v35 = vmul.f32 %v6453_v22, %v1673_v12 }
 0xf58   :  { %v1680_v44 = vmul.f32 %v1677_v5, %v1675_v3 }
 0xf59   :  { %v1725_v6 = vpop.xlane.xlu0 %1724 }
 0xf5a   :  { %v1684_v2 = vrot.slane %v1680_v44, 1 }
 0xf70   :  { %v2716_v8 = vpop.f32.mrf.mxu0 }
 0xf71   :  { %2720 = vst.msk [vmem:[%s6891_s10] sm:$0xf] %vm2530_vm10, %v2716_v8 }
 0xf72   :  { %v4451_v51 = vpop.f32.mrf.mxu0 }
 0xf77   :  { %v1656_v54 = vpop.xlane.xlu1 %1655 }
 0xf78   :  { %v2851_v16 = vpop.f32.mrf.mxu1  ;;  %v1660_v31 = vsub.f32 1.0, %v1656_v54  ;;  %v7139_v54 = vld [vmem:[#allocation18_spill] sm:$0xff] }
 0xf79   :  { %v2855_v48 = vadd.f32 %v2851_v16, %v2774_v63 }
 0xf7a   :  { %v4462_v1 = vpop.f32.mrf.mxu1  ;;  %v1674_v33 = vmul.f32 %v5628_v13, %v1660_v31  ;;  %v4017_v13 = vld [vmem:[%s6889_s8 + $0x8] sm:$0xff] }
 0xf7b   :  { %2856 = vst.msk [vmem:[#allocation4] sm:$0x1] %vm449_vm7, %v2855_v48  ;;  %v1722_v40 = vpop.xlane.xlu1 %1721  ;;  %v1749_v60 = vrot.slane %v4017_v13, 7 }
 0xf7c   :  { %v1679_v38 = vmul.f32 %v1677_v5, %v1674_v33  ;;  %v1771_v33 = vrot.slane %v1725_v6, 1 }
 0xf7e   :  { %v1683_v39 = vrot.slane %v1679_v38, 1 }
 0xf80   :  { %v1685_v62 = vsel %vm7137_vm8, %v1683_v39, %v1684_v2  ;;  %vm1775_vm8 = vcmask 1048064  }
 0xf81   :  { %v1687_v43 = vsel %vm7138_vm12, %v1685_v62, 0.0  ;;  %vm7143_vm12 = vmmov %vm7142_vm4 }
 0xf82   :  { %v1688_v19 = vrot.slane %v1687_v43, 4 }
 0xf84   :  { %v1689_v46 = vadd.f32 %v1688_v19, %v1687_v43 }
 0xf86   :  { %v1690_v20 = vrot.slane %v1689_v46, 2 }
 0xf88   :  { %v1691_v26 = vadd.f32 %v1690_v20, %v1689_v46 }
 0xf8a   :  { %v1692_v59 = vrot.slane %v1691_v26, 1 }
 0xf8c   :  { %v1693_v4 = vadd.f32 %v1692_v59, %v1691_v26 }
 0xf91   :  { %v2969_v29 = vpop.f32.mrf.mxu0 }
 0xf92   :  { %v3106_v50 = vmul.f32 2.0, %v2969_v29 }
 0xf93   :  { %v4481_v36 = vpop.f32.mrf.mxu0 }
 0xf98   :  { %v3071_v23 = vpop.f32.mrf.mxu1 }
 0xf99   :  { %v3110_v25 = vrot.slane %v3071_v23, %v4847_v9  ;;  %v1770_v23 = vrot.slane %v1722_v40, 1 }
 0xf9a   :  { %v4500_v45 = vpop.f32.mrf.mxu1 }
 0xf9b   :  { %v3111_v63 = vsub.f32 %v3106_v50, %v3110_v25  ;;  %v6565_v38 = vsel %vm7142_vm4, %v1770_v23, %v1771_v33 }
 0xfc9   :  { %v1709_v55 = vpop.xlane.xlu0 %1708  ;;  %v1706_v21 = vpop.xlane.xlu1 %1705 }
 0xfca   :  { %v1745_v27 = vsub.f32 1.0, %v1709_v55  ;;  %v1744_v56 = vsub.f32 1.0, %v1706_v21  ;;  %v1754_v8 = vmul.f32 %v1709_v55, %v1693_v4  ;;  %v1753_v11 = vmul.f32 %v1706_v21, %v1693_v4 }
 0xfcc   :  { %v1752_v61 = vmul.f32 %v1749_v60, %v1745_v27  ;;  %v1751_v51 = vmul.f32 %v1749_v60, %v1744_v56 }
 0xfcd   :  { %v1735_v16 = vpop.permute.xlu0 %1734  ;;  %v3103_v58 = vpop.permute.xlu1 %3102 }
 0xfce   :  { %v1756_v48 = vadd.f32 %v1754_v8, %v1752_v61  ;;  %v1755_v1 = vadd.f32 %v1753_v11, %v1751_v51  ;;  %v1737_v36 = vmul.f32 %v1735_v16, %v1732_v42  ;;  %vm3105_vm9 = vcmp.lt.f32.partialorder %v5256_v7, %v3103_v58 }
 0xfcf   :  { %v3112_v45 = vsel %vm3105_vm9, %v3111_v63, -1e+30  ;;  %vm7144_vm9 = vcmask 523264  }
 0xfd0   :  { %v1758_v29 = vmul.f32 %v1756_v48, %v7139_v54  ;;  %v1757_v28 = vmul.f32 %v1755_v1, %v7139_v54  ;;  %v1739_v31 = vadd.f32 %v1738_v35, %v1737_v36  ;;  %v3113_v52 = vsel %vm7140_vm11, %v3112_v45, -inf  ;;  %vm7145_vm11 = vmmov %vm7144_vm9 }
 0xfd1   :  { %v1741_v5 = vpop.permute.xlu1 %1740  ;;  %3114 = vmax.xlane.f32.xlu1 %v3113_v52 }
 0xfd2   :  { %4020 = vst.msk [vmem:[%s6897_s16 + $0xf] sm:$0x1] %vm449_vm7, %v1758_v29  ;;  %v1784_v22 = vmul.f32 %v1758_v29, %v1725_v6  ;;  %v1783_v12 = vmul.f32 %v1757_v28, %v1722_v40  ;;  %v6562_v3 = vmul.f32 %v1741_v5, %v1739_v31 }
 0xfd3   :  { %4019 = vst.msk [vmem:[%s6897_s16 + $0x7] sm:$0xfe] %vm7141_vm5, %v1757_v28 }
 0xfd4   :  { %v1788_v44 = vrot.slane %v1784_v22, 1  ;;  %v1787_v39 = vrot.slane %v1783_v12, 1  ;;  %v1774_v2 = vmul.f32 %v6565_v38, %v6562_v3 }
 0xfd6   :  { %v1776_v62 = vsel %vm1775_vm8, %v1774_v2, 0.0  ;;  %v1789_v43 = vsel %vm7143_vm12, %v1787_v39, %v1788_v44 }
 0xfd7   :  { %v1777_v19 = vrot.slane %v1776_v62, 4  ;;  %v1791_v46 = vsel %vm7144_vm9, %v1789_v43, 0.0  ;;  %v7151_v43 = vld [vmem:[#allocation24_spill] sm:$0xff] }
 0xfd8   :  { %v1792_v20 = vrot.slane %v1791_v46, 4 }
 0xfd9   :  { %v1778_v26 = vadd.f32 %v1777_v19, %v1776_v62 }
 0xfda   :  { %v1793_v6 = vadd.f32 %v1792_v20, %v1791_v46 }
 0xfdb   :  { %v1779_v40 = vrot.slane %v1778_v26, 2 }
 0xfdc   :  { %v1794_v13 = vrot.slane %v1793_v6, 2 }
 0xfdd   :  { %v1780_v59 = vadd.f32 %v1779_v40, %v1778_v26  ;;  %v7152_v40 = vld [vmem:[#allocation23_spill] sm:$0xff] }
 0xfde   :  { %v1795_v17 = vadd.f32 %v1794_v13, %v1793_v6 }
 0xfdf   :  { %v1781_v60 = vrot.slane %v1780_v59, 1 }
 0xfe0   :  { %v1796_v25 = vrot.slane %v1795_v17, 1 }
 0xfe1   :  { %v1782_v55 = vadd.f32 %v1781_v60, %v1780_v59 }
 0xfe2   :  { %1826 = vrot.lane.b32.xlu1 %v5256_v7, %s4713_s20  ;;  %v1797_v4 = vadd.f32 %v1796_v25, %v1795_v17 }
 0xfe3   :  { %v3187_v21 = vsel %vm1775_vm8, %v1782_v55, -inf  ;;  %vm7146_vm8 = vmmov %vm7144_vm9  ;;  %vm7147_vm9 = vcmask 519168  }
 0xfe4   :  { %3188 = vmax.xlane.f32.xlu0 %v3187_v21  ;;  %v3255_v27 = vsel %vm7145_vm11, %v1797_v4, -inf }
 0xfe8   :  { %3256 = vmax.xlane.f32.xlu0 %v3255_v27 }
0x105a   :  { %v3115_v56 = vpop.xlane.xlu1 %3114 }
0x105b   :  { %vm3116_vm4 = vcmp.eq.f32.partialorder %v3112_v45, %v3115_v56 }
0x105c   :  { %v3117_v63 = vsel %vm3116_vm4, %v5256_v7, 64.0 }
0x105d   :  { %v3118_v16 = vsel %vm7147_vm9, %v3117_v63, inf }
0x105e   :  { %v6576_v50 = vpop.permute.xlu1 %1826 }
0x106d   :  { %v3189_v42 = vpop.xlane.xlu0 %3188 }
0x106e   :  { %vm3190_vm5 = vcmp.eq.f32.partialorder %v1782_v55, %v3189_v42 }
0x106f   :  { %v3191_v61 = vsel %vm3190_vm5, %v6576_v50, 64.0 }
0x1070   :  { %v3192_v8 = vsel %vm1386_vm15, %v3191_v61, inf }
0x1071   :  { %v3257_v51 = vpop.xlane.xlu0 %3256  ;;  %3193 = vmin.xlane.f32.xlu0 %v3192_v8 }
0x1072   :  { %vm3258_vm12 = vcmp.eq.f32.partialorder %v1797_v4, %v3257_v51 }
0x1073   :  { %v3259_v11 = vsel %vm3258_vm12, %v5256_v7, 64.0  ;;  %vm7148_vm12 = vmmov %vm7147_vm9 }
0x1074   :  { %v3260_v35 = vsel %vm7146_vm8, %v3259_v11, inf }
0x1075   :  { %3261 = vmin.xlane.f32.xlu0 %v3260_v35 }
0x1079   :  { %3119 = vmin.xlane.f32.xlu0 %v3118_v16 }
0x108f   :  { %3199 = vrot.lane.b32.xlu0 %v1782_v55, %s4713_s20 }
0x10fa   :  { %v6585_v58 = vpop.xlane.xlu0 %3193 }
0x10fb   :  { %vm3197_vm4 = vcmp.eq.f32.partialorder %v5256_v7, %v6585_v58 }
0x10fe   :  { %v6587_v48 = vpop.xlane.xlu0 %3261 }
0x10ff   :  { %vm3268_vm11 = vcmp.eq.f32.partialorder %v5256_v7, %v6587_v48 }
0x1100   :  { %v3269_v54 = vsel %vm3268_vm11, -2e+30, %v1797_v4 }
0x1101   :  { %v3270_v52 = vsel %vm7146_vm8, %v3269_v54, -inf }
0x1102   :  { %v3120_v1 = vpop.xlane.xlu0 %3119 }
0x1103   :  { %vm3130_vm5 = vcmp.eq.f32.partialorder %v5256_v7, %v3120_v1  ;;  %v3121_v19 = vmul.f32 %v7151_v43, %v3120_v1 }
0x1104   :  { %v3131_v36 = vsel %vm3130_vm5, -2e+30, %v3112_v45  ;;  %vm7149_vm5 = vmmov %vm7148_vm12 }
0x1105   :  { %v3132_v23 = vsel %vm7148_vm12, %v3131_v36, -inf  ;;  %v3122_v46 = vsel %vm2149_vm0, %v3121_v19, 0.0 }
0x1106   :  { %3133 = vmax.xlane.f32.xlu1 %v3132_v23  ;;  %v3200_v29 = vpop.permute.xlu0 %3199  ;;  %v3123_v20 = vrot.slane %v3122_v46, 4 }
0x1107   :  { %v3202_v28 = vsel %vm3197_vm4, -2e+30, %v3200_v29  ;;  %vm7150_vm4 = vmmov %vm7146_vm8 }
0x1108   :  { %v3203_v31 = vsel %vm449_vm7, %v3202_v28, -inf  ;;  %v3124_v26 = vadd.f32 %v3123_v20, %v3122_v46  ;;  %v1012_v46 = vld [vmem:[%s6885_s4 + $0x2] sm:$0x1] }
0x1109   :  { %3204 = vmax.xlane.f32.xlu0 %v3203_v31 }
0x110a   :  { %3271 = vmax.xlane.f32.xlu1 %v3270_v52  ;;  %v3125_v59 = vrot.slane %v3124_v26, 2 }
0x110c   :  { %v3126_v4 = vadd.f32 %v3125_v59, %v3124_v26 }
0x110e   :  { %v3127_v51 = vrot.slane %v3126_v4, 1 }
0x1110   :  { %v3128_v1 = vadd.f32 %v3127_v51, %v3126_v4 }
0x118f   :  { %v3134_v33 = vpop.xlane.xlu1 %3133 }
0x1190   :  { %vm3135_vm9 = vcmp.eq.f32.partialorder %v3131_v36, %v3134_v33 }
0x1191   :  { %v3136_v5 = vsel %vm3135_vm9, %v5256_v7, 64.0  ;;  %vm7153_vm9 = vmmov %vm7149_vm5 }
0x1192   :  { %v3205_v45 = vpop.xlane.xlu0 %3204  ;;  %v3137_v22 = vsel %vm7149_vm5, %v3136_v5, inf }
0x1193   :  { %vm3206_vm11 = vcmp.eq.f32.partialorder %v3202_v28, %v3205_v45  ;;  %3138 = vmin.xlane.f32.xlu1 %v3137_v22  ;;  %v3272_v12 = vpop.xlane.xlu1 %3271 }
0x1194   :  { %v3207_v44 = vsel %vm3206_vm11, %v5256_v7, 64.0  ;;  %vm3273_vm12 = vcmp.eq.f32.partialorder %v3269_v54, %v3272_v12  ;;  %v1381_v12 = vrot.slane %v5908_v24, 1 }
0x1195   :  { %v3208_v39 = vsel %vm449_vm7, %v3207_v44, inf  ;;  %v3274_v2 = vsel %vm3273_vm12, %v5256_v7, 64.0  ;;  %vm7154_vm12 = vmmov %vm7150_vm4 }
0x1196   :  { %v3275_v62 = vsel %vm7150_vm4, %v3274_v2, inf }
0x1197   :  { %3209 = vmin.xlane.f32.xlu1 %v3208_v39  ;;  %v7157_v39 = vld [vmem:[#allocation25_spill] sm:$0xff] }
0x119b   :  { %3276 = vmin.xlane.f32.xlu1 %v3275_v62 }
0x121c   :  { %v3139_v6 = vpop.xlane.xlu1 %3138 }
0x121d   :  { %v3140_v13 = vmul.f32 %v7152_v40, %v3139_v6  ;;  %vm3149_vm8 = vcmp.eq.f32.partialorder %v5256_v7, %v3139_v6  ;;  %v1380_v40 = vmul.f32 %v6432_v14, %v1012_v46 }
0x121e   :  { %v3150_v17 = vsel %vm3149_vm8, -2e+30, %v3131_v36  ;;  %vm7155_vm8 = vmmov %vm7153_vm9 }
0x121f   :  { %v3141_v60 = vsel %vm2149_vm0, %v3140_v13, 0.0  ;;  %v3151_v25 = vsel %vm7153_vm9, %v3150_v17, -inf }
0x1220   :  { %v3142_v55 = vrot.slane %v3141_v60, 4  ;;  %3152 = vmax.xlane.f32.xlu0 %v3151_v25  ;;  %v6609_v21 = vpop.xlane.xlu1 %3209 }
0x1221   :  { %vm3219_vm5 = vcmp.eq.f32.partialorder %v5256_v7, %v6609_v21 }
0x1222   :  { %v3143_v27 = vadd.f32 %v3142_v55, %v3141_v60  ;;  %v3220_v56 = vsel %vm3219_vm5, -2e+30, %v3202_v28 }
0x1223   :  { %v3221_v42 = vsel %vm449_vm7, %v3220_v56, -inf }
0x1224   :  { %v3144_v61 = vrot.slane %v3143_v27, 2  ;;  %3222 = vmax.xlane.f32.xlu1 %v3221_v42  ;;  %v6614_v8 = vpop.xlane.xlu1 %3276 }
0x1225   :  { %vm3283_vm11 = vcmp.eq.f32.partialorder %v5256_v7, %v6614_v8 }
0x1226   :  { %v3145_v11 = vadd.f32 %v3144_v61, %v3143_v27  ;;  %v3284_v35 = vsel %vm3283_vm11, -2e+30, %v3269_v54  ;;  %vm7156_vm11 = vmmov %vm7154_vm12 }
0x1227   :  { %v3285_v63 = vsel %vm7154_vm12, %v3284_v35, -inf }
0x1228   :  { %v3146_v16 = vrot.slane %v3145_v11, 1  ;;  %3286 = vmax.xlane.f32.xlu0 %v3285_v63 }
0x122a   :  { %v3147_v36 = vadd.f32 %v3146_v16, %v3145_v11 }
0x122c   :  { %v3148_v23 = vadd.f32 %v3147_v36, %v3128_v1 }
0x12a9   :  { %v3153_v29 = vpop.xlane.xlu0 %3152 }
0x12aa   :  { %vm3154_vm4 = vcmp.eq.f32.partialorder %v3150_v17, %v3153_v29 }
0x12ab   :  { %v3155_v28 = vsel %vm3154_vm4, %v5256_v7, 64.0  ;;  %vm7158_vm4 = vmmov %vm7155_vm8 }
0x12ac   :  { %v3156_v31 = vsel %vm7155_vm8, %v3155_v28, inf }
0x12ad   :  { %v3223_v52 = vpop.xlane.xlu1 %3222  ;;  %3157 = vmin.xlane.f32.xlu1 %v3156_v31 }
0x12ae   :  { %vm3224_vm9 = vcmp.eq.f32.partialorder %v3220_v56, %v3223_v52 }
0x12af   :  { %v3225_v33 = vsel %vm3224_vm9, %v5256_v7, 64.0 }
0x12b0   :  { %v3226_v54 = vsel %vm449_vm7, %v3225_v33, inf }
0x12b1   :  { %3227 = vmin.xlane.f32.xlu0 %v3226_v54  ;;  %v3287_v5 = vpop.xlane.xlu0 %3286 }
0x12b2   :  { %vm3288_vm5 = vcmp.eq.f32.partialorder %v3284_v35, %v3287_v5 }
0x12b3   :  { %v3289_v45 = vsel %vm3288_vm5, %v5256_v7, 64.0  ;;  %vm7159_vm5 = vmmov %vm7156_vm11 }
0x12b4   :  { %v3290_v22 = vsel %vm7156_vm11, %v3289_v45, inf }
0x12b5   :  { %3291 = vmin.xlane.f32.xlu1 %v3290_v22 }
0x12c7   :  { %1382 = vrot.lane.b32.xlu0 %v1381_v12, %s4713_s20 }
0x1336   :  { %v3158_v44 = vpop.xlane.xlu1 %3157 }
0x1337   :  { %v3159_v2 = vmul.f32 %v7157_v39, %v3158_v44  ;;  %vm3168_vm12 = vcmp.eq.f32.partialorder %v5256_v7, %v3158_v44  ;;  %v3212_v44 = vrot.slane %v6609_v21, 7  ;;  %v3263_v21 = vmul.f32 %v5082_v10, %v6587_v48 }
0x1338   :  { %v3169_v62 = vsel %vm3168_vm12, -2e+30, %v3150_v17  ;;  %vm7160_vm12 = vmmov %vm7158_vm4 }
0x1339   :  { %v3160_v43 = vsel %vm2149_vm0, %v3159_v2, 0.0  ;;  %v3170_v19 = vsel %vm7158_vm4, %v3169_v62, -inf }
0x133a   :  { %v3161_v20 = vrot.slane %v3160_v43, 4  ;;  %3171 = vmax.xlane.f32.xlu1 %v3170_v19  ;;  %v3228_v26 = vpop.xlane.xlu0 %3227  ;;  %v3214_v19 = vmul.f32 %v5082_v10, %v3212_v44 }
0x133b   :  { %vm3237_vm8 = vcmp.eq.f32.partialorder %v5256_v7, %v3228_v26 }
0x133c   :  { %v3162_v24 = vadd.f32 %v3161_v20, %v3160_v43  ;;  %v3238_v6 = vsel %vm3237_vm8, -2e+30, %v3220_v56  ;;  %v3195_v20 = vmul.f32 %v5082_v10, %v6585_v58 }
0x133d   :  { %v3239_v13 = vsel %vm449_vm7, %v3238_v6, -inf }
0x133e   :  { %v3163_v59 = vrot.slane %v3162_v24, 2  ;;  %v6637_v17 = vpop.xlane.xlu1 %3291  ;;  %3240 = vmax.xlane.f32.xlu1 %v3239_v13  ;;  %v1383_v60 = vpop.permute.xlu0 %1382 }
0x133f   :  { %vm3298_vm9 = vcmp.eq.f32.partialorder %v5256_v7, %v6637_v17  ;;  %v1385_v25 = vadd.f32 %v1383_v60, %v1380_v40  ;;  %v3278_v60 = vmul.f32 %v5082_v10, %v6614_v8  ;;  %v3293_v58 = vmul.f32 %v5082_v10, %v6637_v17 }
0x1340   :  { %v3164_v55 = vadd.f32 %v3163_v59, %v3162_v24  ;;  %v3299_v4 = vsel %vm3298_vm9, -2e+30, %v3284_v35  ;;  %vm7161_vm9 = vmmov %vm7159_vm5 }
0x1341   :  { %1388 = vst.msk [vmem:[#allocation4 + $0x2] sm:$0x1] %vm1386_vm15, %v1385_v25  ;;  %v3300_v27 = vsel %vm7159_vm5, %v3299_v4, -inf  ;;  %v1821_v42 = vsel %vm1386_vm15, %v1385_v25, inf }
0x1342   :  { %v3165_v56 = vrot.slane %v3164_v55, 1  ;;  %3301 = vmax.xlane.f32.xlu1 %v3300_v27  ;;  %v3265_v27 = vrot.slane %v3263_v21, 4 }
0x1344   :  { %v3166_v14 = vadd.f32 %v3165_v56, %v3164_v55 }
0x1346   :  { %v3167_v61 = vadd.f32 %v3166_v14, %v3148_v23  ;;  %1822 = vmin.xlane.f32.xlu1 %v1821_v42  ;;  %v3280_v14 = vrot.slane %v3278_v60, 5 }
0x13c3   :  { %v3172_v51 = vpop.xlane.xlu1 %3171 }
0x13c4   :  { %vm3173_vm11 = vcmp.eq.f32.partialorder %v3169_v62, %v3172_v51  ;;  %v3230_v62 = vrot.slane %v3228_v26, 6  ;;  %v3295_v51 = vrot.slane %v3293_v58, 6 }
0x13c5   :  { %v3174_v11 = vsel %vm3173_vm11, %v5256_v7, 64.0  ;;  %vm7162_vm11 = vcmask 203776  }
0x13c6   :  { %v3175_v63 = vsel %vm7160_vm12, %v3174_v11, inf  ;;  %vm7163_vm12 = vcmask 196608  }
0x13c7   :  { %v3241_v16 = vpop.xlane.xlu1 %3240  ;;  %3176 = vmin.xlane.f32.xlu1 %v3175_v63 }
0x13c8   :  { %vm3242_vm4 = vcmp.eq.f32.partialorder %v3238_v6, %v3241_v16  ;;  %v3216_v6 = vrot.slane %v3214_v19, 1 }
0x13c9   :  { %v3243_v35 = vsel %vm3242_vm4, %v5256_v7, 64.0  ;;  %vm7164_vm4 = vmmov %vm7162_vm11 }
0x13ca   :  { %v3244_v1 = vsel %vm449_vm7, %v3243_v35, inf }
0x13cb   :  { %3245 = vmin.xlane.f32.xlu0 %v3244_v1  ;;  %v3302_v36 = vpop.xlane.xlu1 %3301 }
0x13cc   :  { %vm3303_vm8 = vcmp.eq.f32.partialorder %v3299_v4, %v3302_v36 }
0x13cd   :  { %v3304_v29 = vsel %vm3303_vm8, %v5256_v7, 64.0  ;;  %vm7165_vm8 = vmmov %vm7164_vm4 }
0x13ce   :  { %v3305_v23 = vsel %vm7161_vm9, %v3304_v29, inf  ;;  %vm7166_vm9 = vmmov %vm7163_vm12 }
0x13cf   :  { %3306 = vmin.xlane.f32.xlu1 %v3305_v23  ;;  %v1823_v28 = vpop.xlane.xlu1 %1822 }
0x13d0   :  { %vm1824_vm5 = vcmp.eq.f32.partialorder %v1385_v25, %v1823_v28 }
0x13d1   :  { %v1829_v31 = vsel %vm1824_vm5, %v6576_v50, 64.0 }
0x13d2   :  { %v1830_v52 = vsel %vm1386_vm15, %v1829_v31, inf }
0x13d3   :  { %1831 = vmin.xlane.f32.xlu1 %v1830_v52 }
0x1450   :  { %v3177_v33 = vpop.xlane.xlu1 %3176 }
0x1451   :  { %v3178_v54 = vmul.f32 %v6077_v57, %v3177_v33  ;;  %v3232_v57 = vmul.f32 %v5082_v10, %v3230_v62 }
0x1453   :  { %v3179_v5 = vsel %vm2149_vm0, %v3178_v54, 0.0  ;;  %v3234_v59 = vrot.slane %v3232_v57, 2 }
0x1454   :  { %v3180_v45 = vrot.slane %v3179_v5, 4  ;;  %v3246_v2 = vpop.xlane.xlu0 %3245 }
0x1455   :  { %v3248_v46 = vrot.slane %v3246_v2, 5 }
0x1456   :  { %v3181_v22 = vadd.f32 %v3180_v45, %v3179_v5 }
0x1457   :  { %v3250_v13 = vmul.f32 %v5082_v10, %v3248_v46  ;;  %v3505_v46 = vmul.f32 %v6469_v41, %v6469_v41 }
0x1458   :  { %v3182_v12 = vrot.slane %v3181_v22, 2  ;;  %v3307_v4 = vpop.xlane.xlu1 %3306 }
0x1459   :  { %v3252_v55 = vrot.slane %v3250_v13, 3 }
0x145a   :  { %v3183_v39 = vadd.f32 %v3182_v12, %v3181_v22 }
0x145c   :  { %v3184_v43 = vrot.slane %v3183_v39, 1  ;;  %v6667_v48 = vpop.xlane.xlu1 %1831 }
0x145d   :  { %v3313_v8 = vmul.f32 %v5118_v49, %v6667_v48 }
0x145e   :  { %v3185_v50 = vadd.f32 %v3184_v43, %v3183_v39 }
0x1460   :  { %v3186_v24 = vadd.f32 %v3185_v50, %v3167_v61  ;;  %v3308_v61 = vmul.f32 %v5082_v10, %v3307_v4 }
0x1462   :  { %v3196_v40 = vadd.f32 %v3195_v20, %v3186_v24  ;;  %v3310_v16 = vrot.slane %v3308_v61, 7  ;;  %v3506_v20 = vsel %vm2530_vm10, %v3505_v46, 0.0 }
0x1464   :  { %v3218_v26 = vadd.f32 %v3216_v6, %v3196_v40 }
0x1466   :  { %v3236_v25 = vadd.f32 %v3234_v59, %v3218_v26 }
0x1468   :  { %v3254_v56 = vadd.f32 %v3252_v55, %v3236_v25 }
0x146a   :  { %v3267_v42 = vadd.f32 %v3265_v27, %v3254_v56 }
0x146c   :  { %v3282_v11 = vadd.f32 %v3280_v14, %v3267_v42 }
0x146e   :  { %v3297_v63 = vadd.f32 %v3295_v51, %v3282_v11 }
0x1470   :  { %v3312_v35 = vadd.f32 %v3310_v16, %v3297_v63 }
0x1472   :  { %v3314_v1 = vadd.f32 %v3313_v8, %v3312_v35 }
0x1474   :  { %v3315_v36 = vmax.f32 %v3314_v1, 0.0 }
0x1476   :  { %v3316_v29 = vmin.f32 %v3315_v36, %v6098_v30 }
0x1478   :  { %v6673_v17 = vrot.slane %v3316_v29, %v4847_v9  ;;  %v4560_v23 = vtrunc.f32 %v3316_v29 }
0x147a   :  { %v3323_v28 = vmul.f32 %v5097_v15, %v6673_v17  ;;  %v4561_v31 = vcvt.f32.s32 %v4560_v23  ;;  %v3324_v33 = vmul.f32 %v5092_v0, %v6673_v17  ;;  %v3325_v30 = vmul.f32 %v5082_v10, %v6673_v17 }
0x147b   :  { %v3326_v45 = vmul.f32 %v5118_v49, %v6673_v17 }
0x147c   :  { %v3327_v52 = vsel %vm7162_vm11, %v3323_v28, 0.0  ;;  %3318 = vst.msk [vmem:[#allocation2 + $0x1] sm:$0x1] %vm7163_vm12, %v4561_v31  ;;  %v3330_v54 = vsel %vm7164_vm4, %v3324_v33, 0.0  ;;  %v3333_v5 = vsel %vm7165_vm8, %v3325_v30, 0.0  ;;  %vm7167_vm11 = vcmask 523264  }
0x147d   :  { %3328 = vadd.xlane.f32.xlu1 %v3327_v52  ;;  %v3336_v22 = vsel %vm7166_vm9, %v3326_v45, 0.0  ;;  %vm7168_vm4 = vmmov %vm7167_vm11 }
0x147e   :  { %vm7169_vm9 = vmmov %vm7168_vm4 }
0x1481   :  { %3331 = vadd.xlane.f32.xlu1 %v3330_v54 }
0x1485   :  { %3334 = vadd.xlane.f32.xlu1 %v3333_v5 }
0x1489   :  { %3337 = vadd.xlane.f32.xlu1 %v3336_v22 }
0x1506   :  { %v6688_v12 = vpop.xlane.xlu1 %3328 }
0x1507   :  { %vm3339_vm5 = vcmp.eq.f32.partialorder %v5256_v7, %v6688_v12 }
0x1508   :  { %v6693_v0 = vsel %vm3339_vm5, 1.0, %v6999_v32 }
0x1509   :  { %4517 = vmatprep.mubr.msk.f32.mxu0 %vm7167_vm11, %v6693_v0  ;;  %vm7170_vm11 = vmmov %vm7168_vm4 }
0x150a   :  { %v6697_v10 = vpop.xlane.xlu1 %3331 }
0x150b   :  { %vm3340_vm12 = vcmp.eq.f32.partialorder %v5256_v7, %v6697_v10 }
0x150c   :  { %v6702_v49 = vsel %vm3340_vm12, 1.0, %v6999_v32 }
0x150d   :  { %4518 = vmatmul.mubr.msk.f32.vlgmr.msra.gmra.mxu0 %vm7168_vm4, %v6702_v49 }
0x150e   :  { %v6706_v44 = vpop.xlane.xlu1 %3334 }
0x150f   :  { %vm3341_vm8 = vcmp.eq.f32.partialorder %v5256_v7, %v6706_v44 }
0x1510   :  { %v6711_v39 = vsel %vm3341_vm8, 1.0, %v6999_v32 }
0x1511   :  { %4520 = vmatprep.mubr.msk.f32.mxu0 %vm7169_vm9, %v6711_v39 }
0x1512   :  { %v6715_v2 = vpop.xlane.xlu1 %3337 }
0x1513   :  { %vm3342_vm5 = vcmp.eq.f32.partialorder %v5256_v7, %v6715_v2 }
0x1514   :  { %v6720_v62 = vsel %vm3342_vm5, 1.0, %v6999_v32 }
0x1515   :  { %4521 = vmatmul.mubr.msk.f32.gmra.mxu0 %vm7170_vm11, %v6720_v62 }
0x1516   :  { %4542 = vmatprep.mubr.msk.f32.mxu0 %vm7009_vm1, %v6999_v32 }
0x15cd   :  { %v6726_v43 = vpop.f32.mrf.mxu0 }
0x15ce   :  { %4095 = vst.msk [vmem:[%s6895_s14 + $0x28] sm:$0xff] %vm843_vm6, %v6726_v43  ;;  %v3454_v7 = vmul.f32 %v6726_v43, %v6726_v43 }
0x15cf   :  { %v6735_v19 = vpop.f32.mrf.mxu0 }
0x15d0   :  { %4094 = vst.msk [vmem:[%s6895_s14 + $0x20] sm:$0xff] %vm843_vm6, %v6735_v19  ;;  %v3460_v50 = vsel %vm843_vm6, %v3454_v7, 0.0  ;;  %v3453_v59 = vmul.f32 %v6735_v19, %v6735_v19 }
0x15d1   :  { %3461 = vadd.xlane.f32.xlu0 %v3460_v50 }
0x15d2   :  { %v3457_v26 = vsel %vm843_vm6, %v3453_v59, 0.0 }
0x15d5   :  { %3507 = vadd.xlane.f32.xlu0 %v3506_v20  ;;  %v6746_v57 = vpop.f32.mrf.mxu0 }
0x15d6   :  { %4097 = vst.msk [vmem:[%s6895_s14 + $0x38] sm:$0x1] %vm2475_vm2, %v6746_v57  ;;  %4535 = vmatpush3.msk.msra.mxu0 %vm507_vm13, %v6746_v57  ;;  %v3456_v24 = vmul.f32 %v6746_v57, %v6746_v57 }
0x15d7   :  { %v6757_v6 = vpop.f32.mrf.mxu0  ;;  %4536 = vmatprep.subr.mxu0 %v6999_v32 }
0x15d8   :  { %4096 = vst.msk [vmem:[%s6895_s14 + $0x30] sm:$0xff] %vm843_vm6, %v6757_v6  ;;  %4537 = vmatpush3.msra.mxu0 %v6757_v6  ;;  %v3466_v40 = vsel %vm2475_vm2, %v3456_v24, 0.0  ;;  %v3455_v13 = vmul.f32 %v6757_v6, %v6757_v6  ;;  %s4728_s14 = smov 8  }
0x15d9   :  { %3467 = vadd.xlane.f32.xlu1 %v3466_v40  ;;  %4538 = vmatprep.subr.mxu0 %v6999_v32 }
0x15da   :  { %4539 = vmatpush3.msra.mxu0 %v6726_v43  ;;  %v3463_v21 = vsel %vm843_vm6, %v3455_v13, 0.0 }
0x15db   :  { %4540 = vmatprep.subr.mxu0 %v6999_v32 }
0x15dc   :  { %4541 = vmatpush3.msra.mxu0 %v6735_v19 }
0x15dd   :  { %3464 = vadd.xlane.f32.xlu1 %v3463_v21 }
0x15e1   :  { %3458 = vadd.xlane.f32.xlu1 %v3457_v26 }
0x165a   :  { %v3462_v60 = vpop.xlane.xlu0 %3461 }
0x165b   :  { %4617 = vrsqrt.f32 %v3462_v60  ;;  %vm3478_vm2 = vcmp.eq.f32.partialorder %v3462_v60, inf  ;;  %v3481_v35 = vand.u32 2147483648, %v3462_v60  ;;  %vm3480_vm8 = vcmp.eq.f32.partialorder %v3462_v60, 0.0 }
0x165e   :  { %v3508_v55 = vpop.xlane.xlu0 %3507 }
0x165f   :  { %vm3511_vm11 = vcmp.eq.f32.partialorder %v3508_v55, inf  ;;  %v3514_v7 = vand.u32 2147483648, %v3508_v55 }
0x1662   :  { %v3468_v25 = vpop.xlane.xlu1 %3467 }
0x1663   :  { %4619 = vrsqrt.f32 %v3468_v25  ;;  %vm3492_vm12 = vcmp.eq.f32.partialorder %v3468_v25, inf  ;;  %v3495_v61 = vand.u32 2147483648, %v3468_v25  ;;  %vm3494_vm4 = vcmp.eq.f32.partialorder %v3468_v25, 0.0 }
0x1664   :  { %4621 = vrsqrt.f32 %v3508_v55 }
0x1666   :  { %v3465_v4 = vpop.xlane.xlu1 %3464 }
0x1667   :  { %4623 = vrsqrt.f32 %v3465_v4  ;;  %vm3485_vm9 = vcmp.eq.f32.partialorder %v3465_v4, inf  ;;  %v3488_v28 = vand.u32 2147483648, %v3465_v4  ;;  %vm3487_vm5 = vcmp.eq.f32.partialorder %v3465_v4, 0.0 }
0x1668   :  { %v4618_v58 = vpop.eup %4617 }
0x1669   :  { %v3477_v56 = vmul.f32 %v4618_v58, %v3462_v60  ;;  %v1798_v58 = vmul.f32 %v5097_v15, %v6565_v38 }
0x166a   :  { %v3459_v27 = vpop.xlane.xlu1 %3458 }
0x166b   :  { %4625 = vrsqrt.f32 %v3459_v27  ;;  %v3479_v11 = vsel %vm3478_vm2, %v3462_v60, %v3477_v56  ;;  %vm3471_vm2 = vcmp.eq.f32.partialorder %v3459_v27, inf  ;;  %v3474_v22 = vand.u32 2147483648, %v3459_v27 }
0x166c   :  { %v3482_v29 = vsel %vm3480_vm8, %v3481_v35, %v3479_v11  ;;  %vm3707_vm8 = vcmp.eq.f32.partialorder %v6715_v2, %v6673_v17  ;;  %v4022_v35 = vsel %vm6044_vm3, 1.0, %v6999_v32 }
0x166d   :  { %v3498_v54 = vadd.f32 1e-06, %v3482_v29 }
0x1670   :  { %v4620_v14 = vpop.eup %4619 }
0x1671   :  { %v3491_v42 = vmul.f32 %v4620_v14, %v3468_v25  ;;  %v4622_v51 = vpop.eup %4621 }
0x1672   :  { %v3510_v23 = vmul.f32 %v4622_v51, %v3508_v55 }
0x1673   :  { %v3493_v63 = vsel %vm3492_vm12, %v3468_v25, %v3491_v42  ;;  %vm3473_vm12 = vcmp.eq.f32.partialorder %v3459_v27, 0.0 }
0x1674   :  { %v4624_v16 = vpop.eup %4623  ;;  %v3496_v8 = vsel %vm3494_vm4, %v3495_v61, %v3493_v63  ;;  %v3512_v45 = vsel %vm3511_vm11, %v3508_v55, %v3510_v23  ;;  %vm3513_vm4 = vcmp.eq.f32.partialorder %v3508_v55, 0.0  ;;  %v1799_v61 = vsel %vm874_vm14, %v1798_v58, 0.0 }
0x1675   :  { %v3500_v1 = vadd.f32 1e-06, %v3496_v8  ;;  %v3484_v36 = vmul.f32 %v4624_v16, %v3465_v4  ;;  %v3515_v20 = vsel %vm3513_vm4, %v3514_v7, %v3512_v45  ;;  %v7174_v45 = vld [vmem:[#allocation9_spill] sm:$0xff]  ;;  %vm3706_vm11 = vcmp.eq.f32.partialorder %v6706_v44, %v6673_v17 }
0x1676   :  { %v3516_v40 = vadd.f32 1e-06, %v3515_v20  ;;  %vm1856_vm14 = vcmp.eq.s32.totalorder %v7174_v45, 0  ;;  %vm1841_vm3 = vcmp.eq.s32.totalorder %v7174_v45, 2 }
0x1677   :  { %4627 = vrcp.f32 %v3500_v1  ;;  %v3486_v31 = vsel %vm3485_vm9, %v3465_v4, %v3484_v36  ;;  %vm3705_vm9 = vcmp.eq.f32.partialorder %v6697_v10, %v6673_v17  ;;  %v1800_v10 = vrot.slane %v1799_v61, 4 }
0x1678   :  { %v4626_v52 = vpop.eup %4625  ;;  %v3489_v33 = vsel %vm3487_vm5, %v3488_v28, %v3486_v31  ;;  %v4107_v56 = vsel %vm3705_vm9, 1.0, %v6999_v32  ;;  %vm1861_vm5 = vcmp.eq.s32.totalorder %v7174_v45, 1 }
0x1679   :  { %v3499_v30 = vadd.f32 1e-06, %v3489_v33  ;;  %v3470_v5 = vmul.f32 %v4626_v52, %v3459_v27  ;;  %v3717_v2 = vmul.f32 %v4107_v56, %v5207_v53  ;;  %v1801_v11 = vadd.f32 %v1800_v10, %v1799_v61 }
0x167a   :  { %v1806_v53 = vrot.slane %v6565_v38, 4  ;;  %v4024_v20 = vsel %vm1861_vm5, 1.0, %v6999_v32 }
0x167b   :  { %4629 = vrcp.f32 %v3499_v30  ;;  %v3472_v50 = vsel %vm3471_vm2, %v3459_v27, %v3470_v5  ;;  %v1864_v44 = vmul.f32 %v4024_v20, %v6667_v48 }
0x167c   :  { %v3475_v46 = vsel %vm3473_vm12, %v3474_v22, %v3472_v50  ;;  %4631 = vrcp.f32 %v3498_v54  ;;  %v1807_v1 = vadd.f32 %v1806_v53, %v6565_v38  ;;  %v4023_v38 = vsel %vm1856_vm14, 1.0, %v6999_v32 }
0x167d   :  { %v3497_v24 = vadd.f32 1e-06, %v3475_v46  ;;  %v4021_v50 = vsel %vm1841_vm3, 1.0, %v6999_v32  ;;  %vm3704_vm12 = vcmp.eq.f32.partialorder %v6688_v12, %v6673_v17 }
0x167e   :  { %v1808_v36 = vrot.slane %v1807_v1, 2 }
0x167f   :  { %4633 = vrcp.f32 %v3497_v24  ;;  %v3739_v24 = vsel %vm449_vm7, %v6720_v62, -inf  ;;  %vm1819_vm7 = vcmask 122944  }
0x1680   :  { %4635 = vrcp.f32 %v3516_v40  ;;  %v1809_v29 = vadd.f32 %v1808_v36, %v1807_v1 }
0x1682   :  { %v1810_v52 = vrot.slane %v1809_v29, 1 }
0x1684   :  { %v4628_v13 = vpop.eup %4627  ;;  %v1811_v5 = vadd.f32 %v1810_v52, %v1809_v29 }
0x1685   :  { %v3522_v21 = vmul.f32 %v4628_v13, %v6746_v57  ;;  %v1859_v13 = vmul.f32 %v4023_v38, %v6048_v47 }
0x1686   :  { %v1812_v7 = vsub.f32 1.0, %v1811_v5 }
0x1687   :  { %4524 = vmatpush3.xpose.msk.msra.mxu1 %vm843_vm6, %v3522_v21 }
0x1688   :  { %v4630_v59 = vpop.eup %4629  ;;  %4525 = vmatprep.subr.mxu1 %v6999_v32 }
0x1689   :  { %v3521_v26 = vmul.f32 %v4630_v59, %v6757_v6  ;;  %v4632_v60 = vpop.eup %4631 }
0x168a   :  { %v3520_v25 = vmul.f32 %v4632_v60, %v6726_v43  ;;  %v4109_v43 = vsel %vm3707_vm8, 1.0, %v6999_v32  ;;  %v4642_v60 = vld [vmem:[%s6885_s4 + $0x3] sm:$0x1]  ;;  %vm1867_vm8 = vcmask 24576  }
0x168b   :  { %4526 = vmatpush3.xpose.msk.msra.mxu1 %vm843_vm6, %v3521_v26 }
0x168c   :  { %4527 = vmatprep.subr.mxu1 %v6999_v32  ;;  %v4634_v55 = vpop.eup %4633 }
0x168d   :  { %v4636_v57 = vpop.eup %4635  ;;  %v3519_v4 = vmul.f32 %v4634_v55, %v6735_v19 }
0x168e   :  { %v3518_v27 = vmul.f32 %v4636_v57, %v6469_v41  ;;  %v3719_v41 = vmul.f32 %v4109_v43, %v5189_v34  ;;  %v1802_v34 = vrot.slane %v1801_v11, 2 }
0x168f   :  { %4528 = vmatpush3.xpose.msk.msra.mxu1 %vm843_vm6, %v3520_v25  ;;  %v1813_v25 = vmul.f32 %v4642_v60, %v1812_v7 }
0x1690   :  { %4529 = vmatprep.subr.mxu1 %v6999_v32  ;;  %v1803_v63 = vadd.f32 %v1802_v34, %v1801_v11 }
0x1692   :  { %v1804_v16 = vrot.slane %v1803_v63, 1 }
0x1693   :  { %4530 = vmatpush3.xpose.msk.msra.mxu1 %vm843_vm6, %v3519_v4 }
0x1694   :  { %4545 = vmatprep.subr.mxu1 %v6999_v32  ;;  %v1805_v8 = vadd.f32 %v1804_v16, %v1803_v63 }
0x1696   :  { %4532 = vmatmul.mubr.msk.f32.vlgmr.msra.gmra.mxu1 %vm843_vm6, %v3518_v27  ;;  %vm7172_vm6 = vcmask 203776  }
0x1697   :  { %4553 = vmatprep.mubr.msk.f32.mxu1 %vm7009_vm1, %v6999_v32  ;;  %vm7171_vm1 = vcmask 196608   ;;  %v3723_v51 = vsel %vm7172_vm6, %v3717_v2, -inf  ;;  %vm7178_vm9 = vmmov %vm7172_vm6 }
0x1698   :  { %v3729_v42 = vsel %vm7171_vm1, %v3719_v41, -inf  ;;  %v4106_v41 = vsel %vm3704_vm12, 1.0, %v6999_v32  ;;  %vm7179_vm1 = vmmov %vm7172_vm6 }
0x1699   :  { %v3716_v12 = vmul.f32 %v4106_v41, %v5217_v18  ;;  %vm7181_vm6 = vmmov %vm7179_vm1 }
0x169a   :  { %vm7182_vm14 = vmmov %vm7179_vm1 }
0x169b   :  { %v3720_v2 = vsel %vm7179_vm1, %v3716_v12, -inf }
0x1756   :  { %v3604_v19 = vpop.f32.mrf.mxu1 }
0x1757   :  { %v3608_v6 = vsel %vm2149_vm0, %v3604_v19, -inf }
0x1758   :  { %3609 = vmax.xlane.f32.xlu1 %v3608_v6  ;;  %v4533_v14 = vpop.f32.mrf.mxu1 }
0x175c   :  { %3730 = vmax.xlane.f32.xlu1 %v3729_v42 }
0x1760   :  { %3724 = vmax.xlane.f32.xlu1 %v3723_v51 }
0x1771   :  { %1848 = vperm.xlu1 %4587, %v4022_v35  }
0x1775   :  { %1815 = vrot.lane.b32.xlu1 %v1805_v8, %s4728_s14 }
0x17e1   :  { %v3610_v23 = vpop.xlane.xlu1 %3609 }
0x17e2   :  { %v3611_v28 = vsub.f32 %v3604_v19, %v3610_v23 }
0x17e4   :  { %v3612_v31 = vmul.f32 1.442695, %v3611_v28 }
0x17e5   :  { %v3731_v33 = vpop.xlane.xlu1 %3730 }
0x17e6   :  { %4637 = vpow2.f32 %v3612_v31  ;;  %v3735_v54 = vsub.f32 1.0, %v3731_v33 }
0x17e8   :  { %v3758_v30 = vmul.f32 %v6720_v62, %v3735_v54  ;;  %v4108_v62 = vsel %vm3706_vm11, 1.0, %v6999_v32 }
0x17e9   :  { %v6814_v22 = vpop.xlane.xlu1 %3724  ;;  %v3718_v48 = vmul.f32 %v4108_v62, %v5192_v37 }
0x17ea   :  { %4546 = vmatpush3.msk.msra.mxu1 %vm507_vm13, %v3758_v30  ;;  %vm7175_vm13 = vcmask 523264   ;;  %v3733_v16 = vsub.f32 1.0, %v6814_v22 }
0x17eb   :  { %4547 = vmatprep.subr.mxu1 %v6999_v32  ;;  %v3737_v21 = vsel %vm7175_vm13, %v6702_v49, -inf  ;;  %vm7176_vm2 = vmmov %vm7175_vm13  ;;  %v3726_v17 = vsel %vm7178_vm9, %v3718_v48, -inf }
0x17ec   :  { %v3738_v59 = vsel %vm7176_vm2, %v6711_v39, -inf  ;;  %vm7177_vm4 = vmmov %vm7176_vm2  ;;  %v3756_v53 = vmul.f32 %v6702_v49, %v3733_v16 }
0x17ed   :  { %v1849_v46 = vpop.permute.xlu1 %1848  ;;  %v3741_v55 = vmax.f32 %v3738_v59, %v3739_v24  ;;  %v3736_v47 = vsel %vm7177_vm4, %v6693_v0, -inf }
0x17ee   :  { %v1854_v40 = vrot.slane %v1849_v46, %v4847_v9  ;;  %v3740_v43 = vmax.f32 %v3736_v47, %v3737_v21 }
0x17f0   :  { %v1855_v26 = vmul.f32 %v4021_v50, %v1854_v40  ;;  %v3742_v58 = vmax.f32 %v3740_v43, %v3741_v55 }
0x17f1   :  { %v1816_v9 = vpop.permute.xlu1 %1815 }
0x17f2   :  { %v1860_v57 = vadd.f32 %v1859_v13, %v1855_v26  ;;  %v1818_v4 = vadd.f32 %v1816_v9, %v1813_v25  ;;  %v3743_v42 = vrot.slane %v3742_v58, 4 }
0x17f3   :  { %v4638_v27 = vpop.eup %4637 }
0x17f4   :  { %1820 = vst.msk [vmem:[#allocation4 + $0x3] sm:$0x1] %vm1819_vm7, %v1818_v4  ;;  %v3614_v19 = vsel %vm2149_vm0, %v4638_v27, 0.0  ;;  %v1865_v6 = vadd.f32 %v1864_v44, %v1860_v57  ;;  %v3744_v61 = vmax.f32 %v3742_v58, %v3743_v42  ;;  %vm7180_vm0 = vmmov %vm7176_vm2 }
0x17f5   :  { %3615 = vadd.xlane.f32.xlu0 %v3614_v19 }
0x17f6   :  { %v4556_v56 = vtrunc.f32 %v1865_v6  ;;  %v3745_v37 = vrot.slane %v3744_v61, 2 }
0x17f8   :  { %v4557_v14 = vcvt.f32.s32 %v4556_v56  ;;  %v3746_v10 = vmax.f32 %v3744_v61, %v3745_v37 }
0x17f9   :  { %3727 = vmax.xlane.f32.xlu0 %v3726_v17 }
0x17fa   :  { %1868 = vst.msk [vmem:[#allocation6] sm:$0x1] %vm1867_vm8, %v4557_v14  ;;  %v3747_v51 = vrot.slane %v3746_v10, 1 }
0x17fc   :  { %v3748_v11 = vmax.f32 %v3746_v10, %v3747_v51 }
0x17fd   :  { %3721 = vmax.xlane.f32.xlu0 %v3720_v2 }
0x17fe   :  { %v3749_v34 = vsub.f32 1.0, %v3748_v11 }
0x1813   :  { %3751 = vrot.lane.b32.xlu0 %v3749_v34, %s4713_s20 }
0x1817   :  { %1760 = vrot.lane.b32.xlu0 %v6562_v3, %s4713_s20 }
0x187e   :  { %v3616_v63 = vpop.xlane.xlu0 %3615 }
0x187f   :  { %4639 = vrcp.f32 %v3616_v63 }
0x1882   :  { %v3728_v18 = vpop.xlane.xlu0 %3727 }
0x1883   :  { %v3734_v15 = vsub.f32 1.0, %v3728_v18 }
0x1885   :  { %v3757_v35 = vmul.f32 %v6711_v39, %v3734_v15 }
0x1886   :  { %v3722_v8 = vpop.xlane.xlu0 %3721 }
0x1887   :  { %v3732_v1 = vsub.f32 1.0, %v3722_v8  ;;  %4548 = vmatpush3.msra.mxu1 %v3757_v35 }
0x1888   :  { %4549 = vmatprep.subr.mxu1 %v6999_v32 }
0x1889   :  { %v3755_v36 = vmul.f32 %v6693_v0, %v3732_v1  ;;  %4550 = vmatpush3.msra.mxu1 %v3756_v53 }
0x188a   :  { %v3752_v29 = vpop.permute.xlu0 %3751  ;;  %4551 = vmatprep.subr.mxu1 %v6999_v32 }
0x188b   :  { %4552 = vmatpush3.msra.mxu1 %v3755_v36 }
0x188c   :  { %v4640_v3 = vpop.eup %4639 }
0x188d   :  { %v3618_v23 = vmul.f32 %v4640_v3, %v4638_v27 }
0x188e   :  { %v1761_v28 = vpop.permute.xlu0 %1760 }
0x188f   :  { %4018 = vst.msk [vmem:[%s6896_s15 + $0x8] sm:$0xff] %vm7180_vm0, %v1761_v28  ;;  %4543 = vmatmul.mubr.msk.f32.vlgmr.msra.gmra.mxu0 %vm7181_vm6, %v3618_v23  ;;  %v3697_v49 = vrot.slane %v3618_v23, 1 }
0x1891   :  { %v3699_v39 = vmul.f32 %v3697_v49, %v3618_v23 }
0x1893   :  { %v3701_v31 = vrot.slane %v3699_v39, 2 }
0x1895   :  { %v3703_v52 = vmul.f32 %v3701_v31, %v3699_v39 }
0x1897   :  { %4554 = vmatmul.mubr.msk.f32.vlgmr.msra.gmra.mxu1 %vm7182_vm14, %v3703_v52 }
0x194f   :  { %v3691_v0 = vpop.f32.mrf.mxu0 }
0x1950   :  { %4105 = vst.msk [vmem:[%s6891_s10 + $0x4] sm:$0xf] %vm2530_vm10, %v3691_v0 }
0x1951   :  { %v4544_v32 = vpop.f32.mrf.mxu0 }
0x1952   :  { %4658 = shalt.err (!%p4655_p4)
}
0x1953   :  { %3852 = dma.vmem_to_hbm [thread:$0]  %s3850_s29, 32, %s6892_s11, [#allocation3]   ;;  %v4643_v30 = vld [vmem:[%s6885_s4] sm:$0x1] }
0x1954   :  { %s4730_s9 = smov [#allocation4]   ;;  %v3754_v5 = vmul.f32 %v4643_v30, %v3752_v29  ;;  %s4731_s16 = smov [#allocation6]  }
0x1955   :  { %s3859_s19 = sshll.u32 %s4730_s9, 4  ;;  %s3877_s28 = sshll.u32 %s4731_s16, 4  ;;  %s3860_s19 = int_to_ptr.vmem [resolvable:$true] %s3859_s19  ;;  %s3878_s28 = int_to_ptr.vmem [resolvable:$true] %s3877_s28 }
0x1956   :  { %s4667_s11 = scalar_lea.vmem %s3860_s19, 64  ;;  %p4672_p6 = scmp.lt.s32.totalorder %s3860_s19, %s3860_s19 }
0x1957   :  { %v3831_v33 = vpop.f32.mrf.mxu1  ;;  %p4668_p5 = scmp.ne.s32.totalorder %s3860_s19, %s4667_s11  ;;  %p4673_p7 = scmp.lt.s32.totalorder %s4667_s11, %s4667_s11 }
0x1958   :  { %3836 = vrot.lane.b32.xlu1 %v3831_v33, %s4713_s20 }
0x1959   :  { %v4555_v54 = vpop.f32.mrf.mxu1  ;;  %p4674_p8 = por %p4673_p7, %p4672_p6 }
0x195b   :  { %p4675_p9 = pnand %p4674_p8, %p4668_p5 }
0x19ca   :  { %v3837_v45 = vpop.permute.xlu1 %3836 }
0x19cb   :  { %v3839_v22 = vadd.f32 %v3837_v45, %v3754_v5 }
0x19cd   :  { %3840 = vst.msk [vmem:[#allocation4] sm:$0x1] %vm1386_vm15, %v3839_v22 }
0x19ce   :  { %4678 = shalt.err (!%p4675_p9)
}
0x19cf   :  { %3862 = dma.vmem_to_hbm [thread:$0]  %s3860_s19, 64, %s6893_s12, [#allocation5]  }
0x19d0   :  { %s4687_s4 = scalar_lea.vmem %s3878_s28, 16  ;;  %s4691_s21 = scalar_lea.vmem %s3878_s28, 32 }
0x19d1   :  { %p4688_p10 = scmp.ne.s32.totalorder %s3878_s28, %s4687_s4  ;;  %p4692_p11 = scmp.lt.s32.totalorder %s3878_s28, %s3878_s28 }
0x19d2   :  { %p4693_p12 = scmp.lt.s32.totalorder %s4691_s21, %s4687_s4 }
0x19d4   :  { %p4694_p13 = por %p4693_p12, %p4692_p11 }
0x19d6   :  { %p4695_p0 = pnand %p4694_p13, %p4688_p10 }
0x19d8   :  { %4698 = shalt.err (!%p4695_p0)
}
0x19d9   :  { %3880 = dma.vmem_to_hbm [thread:$0]  %s3878_s28, 16, %s6898_s17, [#allocation5]  }
0x19da   :  { %4707 = dma.done.wait [#allocation3], 32  }
0x19db   :  { %4708 = vsyncadd [#allocation3], 4294967264 }
0x19dc   :  { %4709 = dma.done.wait [#allocation5], 80  }
0x19dd   :  { %4710 = vsyncadd [#allocation5], 4294967216 }
0x19de   :  { %3900 = vsyncpa [#allocation3], 1 }
0x19df   :  { %3901 = vsyncpa [#allocation5], 1 }

</bundles_post_ra>
